<compile_context>
chip_gen: v5e
topology: v5e:2x2
jax: 0.10.0
libtpu: 0.0.40
codegen_flags: <defaults>
</compile_context>

<pallas_src>
import math

import numpy as np
import jax
import jax.numpy as jnp
from jax.experimental import pallas as pl
from jax.experimental.pallas import tpu as pltpu


def _make_kernel(*, d_model, n_heads, head_dim, seq_len, block_b, eps,
                 approx_recip, activation):
    D, H, E, L, Bb = d_model, n_heads, head_dim, seq_len, block_b
    M = Bb * L

    # dot_general dimension_numbers (single leading batch dim everywhere).
    dn_scores = (((2,), (2,)), ((0,), (0,)))  # (HB,L,E) x (HB,S,E) -> (HB,L,S)
    dn_pv = (((2,), (1,)), ((0,), (0,)))      # (HB,L,S) x (HB,S,E) -> (HB,L,E)
    dn_oproj = (((2,), (1,)), ((0,), (0,)))   # (H,M,E)  x (H,E,D)  -> (H,M,D)

    def kernel(x_ref,
               wqkv_ref, bqkv_ref, wo_ref, bo_ref,
               g1_ref, be1_ref,
               w1_ref, b1_ref, w2_ref, b2_ref,
               g2_ref, be2_ref,
               out_ref):
        cdt = wqkv_ref.dtype                  # bf16 (fast) or f32 (exact) MXU inputs
        x = x_ref[...].astype(jnp.float32)    # (M, D) residual path in f32

        # ---- fused Q|K|V projection: one lane-dense (M,D)@(D,3D) matmul ---------
        # The 1/sqrt(E) attention scale is pre-folded into the Q columns/bias.
        qkv = jnp.dot(x.astype(cdt), wqkv_ref[...],
                      preferred_element_type=jnp.float32) + bqkv_ref[...]
        qkv = qkv.astype(cdt).reshape(Bb, L, 3 * D)   # single cast; free relabel

        # ---- per-head views, gathered into one (H*Bb)-batched attention ---------
        # Static lane slices; leading-axis concat is an untiled-axis copy only.
        q = jnp.concatenate(
            [qkv[:, :, h * E:(h + 1) * E] for h in range(H)], axis=0)
        k = jnp.concatenate(
            [qkv[:, :, D + h * E:D + (h + 1) * E] for h in range(H)], axis=0)
        v = jnp.concatenate(
            [qkv[:, :, 2 * D + h * E:2 * D + (h + 1) * E] for h in range(H)], axis=0)
        # q, k, v: (H*Bb, L, E), batch index = h*Bb + b

        # DSAttention with tau=1, delta=0, no mask: plain softmax attention.
        s = jax.lax.dot_general(q, k, dn_scores,
                                preferred_element_type=jnp.float32)   # (HB,L,S)
        s = s - jnp.max(s, axis=-1, keepdims=True)
        p = jnp.exp(s)
        p = p * pl.reciprocal(jnp.sum(p, axis=-1, keepdims=True),
                              approx=approx_recip)

        o = jax.lax.dot_general(p.astype(cdt), v, dn_pv,
                                preferred_element_type=jnp.float32)   # (HB,L,E)
        o = o.astype(cdt).reshape(H, M, E)                            # relabel
        z = jax.lax.dot_general(o, wo_ref[...], dn_oproj,
                                preferred_element_type=jnp.float32)   # (H,M,D)
        new_x = jnp.sum(z, axis=0) + bo_ref[...]   # concat(heads)@Wo + bo, in regs

        # ---- residual + LayerNorm1 (f32, fused) ---------------------------------
        x1 = x + new_x
        mu1 = jnp.mean(x1, axis=-1, keepdims=True)
        var1 = jnp.mean((x1 - mu1) * (x1 - mu1), axis=-1, keepdims=True)
        xn = (x1 - mu1) * jax.lax.rsqrt(var1 + eps) * g1_ref[...] + be1_ref[...]

        # ---- position-wise FFN (Conv1d k=1 == per-position linear) --------------
        h1 = jnp.dot(xn.astype(cdt), w1_ref[...],
                     preferred_element_type=jnp.float32) + b1_ref[...]
        if activation == "relu":
            h1 = jnp.maximum(h1, 0.0)
        else:
            # TODO(synk): tanh-approx gelu; PyTorch F.gelu default is erf-exact.
            h1 = 0.5 * h1 * (1.0 + jnp.tanh(0.7978845608028654 *
                                            (h1 + 0.044715 * h1 * h1 * h1)))
        y = jnp.dot(h1.astype(cdt), w2_ref[...],
                    preferred_element_type=jnp.float32) + b2_ref[...]

        # ---- residual + LayerNorm2 -----------------------------------------------
        z2 = xn + y
        mu2 = jnp.mean(z2, axis=-1, keepdims=True)
        var2 = jnp.mean((z2 - mu2) * (z2 - mu2), axis=-1, keepdims=True)
        out = (z2 - mu2) * jax.lax.rsqrt(var2 + eps) * g2_ref[...] + be2_ref[...]

        out_ref[...] = out.astype(out_ref.dtype)

    return kernel


def _pick_block_b(B, L, target_rows=128, min_steps=4):
    """Batch tile: aim for >= min_steps grid steps (>= 2 per TensorCore on v7x's
    2-core megacore) and ~target_rows sublane-aligned rows per step."""
    cands = [d for d in range(1, B + 1)
             if B % d == 0 and ((d * L) % 8 == 0 or d == B)]

    def badness(d):
        steps = B // d
        need = min(min_steps, B)
        return (max(0, need - steps), abs(d * L - target_rows), -d)

    return min(cands, key=badness)


def _padded_bytes(shape, itemsize):
    """Approximate VMEM footprint of a value with (8,128) tile padding."""
    if not shape:
        return 4
    rows = 1
    for d in shape[:-1]:
        rows *= int(d)
    rows = -(-rows // 8) * 8
    lanes = -(-int(shape[-1]) // 128) * 128
    return rows * lanes * itemsize


def encoder_layer_forward(x, params, n_heads, *, compute_dtype=jnp.bfloat16,
                          block_b=None, activation="relu", eps=1e-5):
    """Fused EncoderLayer forward.  x: (B, L, D) float32.  Returns (out, None)."""
    B, L, D = x.shape
    H = n_heads
    assert D % H == 0
    E = D // H
    F = params["w1"].shape[1]

    if block_b is None:
        block_b = _pick_block_b(B, L)
    assert B % block_b == 0
    M = block_b * L
    assert M % 8 == 0 or block_b == B
    grid = (B // block_b,)

    cdt = np.dtype(compute_dtype)
    approx_recip = bool(cdt == np.dtype(jnp.bfloat16))
    scale = 1.0 / math.sqrt(E)

    # Weight prep (outside the kernel, free XLA ops):
    #  * Wq|Wk|Wv fused into one lane-dense (D, 3D) matrix; the 1/sqrt(E)
    #    attention scale is folded into the Q columns / bias BEFORE the bf16 cast.
    #  * Wo reshaped head-major (H, E, D): head merge = batched matmul + sum.
    #  * Matmul weights cast to the compute dtype; biases / LN params stay f32.
    wqkv = jnp.concatenate([params["wq"] * scale, params["wk"], params["wv"]],
                           axis=1).astype(cdt)                           # (D, 3D)
    bqkv = jnp.concatenate([params["bq"] * scale, params["bk"], params["bv"]],
                           axis=1).astype(jnp.float32)                   # (1, 3D)
    wo3 = params["wo"].reshape(H, E, D).astype(cdt)                      # (H, E, D)
    w1 = params["w1"].astype(cdt)
    w2 = params["w2"].astype(cdt)

    # Flat lane-contiguous (M, D) row slab per grid step; (B, L, D) restored
    # for free outside the kernel.
    x2 = x.reshape(B * L, D)

    kernel = _make_kernel(d_model=D, n_heads=H, head_dim=E, seq_len=L,
                          block_b=block_b, eps=eps, approx_recip=approx_recip,
                          activation=activation)

    def const_spec(shape):
        n = len(shape)
        return pl.BlockSpec(shape, lambda i, n=n: (0,) * n)   # grid-invariant

    in_specs = [
        pl.BlockSpec((M, D), lambda i: (i, 0)),          # x rows for this step
        const_spec((D, 3 * D)), const_spec((1, 3 * D)),  # fused Wqkv, bqkv
        const_spec((H, E, D)), const_spec((1, D)),       # Wo (head-major), bo
        const_spec((1, D)), const_spec((1, D)),          # LN1 gamma, beta
        const_spec((D, F)), const_spec((1, F)),          # conv1 W, b
        const_spec((F, D)), const_spec((1, D)),          # conv2 W, b
        const_spec((1, D)), const_spec((1, D)),          # LN2 gamma, beta
    ]
    out_specs = pl.BlockSpec((M, D), lambda i: (i, 0))

    operands = (x2, wqkv, bqkv, wo3, params["bo"],
                params["g1"], params["be1"],
                w1, params["b1"], w2, params["b2"],
                params["g2"], params["be2"])

    # VMEM budget: real per-step footprint (double-buffered weights + x/out
    # blocks + padded in-kernel intermediates, the latter x2 for spill slack)
    # plus ~2 MiB headroom; no 32 MiB floor, capped at v7x's 64 MiB physical.
    weight_bytes = 2 * sum(_padded_bytes(a.shape, a.dtype.itemsize)
                           for a in operands[1:])
    io_bytes = 2 * 2 * _padded_bytes((M, D), 4)
    interm_bytes = (
        _padded_bytes((M, 3 * D), 4) + _padded_bytes((M, 3 * D), 2)
        + 3 * H * block_b * _padded_bytes((L, E), 4)
        + 3 * H * block_b * _padded_bytes((L, L), 4)
        + H * (_padded_bytes((M, E), 4) + _padded_bytes((M, D), 4))
        + 2 * _padded_bytes((M, F), 4)
        + 10 * _padded_bytes((M, D), 4))
    vmem_limit = int(min(64 * 1024 * 1024,
                         max(8 * 1024 * 1024,
                             weight_bytes + io_bytes + 2 * interm_bytes
                             + 2 * 1024 * 1024)))

    out2 = pl.pallas_call(
        kernel,
        out_shape=jax.ShapeDtypeStruct((B * L, D), jnp.float32),
        grid_spec=pltpu.PrefetchScalarGridSpec(
            num_scalar_prefetch=0,
            grid=grid,
            in_specs=in_specs,
            out_specs=out_specs,
        ),
        compiler_params=pltpu.CompilerParams(
            dimension_semantics=("parallel",),
            vmem_limit_bytes=vmem_limit,
        ),
    )(*operands)

    return out2.reshape(B, L, D), None


def reference_forward(x, params, n_heads, eps=1e-5, activation="relu"):
    """Pure-JAX reference mirroring the PyTorch EncoderLayer forward (eval)."""
    B, L, D = x.shape
    E = D // n_heads
    q = x @ params["wq"] + params["bq"]
    k = x @ params["wk"] + params["bk"]
    v = x @ params["wv"] + params["bv"]
    q = q.reshape(B, L, n_heads, E)
    k = k.reshape(B, L, n_heads, E)
    v = v.reshape(B, L, n_heads, E)
    scores = jnp.einsum("blhe,bshe->bhls", q, k)
    A = jax.nn.softmax(scores / math.sqrt(E), axis=-1)
    new_x = jnp.einsum("bhls,bshd->blhd", A, v).reshape(B, L, D)
    new_x = new_x @ params["wo"] + params["bo"]

    def ln(t, g, b):
        mu = jnp.mean(t, -1, keepdims=True)
        var = jnp.mean((t - mu) ** 2, -1, keepdims=True)
        return (t - mu) / jnp.sqrt(var + eps) * g + b

    x1 = ln(x + new_x, params["g1"], params["be1"])
    h = x1 @ params["w1"] + params["b1"]
    # tanh-approx gelu to match the in-kernel implementation (see TODO there).
    h = jnp.maximum(h, 0.0) if activation == "relu" else jax.nn.gelu(h, approximate=True)
    y = h @ params["w2"] + params["b2"]
    return ln(x1 + y, params["g2"], params["be2"])


def make_params(key, d_model, d_ff):
    ks = jax.random.split(key, 12)
    s = 0.05
    return {
        "wq": jax.random.normal(ks[0], (d_model, d_model), jnp.float32) * s,
        "bq": jax.random.normal(ks[1], (1, d_model), jnp.float32) * s,
        "wk": jax.random.normal(ks[2], (d_model, d_model), jnp.float32) * s,
        "bk": jax.random.normal(ks[3], (1, d_model), jnp.float32) * s,
        "wv": jax.random.normal(ks[4], (d_model, d_model), jnp.float32) * s,
        "bv": jax.random.normal(ks[5], (1, d_model), jnp.float32) * s,
        "wo": jax.random.normal(ks[6], (d_model, d_model), jnp.float32) * s,
        "bo": jax.random.normal(ks[7], (1, d_model), jnp.float32) * s,
        "w1": jax.random.normal(ks[8], (d_model, d_ff), jnp.float32) * s,
        "b1": jax.random.normal(ks[9], (1, d_ff), jnp.float32) * s,
        "w2": jax.random.normal(ks[10], (d_ff, d_model), jnp.float32) * s,
        "b2": jax.random.normal(ks[11], (1, d_model), jnp.float32) * s,
        "g1": jnp.ones((1, d_model), jnp.float32),
        "be1": jnp.zeros((1, d_model), jnp.float32),
        "g2": jnp.ones((1, d_model), jnp.float32),
        "be2": jnp.zeros((1, d_model), jnp.float32),
    }


if __name__ == "__main__":
    # Small config consistent with NSTransformer: d_model=32 (module default),
    # d_ff = 4*d_model (EncoderLayer default when d_ff=None), multi-head
    # DSAttention(mask_flag=False).
    B, L, d_model, n_heads = 8, 64, 32, 4
    d_ff = 4 * d_model

    key = jax.random.PRNGKey(0)
    kx, kp = jax.random.split(key)
    x = jax.random.normal(kx, (B, L, d_model), jnp.float32)
    params = make_params(kp, d_model, d_ff)

    # Exact path (f32 MXU inputs) -- tight check against the JAX reference.
    ref_relu = reference_forward(x, params, n_heads, activation="relu")
    out_f32, attn = encoder_layer_forward(x, params, n_heads,
                                          compute_dtype=jnp.float32,
                                          activation="relu")
    out_f32 = jax.block_until_ready(out_f32)
    assert out_f32.shape == (B, L, d_model)
    assert attn is None
    assert jnp.allclose(out_f32, ref_relu, atol=1e-4, rtol=1e-4), "f32 kernel mismatch"

    # Fast path (bf16 MXU inputs, f32 accumulation / softmax / LayerNorm).
    out_bf16, _ = encoder_layer_forward(x, params, n_heads,
                                        compute_dtype=jnp.bfloat16,
                                        activation="relu")
    out_bf16 = jax.block_until_ready(out_bf16)
    assert jnp.allclose(out_bf16, ref_relu, atol=5e-2, rtol=5e-2), "bf16 kernel mismatch"

    # gelu path (NSTransformer's default activation; tanh-approx on both sides).
    ref_gelu = reference_forward(x, params, n_heads, activation="gelu")
    out_gelu, _ = encoder_layer_forward(x, params, n_heads,
                                        compute_dtype=jnp.float32,
                                        activation="gelu")
    out_gelu = jax.block_until_ready(out_gelu)
    assert jnp.allclose(out_gelu, ref_gelu, atol=1e-4, rtol=1e-4), "gelu kernel mismatch"

    print("KERNEL_OK")
</pallas_src>

<mosaic_0001>
module attributes {stable_mosaic.version = 11 : i64} {
  func.func @kernel(%arg0: i32, %arg1: memref<128x32xf32, #tpu.memory_space<vmem>>, %arg2: memref<32x96xf32, #tpu.memory_space<vmem>>, %arg3: memref<1x96xf32, #tpu.memory_space<vmem>>, %arg4: memref<4x8x32xf32, #tpu.memory_space<vmem>>, %arg5: memref<1x32xf32, #tpu.memory_space<vmem>>, %arg6: memref<1x32xf32, #tpu.memory_space<vmem>>, %arg7: memref<1x32xf32, #tpu.memory_space<vmem>>, %arg8: memref<32x128xf32, #tpu.memory_space<vmem>>, %arg9: memref<1x128xf32, #tpu.memory_space<vmem>>, %arg10: memref<128x32xf32, #tpu.memory_space<vmem>>, %arg11: memref<1x32xf32, #tpu.memory_space<vmem>>, %arg12: memref<1x32xf32, #tpu.memory_space<vmem>>, %arg13: memref<1x32xf32, #tpu.memory_space<vmem>>, %arg14: memref<128x32xf32, #tpu.memory_space<vmem>>) attributes {dimension_semantics = [#tpu.dimension_semantics<parallel>], iteration_bounds = array<i64: 4>, scalar_prefetch = 0 : i64, scratch_operands = 0 : i64, tpu.core_type = #tpu.core_type<tc>, window_params = [{transform_indices = @transform_0, window_bounds = array<i64: 128, 32>}, {pipeline_mode = #tpu.pipeline_mode<synchronous>, transform_indices = @transform_1, window_bounds = array<i64: 32, 96>}, {pipeline_mode = #tpu.pipeline_mode<synchronous>, transform_indices = @transform_2, window_bounds = array<i64: 1, 96>}, {pipeline_mode = #tpu.pipeline_mode<synchronous>, transform_indices = @transform_3, window_bounds = array<i64: 4, 8, 32>}, {pipeline_mode = #tpu.pipeline_mode<synchronous>, transform_indices = @transform_4, window_bounds = array<i64: 1, 32>}, {pipeline_mode = #tpu.pipeline_mode<synchronous>, transform_indices = @transform_5, window_bounds = array<i64: 1, 32>}, {pipeline_mode = #tpu.pipeline_mode<synchronous>, transform_indices = @transform_6, window_bounds = array<i64: 1, 32>}, {pipeline_mode = #tpu.pipeline_mode<synchronous>, transform_indices = @transform_7, window_bounds = array<i64: 32, 128>}, {pipeline_mode = #tpu.pipeline_mode<synchronous>, transform_indices = @transform_8, window_bounds = array<i64: 1, 128>}, {pipeline_mode = #tpu.pipeline_mode<synchronous>, transform_indices = @transform_9, window_bounds = array<i64: 128, 32>}, {pipeline_mode = #tpu.pipeline_mode<synchronous>, transform_indices = @transform_10, window_bounds = array<i64: 1, 32>}, {pipeline_mode = #tpu.pipeline_mode<synchronous>, transform_indices = @transform_11, window_bounds = array<i64: 1, 32>}, {pipeline_mode = #tpu.pipeline_mode<synchronous>, transform_indices = @transform_12, window_bounds = array<i64: 1, 32>}, {transform_indices = @transform_13, window_bounds = array<i64: 128, 32>}]} {
    %c0 = arith.constant 0 : index
    %c0_0 = arith.constant 0 : index
    %0 = vector.load %arg1[%c0, %c0_0] : memref<128x32xf32, #tpu.memory_space<vmem>>, vector<128x32xf32>
    %c0_1 = arith.constant 0 : index
    %c0_2 = arith.constant 0 : index
    %1 = vector.load %arg2[%c0_1, %c0_2] : memref<32x96xf32, #tpu.memory_space<vmem>>, vector<32x96xf32>
    %cst = arith.constant dense<0.000000e+00> : vector<128x96xf32>
    %2 = tpu.matmul %0, %1, %cst {dimension_numbers = #tpu.dot_dimension_numbers<[1], [0], [0], [1], [0, 0, 1, 1], [], []>} : vector<128x32xf32>, vector<32x96xf32>, vector<128x96xf32> -> vector<128x96xf32>
    %c0_3 = arith.constant 0 : index
    %c0_4 = arith.constant 0 : index
    %3 = vector.load %arg3[%c0_3, %c0_4] : memref<1x96xf32, #tpu.memory_space<vmem>>, vector<1x96xf32>
    %4 = vector.broadcast %3 : vector<1x96xf32> to vector<128x96xf32>
    %5 = arith.addf %2, %4 : vector<128x96xf32>
    %6 = vector.shape_cast %5 : vector<128x96xf32> to vector<2x64x96xf32>
    %7 = vector.extract_strided_slice %6 {offsets = [0, 0, 0], sizes = [2, 64, 8], strides = [1, 1, 1]} : vector<2x64x96xf32> to vector<2x64x8xf32>
    %8 = vector.extract_strided_slice %6 {offsets = [0, 0, 8], sizes = [2, 64, 8], strides = [1, 1, 1]} : vector<2x64x96xf32> to vector<2x64x8xf32>
    %9 = vector.extract_strided_slice %6 {offsets = [0, 0, 16], sizes = [2, 64, 8], strides = [1, 1, 1]} : vector<2x64x96xf32> to vector<2x64x8xf32>
    %10 = vector.extract_strided_slice %6 {offsets = [0, 0, 24], sizes = [2, 64, 8], strides = [1, 1, 1]} : vector<2x64x96xf32> to vector<2x64x8xf32>
    %11 = tpu.concatenate %7, %8, %9, %10 in 0 : vector<2x64x8xf32>, vector<2x64x8xf32>, vector<2x64x8xf32>, vector<2x64x8xf32> -> vector<8x64x8xf32>
    %12 = vector.extract_strided_slice %6 {offsets = [0, 0, 32], sizes = [2, 64, 8], strides = [1, 1, 1]} : vector<2x64x96xf32> to vector<2x64x8xf32>
    %13 = vector.extract_strided_slice %6 {offsets = [0, 0, 40], sizes = [2, 64, 8], strides = [1, 1, 1]} : vector<2x64x96xf32> to vector<2x64x8xf32>
    %14 = vector.extract_strided_slice %6 {offsets = [0, 0, 48], sizes = [2, 64, 8], strides = [1, 1, 1]} : vector<2x64x96xf32> to vector<2x64x8xf32>
    %15 = vector.extract_strided_slice %6 {offsets = [0, 0, 56], sizes = [2, 64, 8], strides = [1, 1, 1]} : vector<2x64x96xf32> to vector<2x64x8xf32>
    %16 = tpu.concatenate %12, %13, %14, %15 in 0 : vector<2x64x8xf32>, vector<2x64x8xf32>, vector<2x64x8xf32>, vector<2x64x8xf32> -> vector<8x64x8xf32>
    %17 = vector.extract_strided_slice %6 {offsets = [0, 0, 64], sizes = [2, 64, 8], strides = [1, 1, 1]} : vector<2x64x96xf32> to vector<2x64x8xf32>
    %18 = vector.extract_strided_slice %6 {offsets = [0, 0, 72], sizes = [2, 64, 8], strides = [1, 1, 1]} : vector<2x64x96xf32> to vector<2x64x8xf32>
    %19 = vector.extract_strided_slice %6 {offsets = [0, 0, 80], sizes = [2, 64, 8], strides = [1, 1, 1]} : vector<2x64x96xf32> to vector<2x64x8xf32>
    %20 = vector.extract_strided_slice %6 {offsets = [0, 0, 88], sizes = [2, 64, 8], strides = [1, 1, 1]} : vector<2x64x96xf32> to vector<2x64x8xf32>
    %21 = tpu.concatenate %17, %18, %19, %20 in 0 : vector<2x64x8xf32>, vector<2x64x8xf32>, vector<2x64x8xf32>, vector<2x64x8xf32> -> vector<8x64x8xf32>
    %cst_5 = arith.constant dense<0.000000e+00> : vector<8x64x64xf32>
    %22 = tpu.matmul %11, %16, %cst_5 {dimension_numbers = #tpu.dot_dimension_numbers<[2], [2], [1], [1], [0, 0, 0, 1, 1, 1], [0], [0]>} : vector<8x64x8xf32>, vector<8x64x8xf32>, vector<8x64x64xf32> -> vector<8x64x64xf32>
    %cst_6 = arith.constant dense<0xFF800000> : vector<8x64xf32>
    %23 = vector.multi_reduction <maximumf>, %22, %cst_6 [2] : vector<8x64x64xf32> to vector<8x64xf32>
    %24 = vector.shape_cast %23 : vector<8x64xf32> to vector<8x64x1xf32>
    %25 = vector.broadcast %24 : vector<8x64x1xf32> to vector<8x64x64xf32>
    %26 = arith.subf %22, %25 : vector<8x64x64xf32>
    %27 = math.exp %26 : vector<8x64x64xf32>
    %cst_7 = arith.constant dense<0.000000e+00> : vector<8x64xf32>
    %28 = vector.multi_reduction <add>, %27, %cst_7 [2] : vector<8x64x64xf32> to vector<8x64xf32>
    %29 = vector.shape_cast %28 : vector<8x64xf32> to vector<8x64x1xf32>
    %30 = tpu.reciprocal %29 : vector<8x64x1xf32> -> vector<8x64x1xf32>
    %31 = vector.broadcast %30 : vector<8x64x1xf32> to vector<8x64x64xf32>
    %32 = arith.mulf %27, %31 : vector<8x64x64xf32>
    %cst_8 = arith.constant dense<0.000000e+00> : vector<8x64x8xf32>
    %33 = tpu.matmul %32, %21, %cst_8 {dimension_numbers = #tpu.dot_dimension_numbers<[2], [1], [1], [2], [0, 0, 0, 1, 1, 2], [0], [0]>} : vector<8x64x64xf32>, vector<8x64x8xf32>, vector<8x64x8xf32> -> vector<8x64x8xf32>
    %34 = vector.shape_cast %33 : vector<8x64x8xf32> to vector<4x128x8xf32>
    %c0_9 = arith.constant 0 : index
    %c0_10 = arith.constant 0 : index
    %c0_11 = arith.constant 0 : index
    %35 = vector.load %arg4[%c0_9, %c0_10, %c0_11] : memref<4x8x32xf32, #tpu.memory_space<vmem>>, vector<4x8x32xf32>
    %cst_12 = arith.constant dense<0.000000e+00> : vector<4x128x32xf32>
    %36 = tpu.matmul %34, %35, %cst_12 {dimension_numbers = #tpu.dot_dimension_numbers<[2], [1], [1], [2], [0, 0, 0, 1, 1, 2], [0], [0]>} : vector<4x128x8xf32>, vector<4x8x32xf32>, vector<4x128x32xf32> -> vector<4x128x32xf32>
    %cst_13 = arith.constant dense<0.000000e+00> : vector<128x32xf32>
    %37 = vector.multi_reduction <add>, %36, %cst_13 [0] : vector<4x128x32xf32> to vector<128x32xf32>
    %c0_14 = arith.constant 0 : index
    %c0_15 = arith.constant 0 : index
    %38 = vector.load %arg5[%c0_14, %c0_15] : memref<1x32xf32, #tpu.memory_space<vmem>>, vector<1x32xf32>
    %39 = vector.broadcast %38 : vector<1x32xf32> to vector<128x32xf32>
    %40 = arith.addf %37, %39 : vector<128x32xf32>
    %41 = arith.addf %0, %40 : vector<128x32xf32>
    %cst_16 = arith.constant dense<0.000000e+00> : vector<128xf32>
    %42 = vector.multi_reduction <add>, %41, %cst_16 [1] : vector<128x32xf32> to vector<128xf32>
    %43 = vector.shape_cast %42 : vector<128xf32> to vector<128x1xf32>
    %cst_17 = arith.constant 3.200000e+01 : f32
    %44 = vector.broadcast %cst_17 : f32 to vector<128x1xf32>
    %45 = arith.divf %43, %44 : vector<128x1xf32>
    %46 = vector.broadcast %45 : vector<128x1xf32> to vector<128x32xf32>
    %47 = arith.subf %41, %46 : vector<128x32xf32>
    %48 = vector.broadcast %45 : vector<128x1xf32> to vector<128x32xf32>
    %49 = arith.subf %41, %48 : vector<128x32xf32>
    %50 = arith.mulf %47, %49 : vector<128x32xf32>
    %cst_18 = arith.constant dense<0.000000e+00> : vector<128xf32>
    %51 = vector.multi_reduction <add>, %50, %cst_18 [1] : vector<128x32xf32> to vector<128xf32>
    %52 = vector.shape_cast %51 : vector<128xf32> to vector<128x1xf32>
    %cst_19 = arith.constant 3.200000e+01 : f32
    %53 = vector.broadcast %cst_19 : f32 to vector<128x1xf32>
    %54 = arith.divf %52, %53 : vector<128x1xf32>
    %55 = vector.broadcast %45 : vector<128x1xf32> to vector<128x32xf32>
    %56 = arith.subf %41, %55 : vector<128x32xf32>
    %cst_20 = arith.constant 9.99999974E-6 : f32
    %57 = vector.broadcast %cst_20 : f32 to vector<128x1xf32>
    %58 = arith.addf %54, %57 : vector<128x1xf32>
    %59 = math.rsqrt %58 : vector<128x1xf32>
    %60 = vector.broadcast %59 : vector<128x1xf32> to vector<128x32xf32>
    %61 = arith.mulf %56, %60 : vector<128x32xf32>
    %c0_21 = arith.constant 0 : index
    %c0_22 = arith.constant 0 : index
    %62 = vector.load %arg6[%c0_21, %c0_22] : memref<1x32xf32, #tpu.memory_space<vmem>>, vector<1x32xf32>
    %63 = vector.broadcast %62 : vector<1x32xf32> to vector<128x32xf32>
    %64 = arith.mulf %61, %63 : vector<128x32xf32>
    %c0_23 = arith.constant 0 : index
    %c0_24 = arith.constant 0 : index
    %65 = vector.load %arg7[%c0_23, %c0_24] : memref<1x32xf32, #tpu.memory_space<vmem>>, vector<1x32xf32>
    %66 = vector.broadcast %65 : vector<1x32xf32> to vector<128x32xf32>
    %67 = arith.addf %64, %66 : vector<128x32xf32>
    %c0_25 = arith.constant 0 : index
    %c0_26 = arith.constant 0 : index
    %68 = vector.load %arg8[%c0_25, %c0_26] : memref<32x128xf32, #tpu.memory_space<vmem>>, vector<32x128xf32>
    %cst_27 = arith.constant dense<0.000000e+00> : vector<128x128xf32>
    %69 = tpu.matmul %67, %68, %cst_27 {dimension_numbers = #tpu.dot_dimension_numbers<[1], [0], [0], [1], [0, 0, 1, 1], [], []>} : vector<128x32xf32>, vector<32x128xf32>, vector<128x128xf32> -> vector<128x128xf32>
    %c0_28 = arith.constant 0 : index
    %c0_29 = arith.constant 0 : index
    %70 = vector.load %arg9[%c0_28, %c0_29] : memref<1x128xf32, #tpu.memory_space<vmem>>, vector<1x128xf32>
    %71 = vector.broadcast %70 : vector<1x128xf32> to vector<128x128xf32>
    %72 = arith.addf %69, %71 : vector<128x128xf32>
    %cst_30 = arith.constant 0.000000e+00 : f32
    %73 = vector.broadcast %cst_30 : f32 to vector<128x128xf32>
    %74 = arith.maximumf %72, %73 : vector<128x128xf32>
    %c0_31 = arith.constant 0 : index
    %c0_32 = arith.constant 0 : index
    %75 = vector.load %arg10[%c0_31, %c0_32] : memref<128x32xf32, #tpu.memory_space<vmem>>, vector<128x32xf32>
    %cst_33 = arith.constant dense<0.000000e+00> : vector<128x32xf32>
    %76 = tpu.matmul %74, %75, %cst_33 {dimension_numbers = #tpu.dot_dimension_numbers<[1], [0], [0], [1], [0, 0, 1, 1], [], []>} : vector<128x128xf32>, vector<128x32xf32>, vector<128x32xf32> -> vector<128x32xf32>
    %c0_34 = arith.constant 0 : index
    %c0_35 = arith.constant 0 : index
    %77 = vector.load %arg11[%c0_34, %c0_35] : memref<1x32xf32, #tpu.memory_space<vmem>>, vector<1x32xf32>
    %78 = vector.broadcast %77 : vector<1x32xf32> to vector<128x32xf32>
    %79 = arith.addf %76, %78 : vector<128x32xf32>
    %80 = arith.addf %67, %79 : vector<128x32xf32>
    %cst_36 = arith.constant dense<0.000000e+00> : vector<128xf32>
    %81 = vector.multi_reduction <add>, %80, %cst_36 [1] : vector<128x32xf32> to vector<128xf32>
    %82 = vector.shape_cast %81 : vector<128xf32> to vector<128x1xf32>
    %cst_37 = arith.constant 3.200000e+01 : f32
    %83 = vector.broadcast %cst_37 : f32 to vector<128x1xf32>
    %84 = arith.divf %82, %83 : vector<128x1xf32>
    %85 = vector.broadcast %84 : vector<128x1xf32> to vector<128x32xf32>
    %86 = arith.subf %80, %85 : vector<128x32xf32>
    %87 = vector.broadcast %84 : vector<128x1xf32> to vector<128x32xf32>
    %88 = arith.subf %80, %87 : vector<128x32xf32>
    %89 = arith.mulf %86, %88 : vector<128x32xf32>
    %cst_38 = arith.constant dense<0.000000e+00> : vector<128xf32>
    %90 = vector.multi_reduction <add>, %89, %cst_38 [1] : vector<128x32xf32> to vector<128xf32>
    %91 = vector.shape_cast %90 : vector<128xf32> to vector<128x1xf32>
    %cst_39 = arith.constant 3.200000e+01 : f32
    %92 = vector.broadcast %cst_39 : f32 to vector<128x1xf32>
    %93 = arith.divf %91, %92 : vector<128x1xf32>
    %94 = vector.broadcast %84 : vector<128x1xf32> to vector<128x32xf32>
    %95 = arith.subf %80, %94 : vector<128x32xf32>
    %cst_40 = arith.constant 9.99999974E-6 : f32
    %96 = vector.broadcast %cst_40 : f32 to vector<128x1xf32>
    %97 = arith.addf %93, %96 : vector<128x1xf32>
    %98 = math.rsqrt %97 : vector<128x1xf32>
    %99 = vector.broadcast %98 : vector<128x1xf32> to vector<128x32xf32>
    %100 = arith.mulf %95, %99 : vector<128x32xf32>
    %c0_41 = arith.constant 0 : index
    %c0_42 = arith.constant 0 : index
    %101 = vector.load %arg12[%c0_41, %c0_42] : memref<1x32xf32, #tpu.memory_space<vmem>>, vector<1x32xf32>
    %102 = vector.broadcast %101 : vector<1x32xf32> to vector<128x32xf32>
    %103 = arith.mulf %100, %102 : vector<128x32xf32>
    %c0_43 = arith.constant 0 : index
    %c0_44 = arith.constant 0 : index
    %104 = vector.load %arg13[%c0_43, %c0_44] : memref<1x32xf32, #tpu.memory_space<vmem>>, vector<1x32xf32>
    %105 = vector.broadcast %104 : vector<1x32xf32> to vector<128x32xf32>
    %106 = arith.addf %103, %105 : vector<128x32xf32>
    %c0_45 = arith.constant 0 : index
    %c0_46 = arith.constant 0 : index
    %107 = vector.load %arg14[%c0_45, %c0_46] : memref<128x32xf32, #tpu.memory_space<vmem>>, vector<128x32xf32>
    tpu.vector_store %arg14[%c0_45, %c0_46], %106 {strides = array<i32>} : memref<128x32xf32, #tpu.memory_space<vmem>>, vector<128x32xf32>,
    return
  }
  func.func @transform_0(%arg0: i32) -> (i32, i32) {
    %c0_i32 = arith.constant 0 : i32
    %c0_i32_0 = arith.constant 0 : i32
    return %arg0, %c0_i32 : i32, i32
  }
  func.func @transform_1(%arg0: i32) -> (i32, i32) {
    %c0_i32 = arith.constant 0 : i32
    %c0_i32_0 = arith.constant 0 : i32
    %c0_i32_1 = arith.constant 0 : i32
    return %c0_i32, %c0_i32_0 : i32, i32
  }
  func.func @transform_2(%arg0: i32) -> (i32, i32) {
    %c0_i32 = arith.constant 0 : i32
    %c0_i32_0 = arith.constant 0 : i32
    %c0_i32_1 = arith.constant 0 : i32
    return %c0_i32, %c0_i32_0 : i32, i32
  }
  func.func @transform_3(%arg0: i32) -> (i32, i32, i32) {
    %c0_i32 = arith.constant 0 : i32
    %c0_i32_0 = arith.constant 0 : i32
    %c0_i32_1 = arith.constant 0 : i32
    %c0_i32_2 = arith.constant 0 : i32
    return %c0_i32, %c0_i32_0, %c0_i32_1 : i32, i32, i32
  }
  func.func @transform_4(%arg0: i32) -> (i32, i32) {
    %c0_i32 = arith.constant 0 : i32
    %c0_i32_0 = arith.constant 0 : i32
    %c0_i32_1 = arith.constant 0 : i32
    return %c0_i32, %c0_i32_0 : i32, i32
  }
  func.func @transform_5(%arg0: i32) -> (i32, i32) {
    %c0_i32 = arith.constant 0 : i32
    %c0_i32_0 = arith.constant 0 : i32
    %c0_i32_1 = arith.constant 0 : i32
    return %c0_i32, %c0_i32_0 : i32, i32
  }
  func.func @transform_6(%arg0: i32) -> (i32, i32) {
    %c0_i32 = arith.constant 0 : i32
    %c0_i32_0 = arith.constant 0 : i32
    %c0_i32_1 = arith.constant 0 : i32
    return %c0_i32, %c0_i32_0 : i32, i32
  }
  func.func @transform_7(%arg0: i32) -> (i32, i32) {
    %c0_i32 = arith.constant 0 : i32
    %c0_i32_0 = arith.constant 0 : i32
    %c0_i32_1 = arith.constant 0 : i32
    return %c0_i32, %c0_i32_0 : i32, i32
  }
  func.func @transform_8(%arg0: i32) -> (i32, i32) {
    %c0_i32 = arith.constant 0 : i32
    %c0_i32_0 = arith.constant 0 : i32
    %c0_i32_1 = arith.constant 0 : i32
    return %c0_i32, %c0_i32_0 : i32, i32
  }
  func.func @transform_9(%arg0: i32) -> (i32, i32) {
    %c0_i32 = arith.constant 0 : i32
    %c0_i32_0 = arith.constant 0 : i32
    %c0_i32_1 = arith.constant 0 : i32
    return %c0_i32, %c0_i32_0 : i32, i32
  }
  func.func @transform_10(%arg0: i32) -> (i32, i32) {
    %c0_i32 = arith.constant 0 : i32
    %c0_i32_0 = arith.constant 0 : i32
    %c0_i32_1 = arith.constant 0 : i32
    return %c0_i32, %c0_i32_0 : i32, i32
  }
  func.func @transform_11(%arg0: i32) -> (i32, i32) {
    %c0_i32 = arith.constant 0 : i32
    %c0_i32_0 = arith.constant 0 : i32
    %c0_i32_1 = arith.constant 0 : i32
    return %c0_i32, %c0_i32_0 : i32, i32
  }
  func.func @transform_12(%arg0: i32) -> (i32, i32) {
    %c0_i32 = arith.constant 0 : i32
    %c0_i32_0 = arith.constant 0 : i32
    %c0_i32_1 = arith.constant 0 : i32
    return %c0_i32, %c0_i32_0 : i32, i32
  }
  func.func @transform_13(%arg0: i32) -> (i32, i32) {
    %c0_i32 = arith.constant 0 : i32
    %c0_i32_0 = arith.constant 0 : i32
    return %arg0, %c0_i32 : i32, i32
  }
}

</mosaic_0001>

<bundles_post_ra>
// kernel: tpu_custom_call.1
= control target key start
LH: loop header
LB: loop body
LE: loop exit
PB: predicated region body
PF: predicated region fallthrough
CT: control target
= control target key end

     0   :  { %s6280_s25 = smov 0   ;;  %s9746_s0 = inlined_call_operand.vmem [shape: f32[512,32], index: 0, kind: input, shape index: {}]   ;;  %s9747_s1 = inlined_call_operand.vmem [shape: f32[32,96], index: 1, kind: input, shape index: {}]   ;;  %s9748_s2 = inlined_call_operand.vmem [shape: f32[1,96], index: 2, kind: input, shape index: {}]   ;;  %s9749_s3 = inlined_call_operand.vmem [shape: f32[4,8,32], index: 3, kind: input, shape index: {}]   ;;  %s9750_s4 = inlined_call_operand.vmem [shape: f32[1,32], index: 4, kind: input, shape index: {}]   ;;  %s9751_s5 = inlined_call_operand.vmem [shape: f32[1,32], index: 5, kind: input, shape index: {}]   ;;  %s9752_s6 = inlined_call_operand.vmem [shape: f32[1,32], index: 6, kind: input, shape index: {}]   ;;  %s9753_s7 = inlined_call_operand.vmem [shape: f32[32,128], index: 7, kind: input, shape index: {}]   ;;  %s9754_s8 = inlined_call_operand.vmem [shape: f32[1,128], index: 8, kind: input, shape index: {}]   ;;  %s9755_s9 = inlined_call_operand.vmem [shape: f32[128,32], index: 9, kind: input, shape index: {}]   ;;  %s9756_s10 = inlined_call_operand.vmem [shape: f32[1,32], index: 10, kind: input, shape index: {}]   ;;  %s9757_s11 = inlined_call_operand.vmem [shape: f32[1,32], index: 11, kind: input, shape index: {}]   ;;  %s9758_s12 = inlined_call_operand.vmem [shape: f32[1,32], index: 12, kind: input, shape index: {}]   ;;  %s9759_s13 = inlined_call_operand.vmem [shape: f32[512,32], index: 13, kind: output, shape index: {}]  }
   0x1 LB: > { %s5361_s26 = sadd.s32 4294967295, %s6202_s25   ;;  %p5365_p0 = scmp.ge.s32.totalorder %s6202_s25, 1  ;;  %s6202_s25 = sphi %s6280_s25, %s23_s25  }
   0x2   : > { %p388_p1 = scmp.lt.s32.totalorder %s6202_s25, 5 }
   0x4   : > { %p389_p2 = pnand %p5365_p0, %p388_p1 }
   0x6   : > { %392 = sbr.rel (%p389_p2) target bundleno = 2663 (0xa67), region = 72 }
   0xb   : > { %v463_v0 = vld [vmem:[%s9747_s1 + $0x18] sm:$0xff]  ;;  %v462_v1 = vld [vmem:[%s9747_s1 + $0x10] sm:$0xff]  ;;  %s5366_s14 = sshll.u32 %s5361_s26, 4  ;;  %v461_v2 = vld [vmem:[%s9747_s1 + $0x8] sm:$0xff]  ;;  %vm468_vm0 = vcmask 261120   ;;  %s6204_s26 = smov 112  }
   0xc   : > { %529 = vmatpush.msra.mxu0 %v463_v0  ;;  %p433_p3 = scmp.lt.s32.totalorder %s5366_s14, 63  ;;  %v460_v3 = vld [vmem:[%s9747_s1] sm:$0xff]  ;;  %s6205_s27 = smov 120   ;;  %vm710_vm1 = vcmask 64512   ;;  %vm1407_vm2 = vcmask 523264  }
   0xd   : > { %v6343_v19 = vld [vmem:[%s9748_s2] ss:$0 sm:$0xff]  ;;  %s6206_s28 = smov 96   ;;  %s6207_s29 = smov 104  }
   0xe   : > { %530 = vmatpush.msra.mxu0 %v462_v1  ;;  %s10055_s14 = smov (!%p433_p3, %s5366_s14), 63  ;;  %s6208_s30 = smov 64  }
   0xf   : > { %s5367_s19 = sshll.u32 %s10055_s14, 3 }
  0x10   : > { %531 = vmatpush.msra.mxu0 %v461_v2  ;;  %s6308_s22 = scalar_lea.vmem %s9746_s0, %s5367_s19 }
  0x11   : > { %v444_v4 = vld [vmem:[%s6308_s22] sm:$0xff]  ;;  %v445_v5 = vld [vmem:[%s6308_s22 + $0x8] sm:$0xff]  ;;  %v446_v6 = vld [vmem:[%s6308_s22 + $0x10] sm:$0xff] }
  0x12   : > { %532 = vmatpush.msra.mxu0 %v460_v3  ;;  %v447_v7 = vld [vmem:[%s6308_s22 + $0x18] sm:$0xff]  ;;  %v448_v8 = vld [vmem:[%s6308_s22 + $0x20] sm:$0xff]  ;;  %v449_v9 = vld [vmem:[%s6308_s22 + $0x28] sm:$0xff] }
  0x13   : > { %5370 = vmatmul.msk.f32.vlgmr.msra.gmra.mxu0 %vm468_vm0, %v444_v4  ;;  %v450_v10 = vld [vmem:[%s6308_s22 + $0x30] sm:$0xff]  ;;  %v451_v11 = vld [vmem:[%s6308_s22 + $0x38] sm:$0xff]  ;;  %v452_v12 = vld [vmem:[%s6308_s22 + $0x40] sm:$0xff] }
  0x14   : > { %v453_v13 = vld [vmem:[%s6308_s22 + $0x48] sm:$0xff]  ;;  %v454_v14 = vld [vmem:[%s6308_s22 + $0x50] sm:$0xff]  ;;  %v455_v15 = vld [vmem:[%s6308_s22 + $0x58] sm:$0xff] }
  0x15   : > { %v456_v16 = vld [vmem:[%s6308_s22 + $0x60] sm:$0xff]  ;;  %v457_v17 = vld [vmem:[%s6308_s22 + $0x68] sm:$0xff]  ;;  %v458_v18 = vld [vmem:[%s6308_s22 + $0x70] sm:$0xff] }
  0x16   : > { %v459_v22 = vld [vmem:[%s6308_s22 + $0x78] sm:$0xff] }
  0x1b   : > { %5371 = vmatmul.msk.f32.gmra.mxu0 %vm468_vm0, %v445_v5 }
  0x23   : > { %5372 = vmatmul.msk.f32.gmra.mxu0 %vm468_vm0, %v446_v6 }
  0x2b   : > { %5373 = vmatmul.msk.f32.gmra.mxu0 %vm468_vm0, %v447_v7 }
  0x33   : > { %5374 = vmatmul.msk.f32.gmra.mxu0 %vm468_vm0, %v448_v8 }
  0x3b   : > { %5375 = vmatmul.msk.f32.gmra.mxu0 %vm468_vm0, %v449_v9 }
  0x43   : > { %5376 = vmatmul.msk.f32.gmra.mxu0 %vm468_vm0, %v450_v10 }
  0x4b   : > { %5377 = vmatmul.msk.f32.gmra.mxu0 %vm468_vm0, %v451_v11 }
  0x53   : > { %5378 = vmatmul.msk.f32.gmra.mxu0 %vm468_vm0, %v452_v12 }
  0x5b   : > { %5379 = vmatmul.msk.f32.gmra.mxu0 %vm468_vm0, %v453_v13 }
  0x63   : > { %5380 = vmatmul.msk.f32.gmra.mxu0 %vm468_vm0, %v454_v14 }
  0x6b   : > { %5381 = vmatmul.msk.f32.gmra.mxu0 %vm468_vm0, %v455_v15 }
  0x73   : > { %5382 = vmatmul.msk.f32.gmra.mxu0 %vm468_vm0, %v456_v16 }
  0x7b   : > { %5383 = vmatmul.msk.f32.gmra.mxu0 %vm468_vm0, %v457_v17 }
  0x83   : > { %5384 = vmatmul.msk.f32.gmra.mxu0 %vm468_vm0, %v458_v18 }
  0x8b   : > { %5385 = vmatmul.msk.f32.gmra.mxu0 %vm468_vm0, %v459_v22 }
  0x90   : > { %v534_v20 = vpop.f32.mrf.mxu0 }
  0x91   : > { %v6346_v21 = vadd.f32 %v6343_v19, %v534_v20 }
  0x93   : > { %630 = vrot.lane.b32.xlu1 %v6346_v21, %s6204_s26  ;;  %598 = vrot.lane.b32.xlu0 %v6346_v21, %s6205_s27 }
  0x94   : > { %694 = vrot.lane.b32.xlu2 %v6346_v21, %s6206_s28 }
  0x98   : > { %v537_v23 = vpop.f32.mrf.mxu0 }
  0x99   : > { %v6357_v24 = vadd.f32 %v6343_v19, %v537_v23 }
  0x9b   : > { %600 = vrot.lane.b32.xlu1 %v6357_v24, %s6205_s27  ;;  %662 = vrot.lane.b32.xlu0 %v6346_v21, %s6207_s29 }
  0x9c   : > { %632 = vrot.lane.b32.xlu2 %v6357_v24, %s6204_s26 }
  0xa0   : > { %v540_v25 = vpop.f32.mrf.mxu0 }
  0xa1   : > { %v6366_v26 = vadd.f32 %v6343_v19, %v540_v25 }
  0xa3   : > { %696 = vrot.lane.b32.xlu0 %v6357_v24, %s6206_s28 }
  0xa4   : > { %698 = vrot.lane.b32.xlu2 %v6366_v26, %s6206_s28 }
  0xa8   : > { %v543_v27 = vpop.f32.mrf.mxu0 }
  0xa9   : > { %v6380_v30 = vadd.f32 %v6343_v19, %v543_v27 }
  0xab   : > { %664 = vrot.lane.b32.xlu0 %v6357_v24, %s6207_s29 }
  0xac   : > { %602 = vrot.lane.b32.xlu2 %v6366_v26, %s6205_s27 }
  0xb0   : > { %v546_v28 = vpop.f32.mrf.mxu0 }
  0xb1   : > { %v6377_v29 = vadd.f32 %v6343_v19, %v546_v28 }
  0xb3   : > { %702 = vrot.lane.b32.xlu1 %v6377_v29, %s6206_s28  ;;  %634 = vrot.lane.b32.xlu0 %v6366_v26, %s6204_s26 }
  0xb4   : > { %700 = vrot.lane.b32.xlu2 %v6380_v30, %s6206_s28 }
  0xb8   : > { %v549_v31 = vpop.f32.mrf.mxu0 }
  0xb9   : > { %v6401_v32 = vadd.f32 %v6343_v19, %v549_v31 }
  0xbb   : > { %638 = vrot.lane.b32.xlu1 %v6377_v29, %s6204_s26  ;;  %666 = vrot.lane.b32.xlu0 %v6366_v26, %s6207_s29  ;;  %v5690_v34 = vpack.i.bf16 %v6377_v29, %v6401_v32 }
  0xbc   : > { %636 = vrot.lane.b32.xlu2 %v6380_v30, %s6204_s26 }
  0xc0   : > { %v552_v33 = vpop.f32.mrf.mxu0 }
  0xc1   : > { %v6417_v36 = vadd.f32 %v6343_v19, %v552_v33 }
  0xc3   : > { %670 = vrot.lane.b32.xlu1 %v6377_v29, %s6207_s29  ;;  %604 = vrot.lane.b32.xlu0 %v6380_v30, %s6205_s27 }
  0xc4   : > { %668 = vrot.lane.b32.xlu2 %v6380_v30, %s6207_s29 }
  0xc8   : > { %v555_v35 = vpop.f32.mrf.mxu0 }
  0xc9   : > { %v6420_v37 = vadd.f32 %v6343_v19, %v555_v35 }
  0xcb   : > { %704 = vrot.lane.b32.xlu1 %v6401_v32, %s6206_s28  ;;  %672 = vrot.lane.b32.xlu0 %v6401_v32, %s6207_s29  ;;  %v5695_v42 = vpack.i.bf16 %v6417_v36, %v6420_v37 }
  0xcc   : > { %606 = vrot.lane.b32.xlu2 %v6377_v29, %s6205_s27 }
  0xd0   : > { %v558_v38 = vpop.f32.mrf.mxu0 }
  0xd1   : > { %v6429_v39 = vadd.f32 %v6343_v19, %v558_v38 }
  0xd3   : > { %608 = vrot.lane.b32.xlu1 %v6401_v32, %s6205_s27  ;;  %5691 = vrot.lane.b32.xlu0 %v5690_v34, %s6208_s30  ;;  %9849 = vst [vmem:[#allocation2_spill] sm:$0xff] %v6429_v39 }
  0xd4   : > { %640 = vrot.lane.b32.xlu2 %v6401_v32, %s6204_s26 }
  0xd8   : > { %v561_v40 = vpop.f32.mrf.mxu0 }
  0xd9   : > { %v6438_v41 = vadd.f32 %v6343_v19, %v561_v40 }
  0xdb   : > { %612 = vrot.lane.b32.xlu1 %v6420_v37, %s6205_s27  ;;  %706 = vrot.lane.b32.xlu0 %v6417_v36, %s6206_s28  ;;  %9850 = vst [vmem:[#allocation3_spill] sm:$0xff] %v6438_v41 }
  0xdc   : > { %676 = vrot.lane.b32.xlu2 %v6420_v37, %s6207_s29 }
  0xe0   : > { %v564_v43 = vpop.f32.mrf.mxu0 }
  0xe1   : > { %v6466_v48 = vadd.f32 %v6343_v19, %v564_v43 }
  0xe3   : > { %644 = vrot.lane.b32.xlu1 %v6420_v37, %s6204_s26  ;;  %610 = vrot.lane.b32.xlu0 %v6417_v36, %s6205_s27  ;;  %9851 = vst [vmem:[#allocation4_spill] sm:$0xff] %v6466_v48 }
  0xe4   : > { %614 = vrot.lane.b32.xlu2 %v6429_v39, %s6205_s27 }
  0xe8   : > { %v567_v46 = vpop.f32.mrf.mxu0 }
  0xe9   : > { %v6469_v49 = vadd.f32 %v6343_v19, %v567_v46 }
  0xeb   : > { %5696 = vrot.lane.b32.xlu1 %v5695_v42, %s6208_s30  ;;  %642 = vrot.lane.b32.xlu0 %v6417_v36, %s6204_s26 }
  0xec   : > { %616 = vrot.lane.b32.xlu2 %v6438_v41, %s6205_s27 }
  0xee   : > { %v6447_v44 = vpop.permute.xlu2 %694 }
  0xf0   : > { %v570_v50 = vpop.f32.mrf.mxu0 }
  0xf1   : > { %v6482_v53 = vadd.f32 %v6343_v19, %v570_v50 }
  0xf3   : > { %678 = vrot.lane.b32.xlu1 %v6429_v39, %s6207_s29  ;;  %674 = vrot.lane.b32.xlu0 %v6417_v36, %s6207_s29 }
  0xf4   : > { %786 = vrot.lane.b32.xlu2 %v6438_v41, %s6206_s28 }
  0xf6   : > { %v6455_v45 = vpop.permute.xlu2 %632 }
  0xf8   : > { %v573_v54 = vpop.f32.mrf.mxu0 }
  0xf9   : > { %v6495_v57 = vadd.f32 %v6343_v19, %v573_v54 }
  0xfb   : > { %648 = vrot.lane.b32.xlu1 %v6438_v41, %s6204_s26  ;;  %708 = vrot.lane.b32.xlu0 %v6420_v37, %s6206_s28 }
  0xfc   : > { %680 = vrot.lane.b32.xlu2 %v6438_v41, %s6207_s29 }
  0xfe   : > { %v6463_v47 = vpop.permute.xlu2 %698 }
 0x100   : > { %v576_v60 = vpop.f32.mrf.mxu0 }
 0x101   : > { %v6510_v62 = vadd.f32 %v6343_v19, %v576_v60 }
 0x103   : > { %618 = vrot.lane.b32.xlu1 %v6466_v48, %s6205_s27  ;;  %784 = vrot.lane.b32.xlu0 %v6429_v39, %s6206_s28 }
 0x104   : > { %684 = vrot.lane.b32.xlu2 %v6469_v49, %s6207_s29 }
 0x105   : > { %v6477_v51 = vpop.permute.xlu0 %598  ;;  %v6497_v58 = vpop.permute.xlu1 %630 }
 0x106   : > { %v6479_v52 = vpop.permute.xlu2 %602 }
 0x108   : > { %v579_v5 = vpop.f32.mrf.mxu0 }
 0x109   : > { %v6549_v9 = vadd.f32 %v6343_v19, %v579_v5 }
 0x10b   : > { %788 = vrot.lane.b32.xlu1 %v6466_v48, %s6206_s28  ;;  %646 = vrot.lane.b32.xlu0 %v6429_v39, %s6204_s26 }
 0x10c   : > { %622 = vrot.lane.b32.xlu2 %v6482_v53, %s6205_s27 }
 0x10d   : > { %v6490_v55 = vpop.permute.xlu0 %662  ;;  %v6518_v63 = vpop.permute.xlu1 %600 }
 0x10e   : > { %9852 = vst [vmem:[#allocation5_spill] sm:$0xff] %v6490_v55  ;;  %v6492_v56 = vpop.permute.xlu2 %700 }
 0x113   : > { %650 = vrot.lane.b32.xlu1 %v6466_v48, %s6204_s26  ;;  %682 = vrot.lane.b32.xlu0 %v6466_v48, %s6207_s29 }
 0x114   : > { %688 = vrot.lane.b32.xlu2 %v6495_v57, %s6207_s29 }
 0x115   : > { %v6505_v59 = vpop.permute.xlu0 %696 }
 0x116   : > { %v6507_v61 = vpop.permute.xlu2 %636 }
 0x11b   : > { %790 = vrot.lane.b32.xlu1 %v6469_v49, %s6206_s28  ;;  %620 = vrot.lane.b32.xlu0 %v6469_v49, %s6205_s27 }
 0x11c   : > { %796 = vrot.lane.b32.xlu2 %v6510_v62, %s6206_s28 }
 0x11d   : > { %v6520_v0 = vpop.permute.xlu0 %664 }
 0x11e   : > { %9853 = vst [vmem:[#allocation6_spill] sm:$0xff] %v6520_v0  ;;  %v6522_v1 = vpop.permute.xlu2 %668 }
 0x11f   : > { %9854 = vst [vmem:[#allocation7_spill] sm:$0xff] %v6522_v1 }
 0x123   : > { %792 = vrot.lane.b32.xlu1 %v6482_v53, %s6206_s28  ;;  %652 = vrot.lane.b32.xlu0 %v6469_v49, %s6204_s26 }
 0x124   : > { %690 = vrot.lane.b32.xlu2 %v6510_v62, %s6207_s29 }
 0x125   : > { %v6530_v2 = vpop.permute.xlu1 %702  ;;  %v6532_v3 = vpop.permute.xlu0 %634 }
 0x126   : > { %v6534_v4 = vpop.permute.xlu2 %606 }
 0x12b   : > { %686 = vrot.lane.b32.xlu1 %v6482_v53, %s6207_s29  ;;  %654 = vrot.lane.b32.xlu0 %v6482_v53, %s6204_s26 }
 0x12c   : > { %1051 = vrot.lane.b32.xlu2 %v6497_v58, %s6206_s28 }
 0x12d   : > { %v6542_v6 = vpop.permute.xlu1 %638  ;;  %v6544_v7 = vpop.permute.xlu0 %666 }
 0x12e   : > { %9855 = vst [vmem:[#allocation8_spill] sm:$0xff] %v6544_v7  ;;  %v6546_v8 = vpop.permute.xlu2 %640 }
 0x133   : > { %624 = vrot.lane.b32.xlu1 %v6495_v57, %s6205_s27  ;;  %794 = vrot.lane.b32.xlu0 %v6495_v57, %s6206_s28 }
 0x134   : > { %628 = vrot.lane.b32.xlu2 %v6549_v9, %s6205_s27 }
 0x135   : > { %v6557_v10 = vpop.permute.xlu1 %670  ;;  %v6559_v11 = vpop.permute.xlu0 %604 }
 0x136   : > { %v6561_v12 = vpop.permute.xlu2 %676  ;;  %v5700_v19 = vpack.i.bf16 %v6479_v52, %v6559_v11 }
 0x137   : > { %9856 = vst [vmem:[#allocation9_spill] sm:$0xff] %v6561_v12 }
 0x13b   : > { %656 = vrot.lane.b32.xlu0 %v6495_v57, %s6204_s26  ;;  %873 = vrot.lane.b32.xlu1 %v6477_v51, %s6206_s28 }
 0x13c   : > { %1231 = vrot.lane.b32.xlu2 %v6520_v0, %s6206_s28 }
 0x13d   : > { %v705_v13 = vpop.permute.xlu1 %704  ;;  %v6569_v14 = vpop.permute.xlu0 %672 }
 0x13e   : > { %9857 = vst [vmem:[#allocation10_spill] sm:$0xff] %v6569_v14  ;;  %v6571_v15 = vpop.permute.xlu2 %614 }
 0x13f   : > { %9858 = vst [vmem:[#allocation11_spill] sm:$0xff] %v6571_v15 }
 0x143   : > { %626 = vrot.lane.b32.xlu0 %v6510_v62, %s6205_s27  ;;  %798 = vrot.lane.b32.xlu1 %v6549_v9, %s6206_s28 }
 0x144   : > { %1057 = vrot.lane.b32.xlu2 %v6507_v61, %s6206_s28 }
 0x145   : > { %v6579_v16 = vpop.permute.xlu1 %608  ;;  %v6581_v17 = vpop.permute.xlu0 %5691 }
 0x146   : > { %v6583_v18 = vpop.permute.xlu2 %616 }
 0x147   : > { %9859 = vst [vmem:[#allocation12_spill] sm:$0xff] %v6583_v18 }
 0x14b   : > { %658 = vrot.lane.b32.xlu0 %v6510_v62, %s6204_s26  ;;  %692 = vrot.lane.b32.xlu1 %v6549_v9, %s6207_s29 }
 0x14c   : > { %5701 = vrot.lane.b32.xlu2 %v5700_v19, %s6208_s30  ;;  %v5730_v19 = vpack.i.bf16 %v6510_v62, %v6549_v9 }
 0x14d   : > { %v6592_v20 = vpop.permute.xlu1 %612  ;;  %v707_v22 = vpop.permute.xlu0 %706 }
 0x14e   : > { %v6594_v23 = vpop.permute.xlu2 %786  ;;  %v5720_v50 = vpack.i.bf16 %v6592_v20, %v6380_v30 }
 0x153   : > { %1229 = vrot.lane.b32.xlu0 %v6490_v55, %s6206_s28  ;;  %1053 = vrot.lane.b32.xlu1 %v6455_v45, %s6206_s28 }
 0x154   : > { %1059 = vrot.lane.b32.xlu2 %v6542_v6, %s6206_s28 }
 0x155   : > { %v6602_v25 = vpop.permute.xlu1 %644  ;;  %v6604_v27 = vpop.permute.xlu0 %610 }
 0x156   : > { %v6606_v28 = vpop.permute.xlu2 %680 }
 0x157   : > { %9860 = vst [vmem:[#allocation13_spill] sm:$0xff] %v6606_v28 }
 0x15b   : > { %660 = vrot.lane.b32.xlu0 %v6549_v9, %s6204_s26  ;;  %1233 = vrot.lane.b32.xlu1 %v6544_v7, %s6206_s28 }
 0x15c   : > { %883 = vrot.lane.b32.xlu2 %v6579_v16, %s6206_s28 }
 0x15d   : > { %v6614_v31 = vpop.permute.xlu1 %5696  ;;  %v6616_v33 = vpop.permute.xlu0 %642 }
 0x15e   : > { %v6618_v34 = vpop.permute.xlu2 %684 }
 0x15f   : > { %9861 = vst [vmem:[#allocation14_spill] sm:$0xff] %v6618_v34 }
 0x163   : > { %875 = vrot.lane.b32.xlu0 %v6518_v63, %s6206_s28  ;;  %879 = vrot.lane.b32.xlu1 %v6559_v11, %s6206_s28 }
 0x164   : > { %1065 = vrot.lane.b32.xlu2 %v6602_v25, %s6206_s28 }
 0x165   : > { %v6626_v35 = vpop.permute.xlu1 %678  ;;  %v6628_v38 = vpop.permute.xlu0 %674 }
 0x166   : > { %9862 = vst [vmem:[#allocation15_spill] sm:$0xff] %v6626_v35  ;;  %v6630_v40 = vpop.permute.xlu2 %622 }
 0x167   : > { %9863 = vst [vmem:[#allocation16_spill] sm:$0xff] %v6628_v38 }
 0x168   : > { %9864 = vst [vmem:[#allocation17_spill] sm:$0xff] %v6630_v40 }
 0x16b   : > { %877 = vrot.lane.b32.xlu0 %v6479_v52, %s6206_s28  ;;  %1235 = vrot.lane.b32.xlu1 %v6522_v1, %s6206_s28 }
 0x16c   : > { %1243 = vrot.lane.b32.xlu2 %v6561_v12, %s6206_s28 }
 0x16d   : > { %v6638_v42 = vpop.permute.xlu1 %648  ;;  %v709_v43 = vpop.permute.xlu0 %708 }
 0x16e   : > { %9865 = vst [vmem:[#allocation18_spill] sm:$0xff] %v6638_v42  ;;  %v6640_v46 = vpop.permute.xlu2 %688  ;;  %5386 = vmatpush.xpose.msk.msra.mxu1 %vm710_vm1, %v709_v43 }
 0x16f   : > { %9866 = vst [vmem:[#allocation19_spill] sm:$0xff] %v6640_v46 }
 0x172   : > { %5387 = vmatpush.xpose.msk.msra.mxu1 %vm710_vm1, %v707_v22 }
 0x173   : > { %1055 = vrot.lane.b32.xlu0 %v6532_v3, %s6206_s28  ;;  %1237 = vrot.lane.b32.xlu1 %v6557_v10, %s6206_s28 }
 0x174   : > { %5721 = vrot.lane.b32.xlu2 %v5720_v50, %s6208_s30 }
 0x175   : > { %v6651_v54 = vpop.permute.xlu1 %618  ;;  %v6653_v60 = vpop.permute.xlu0 %784 }
 0x176   : > { %9867 = vst [vmem:[#allocation20_spill] sm:$0xff] %v6651_v54  ;;  %v6655_v5 = vpop.permute.xlu2 %796  ;;  %5388 = vmatpush.xpose.msk.msra.mxu1 %vm710_vm1, %v705_v13 }
 0x17a   : > { %5389 = vmatpush.xpose.msk.msra.mxu1 %vm710_vm1, %v6530_v2  ;;  %v5705_v2 = vpack.i.bf16 %v6534_v4, %v6346_v21 }
 0x17b   : > { %881 = vrot.lane.b32.xlu0 %v6534_v4, %s6206_s28  ;;  %1061 = vrot.lane.b32.xlu1 %v6546_v8, %s6206_s28 }
 0x17c   : > { %5731 = vrot.lane.b32.xlu2 %v5730_v19, %s6208_s30 }
 0x17d   : > { %v6667_v22 = vpop.permute.xlu1 %788  ;;  %v6669_v43 = vpop.permute.xlu0 %646 }
 0x17e   : > { %9868 = vst [vmem:[#allocation21_spill] sm:$0xff] %v6669_v43  ;;  %v6671_v50 = vpop.permute.xlu2 %690  ;;  %5390 = vmatpush.xpose.msk.msra.mxu1 %vm710_vm1, %v6492_v56 }
 0x17f   : > { %9869 = vst [vmem:[#allocation22_spill] sm:$0xff] %v6671_v50 }
 0x182   : > { %5391 = vmatpush.xpose.msk.msra.mxu1 %vm710_vm1, %v6463_v47  ;;  %v5710_v47 = vpack.i.bf16 %v6579_v16, %v6357_v24 }
 0x183   : > { %5706 = vrot.lane.b32.xlu0 %v5705_v2, %s6208_s30  ;;  %1239 = vrot.lane.b32.xlu1 %v6569_v14, %s6206_s28  ;;  %v5715_v14 = vpack.i.bf16 %v6604_v27, %v6366_v26 }
 0x184   : > { %964 = vrot.lane.b32.xlu2 %v6583_v18, %s6206_s28 }
 0x185   : > { %v6684_v13 = vpop.permute.xlu1 %650  ;;  %v6686_v19 = vpop.permute.xlu0 %682 }
 0x186   : > { %9870 = vst [vmem:[#allocation23_spill] sm:$0xff] %v6684_v13  ;;  %v6688_v12 = vpop.permute.xlu2 %1051  ;;  %5392 = vmatpush.xpose.msk.msra.mxu1 %vm710_vm1, %v6505_v59 }
 0x187   : > { %9871 = vst [vmem:[#allocation24_spill] sm:$0xff] %v6686_v19 }
 0x18a   : > { %5393 = vmatpush.xpose.msk.msra.mxu1 %vm710_vm1, %v6447_v44 }
 0x18b   : > { %885 = vrot.lane.b32.xlu0 %v6604_v27, %s6206_s28  ;;  %5711 = vrot.lane.b32.xlu1 %v5710_v47, %s6208_s30 }
 0x18c   : > { %1142 = vrot.lane.b32.xlu2 %v6638_v42, %s6206_s28 }
 0x18d   : > { %v791_v56 = vpop.permute.xlu1 %790  ;;  %v6701_v2 = vpop.permute.xlu0 %620  ;;  %5394 = vmatmul.msk.f32.vlgmr.msra.gmra.mxu1 %vm710_vm1, %v6346_v21 }
 0x18e   : > { %9872 = vst [vmem:[#allocation25_spill] sm:$0xff] %v6701_v2  ;;  %v6705_v59 = vpop.permute.xlu2 %628 }
 0x18f   : > { %9873 = vst [vmem:[#allocation26_spill] sm:$0xff] %v6705_v59 }
 0x193   : > { %5716 = vrot.lane.b32.xlu0 %v5715_v14, %s6208_s30  ;;  %1063 = vrot.lane.b32.xlu1 %v6616_v33, %s6206_s28 }
 0x194   : > { %1320 = vrot.lane.b32.xlu2 %v6606_v28, %s6206_s28 }
 0x195   : > { %v793_v44 = vpop.permute.xlu1 %792  ;;  %v6714_v47 = vpop.permute.xlu0 %652  ;;  %5395 = vmatmul.msk.f32.gmra.mxu1 %vm710_vm1, %v6357_v24 }
 0x196   : > { %9874 = vst [vmem:[#allocation27_spill] sm:$0xff] %v6714_v47  ;;  %v6718_v21 = vpop.permute.xlu2 %1231 }
 0x19b   : > { %1241 = vrot.lane.b32.xlu1 %v6628_v38, %s6206_s28  ;;  %962 = vrot.lane.b32.xlu0 %v6571_v15, %s6206_s28 }
 0x19c   : > { %966 = vrot.lane.b32.xlu2 %v6651_v54, %s6206_s28 }
 0x19d   : > { %v6726_v14 = vpop.permute.xlu1 %686  ;;  %v6728_v28 = vpop.permute.xlu0 %654  ;;  %5396 = vmatmul.msk.f32.gmra.mxu1 %vm710_vm1, %v6366_v26 }
 0x19e   : > { %9875 = vst [vmem:[#allocation28_spill] sm:$0xff] %v6726_v14  ;;  %v6732_v42 = vpop.permute.xlu2 %1057 }
 0x19f   : > { %9876 = vst [vmem:[#allocation29_spill] sm:$0xff] %v6728_v28 }
 0x1a3   : > { %887 = vrot.lane.b32.xlu1 %v6592_v20, %s6206_s28  ;;  %1318 = vrot.lane.b32.xlu0 %v6626_v35, %s6206_s28 }
 0x1a4   : > { %968 = vrot.lane.b32.xlu2 %v6701_v2, %s6206_s28 }
 0x1a5   : > { %v6740_v24 = vpop.permute.xlu1 %624  ;;  %v795_v38 = vpop.permute.xlu0 %794  ;;  %5397 = vmatmul.msk.f32.gmra.mxu1 %vm710_vm1, %v6380_v30  ;;  %v5725_v30 = vpack.i.bf16 %v6477_v51, %v6518_v63 }
 0x1a6   : > { %9877 = vst [vmem:[#allocation30_spill] sm:$0xff] %v6740_v24  ;;  %v6744_v54 = vpop.permute.xlu2 %5701 }
 0x1ab   : > { %1140 = vrot.lane.b32.xlu1 %v6669_v43, %s6206_s28  ;;  %1144 = vrot.lane.b32.xlu0 %v6684_v13, %s6206_s28 }
 0x1ac   : > { %970 = vrot.lane.b32.xlu2 %v6630_v40, %s6206_s28 }
 0x1ad   : > { %v6752_v26 = vpop.permute.xlu1 %873  ;;  %v6754_v35 = vpop.permute.xlu0 %656  ;;  %5398 = vmatmul.msk.f32.gmra.mxu1 %vm710_vm1, %v6377_v29 }
 0x1ae   : > { %9878 = vst [vmem:[#allocation31_spill] sm:$0xff] %v6754_v35  ;;  %v6758_v2 = vpop.permute.xlu2 %1059 }
 0x1b3   : > { %5726 = vrot.lane.b32.xlu1 %v5725_v30, %s6208_s30  ;;  %1324 = vrot.lane.b32.xlu0 %v6618_v34, %s6206_s28 }
 0x1b4   : > { %1326 = vrot.lane.b32.xlu2 %v6726_v14, %s6206_s28 }
 0x1b5   : > { %v799_v40 = vpop.permute.xlu1 %798  ;;  %v6767_v13 = vpop.permute.xlu0 %626  ;;  %5399 = vmatmul.msk.f32.gmra.mxu1 %vm710_vm1, %v6401_v32 }
 0x1b6   : > { %9879 = vst [vmem:[#allocation32_spill] sm:$0xff] %v6767_v13  ;;  %v6771_v29 = vpop.permute.xlu2 %883  ;;  %5402 = vmatpush.xpose.msk.msra.mxu2 %vm710_vm1, %v799_v40 }
 0x1ba   : > { %5403 = vmatpush.xpose.msk.msra.mxu2 %vm710_vm1, %v6655_v5 }
 0x1bb   : > { %1322 = vrot.lane.b32.xlu1 %v6686_v19, %s6206_s28  ;;  %1148 = vrot.lane.b32.xlu0 %v6728_v28, %s6206_s28 }
 0x1bc   : > { %972 = vrot.lane.b32.xlu2 %v6740_v24, %s6206_s28 }
 0x1bd   : > { %v6782_v30 = vpop.permute.xlu1 %692  ;;  %v6784_v14 = vpop.permute.xlu0 %658  ;;  %5400 = vmatmul.msk.f32.gmra.mxu1 %vm710_vm1, %v6417_v36  ;;  %v5740_v36 = vpack.i.bf16 %v6616_v33, %v6482_v53 }
 0x1be   : > { %9880 = vst [vmem:[#allocation33_spill] sm:$0xff] %v6782_v30  ;;  %v1066_v32 = vpop.permute.xlu2 %1065  ;;  %5404 = vmatpush.xpose.msk.msra.mxu2 %vm710_vm1, %v795_v38 }
 0x1bf   : > { %9881 = vst [vmem:[#allocation34_spill] sm:$0xff] %v6784_v14  ;;  %5450 = vmatpush.xpose.msk.msrb.mxu0 %vm710_vm1, %v1066_v32 }
 0x1c2   : > { %5405 = vmatpush.xpose.msk.msra.mxu2 %vm710_vm1, %v793_v44 }
 0x1c3   : > { %1146 = vrot.lane.b32.xlu1 %v6714_v47, %s6206_s28  ;;  %1328 = vrot.lane.b32.xlu0 %v6640_v46, %s6206_s28 }
 0x1c4   : > { %1150 = vrot.lane.b32.xlu2 %v6754_v35, %s6206_s28 }
 0x1c5   : > { %v6797_v40 = vpop.permute.xlu0 %1229  ;;  %v6799_v5 = vpop.permute.xlu1 %1053  ;;  %5401 = vmatmul.msk.f32.gmra.mxu1 %vm710_vm1, %v6420_v37 }
 0x1c6   : > { %5406 = vmatpush.xpose.msk.msra.mxu2 %vm710_vm1, %v791_v56  ;;  %v6825_v37 = vpop.permute.xlu2 %1243 }
 0x1ca   : > { %5407 = vmatpush.xpose.msk.msra.mxu2 %vm710_vm1, %v6667_v22 }
 0x1cb   : > { %974 = vrot.lane.b32.xlu0 %v6767_v13, %s6206_s28  ;;  %1330 = vrot.lane.b32.xlu1 %v6671_v50, %s6206_s28 }
 0x1cc   : > { %5741 = vrot.lane.b32.xlu2 %v5740_v36, %s6208_s30 }
 0x1cd   : > { %v6813_v38 = vpop.permute.xlu0 %660  ;;  %v6815_v44 = vpop.permute.xlu1 %1233 }
 0x1ce   : > { %9882 = vst [vmem:[#allocation35_spill] sm:$0xff] %v6813_v38  ;;  %5408 = vmatpush.xpose.msk.msra.mxu2 %vm710_vm1, %v6594_v23  ;;  %v5735_v23 = vpack.i.bf16 %v6602_v25, %v6495_v57 }
 0x1d2   : > { %5409 = vmatpush.xpose.msk.msra.mxu2 %vm710_vm1, %v6653_v60 }
 0x1d3   : > { %1152 = vrot.lane.b32.xlu0 %v6784_v14, %s6206_s28  ;;  %976 = vrot.lane.b32.xlu1 %v6705_v59, %s6206_s28 }
 0x1d4   : > { %1332 = vrot.lane.b32.xlu2 %v6782_v30, %s6206_s28 }
 0x1d5   : > { %v6830_v22 = vpop.permute.xlu0 %875  ;;  %v6832_v56 = vpop.permute.xlu1 %879  ;;  %5410 = vmatmul.msk.f32.vlgmr.msra.gmra.mxu2 %vm710_vm1, %v6429_v39  ;;  %v5745_v39 = vpack.i.bf16 %v6546_v8, %v6469_v49 }
 0x1d6   : > { %5668 = vmatpush.xpose.msk.msrb.mxu2 %vm710_vm1, %v1066_v32  ;;  %v6847_v32 = vpop.permute.xlu2 %5721 }
 0x1db   : > { %5736 = vrot.lane.b32.xlu0 %v5735_v23, %s6208_s30  ;;  %1154 = vrot.lane.b32.xlu1 %v6813_v38, %s6206_s28 }
 0x1dd   : > { %v6841_v60 = vpop.permute.xlu0 %877  ;;  %v6843_v36 = vpop.permute.xlu1 %1235  ;;  %5411 = vmatmul.msk.f32.gmra.mxu2 %vm710_vm1, %v6438_v41 }
 0x1de   : > { %v6856_v23 = vpop.permute.xlu2 %5731 }
 0x1e3   : > { %5746 = vrot.lane.b32.xlu1 %v5745_v39, %s6208_s30 }
 0x1e5   : > { %v1056_v30 = vpop.permute.xlu0 %1055  ;;  %v6852_v50 = vpop.permute.xlu1 %1237  ;;  %5412 = vmatmul.msk.f32.gmra.mxu2 %vm710_vm1, %v6466_v48 }
 0x1e6   : > { %v6862_v41 = vpop.permute.xlu2 %964 }
 0x1ed   : > { %v6858_v46 = vpop.permute.xlu0 %881  ;;  %v1062_v34 = vpop.permute.xlu1 %1061  ;;  %5413 = vmatmul.msk.f32.gmra.mxu2 %vm710_vm1, %v6469_v49 }
 0x1ee   : > { %v6870_v39 = vpop.permute.xlu2 %1142 }
 0x1f5   : > { %v6864_v19 = vpop.permute.xlu0 %5706  ;;  %v6866_v38 = vpop.permute.xlu1 %1239  ;;  %5414 = vmatmul.msk.f32.gmra.mxu2 %vm710_vm1, %v6482_v53 }
 0x1f6   : > { %v6880_v13 = vpop.permute.xlu2 %1320 }
 0x1fd   : > { %v886_v48 = vpop.permute.xlu0 %885  ;;  %v6872_v59 = vpop.permute.xlu1 %5711  ;;  %5415 = vmatmul.msk.f32.gmra.mxu2 %vm710_vm1, %v6495_v57 }
 0x205   : > { %v6876_v14 = vpop.permute.xlu0 %5716  ;;  %v1064_v49 = vpop.permute.xlu1 %1063  ;;  %5416 = vmatmul.msk.f32.gmra.mxu2 %vm710_vm1, %v6510_v62 }
 0x206   : > { %5451 = vmatpush.xpose.msk.msrb.mxu0 %vm710_vm1, %v1064_v49  ;;  %5669 = vmatpush.xpose.msk.msrb.mxu2 %vm710_vm1, %v1064_v49  ;;  %v6898_v62 = vpop.permute.xlu2 %966 }
 0x20a   : > { %v6884_v53 = vpop.f32.mrf.mxu1  ;;  %5452 = vmatpush.xpose.msk.msrb.mxu0 %vm710_vm1, %v1062_v34  ;;  %5670 = vmatpush.xpose.msk.msrb.mxu2 %vm710_vm1, %v1062_v34 }
 0x20b   : > { %9883 = vst [vmem:[#allocation36_spill] sm:$0xff] %v6884_v53  ;;  %v1408_v57 = vsel %vm1407_vm2, %v6884_v53, -inf }
 0x20d   : > { %v1242_v35 = vpop.permute.xlu1 %1241  ;;  %v6890_v24 = vpop.permute.xlu0 %962  ;;  %5417 = vmatmul.msk.f32.gmra.mxu2 %vm710_vm1, %v6549_v9  ;;  %1409 = vmax.xlane.f32.xlu1 %v1408_v57 }
 0x20e   : > { %5453 = vmatpush.xpose.msk.msrb.mxu0 %vm710_vm1, %v6758_v2  ;;  %5671 = vmatpush.xpose.msk.msrb.mxu2 %vm710_vm1, %v6758_v2  ;;  %v6914_v2 = vpop.permute.xlu2 %968 }
 0x212   : > { %v6900_v49 = vpop.f32.mrf.mxu1  ;;  %5454 = vmatpush.xpose.msk.msrb.mxu0 %vm710_vm1, %v6732_v42  ;;  %5672 = vmatpush.xpose.msk.msrb.mxu2 %vm710_vm1, %v6732_v42 }
 0x213   : > { %v1411_v9 = vsel %vm1407_vm2, %v6900_v49, -inf }
 0x214   : > { %1412 = vmax.xlane.f32.xlu2 %v1411_v9 }
 0x215   : > { %v888_v34 = vpop.permute.xlu1 %887  ;;  %v6908_v57 = vpop.permute.xlu0 %1318 }
 0x216   : > { %5418 = vmatpush.xpose.msk.msrb.mxu1 %vm710_vm1, %v888_v34  ;;  %5660 = vmatpush.xpose.msk.msra.mxu3 %vm710_vm1, %v888_v34  ;;  %v5698_v34 = vunpack.i.l.bf16 %v6614_v31 }
 0x217   : > { %5455 = vmatpush.xpose.msk.msrb.mxu0 %vm710_vm1, %v1056_v30  ;;  %5673 = vmatpush.xpose.msk.msrb.mxu2 %vm710_vm1, %v1056_v30 }
 0x21a   : > { %v6916_v53 = vpop.f32.mrf.mxu1  ;;  %5419 = vmatpush.xpose.msk.msrb.mxu1 %vm710_vm1, %v886_v48  ;;  %5661 = vmatpush.xpose.msk.msra.mxu3 %vm710_vm1, %v886_v48  ;;  %v5699_v48 = vunpack.i.h.bf16 %v6614_v31  ;;  %v5694_v31 = vunpack.i.h.bf16 %v6581_v17 }
 0x21b   : > { %5456 = vmatpush.xpose.msk.msrb.mxu0 %vm710_vm1, %v6799_v5  ;;  %5674 = vmatpush.xpose.msk.msrb.mxu2 %vm710_vm1, %v6799_v5  ;;  %v1414_v42 = vsel %vm1407_vm2, %v6916_v53, -inf }
 0x21c   : > { %1415 = vmax.xlane.f32.xlu2 %v1414_v42 }
 0x21d   : > { %v6926_v9 = vpop.permute.xlu1 %1140  ;;  %v6928_v30 = vpop.permute.xlu0 %1144 }
 0x21e   : > { %5420 = vmatpush.xpose.msk.msrb.mxu1 %vm710_vm1, %v6771_v29  ;;  %5662 = vmatpush.xpose.msk.msra.mxu3 %vm710_vm1, %v6771_v29  ;;  %v5693_v29 = vunpack.i.l.bf16 %v6581_v17  ;;  %v5718_v17 = vunpack.i.l.bf16 %v6876_v14 }
 0x21f   : > { %5457 = vmatpush.xpose.msk.msrb.mxu0 %vm710_vm1, %v6688_v12  ;;  %5675 = vmatpush.xpose.msk.msrb.mxu2 %vm710_vm1, %v6688_v12 }
 0x222   : > { %5458 = vmatmul.msk.f32.vlgmr.msrb.gmra.mxu0 %vm710_vm1, %v6497_v58  ;;  %5464 = vmatmul.msk.f32.vlgmr.msrb.gmra.mxu2 %vm710_vm1, %v6616_v33  ;;  %v6946_v5 = vpop.f32.mrf.mxu1 }
 0x223   : > { %5482 = vmatpush.xpose.msk.msra.mxu0 %vm710_vm1, %v6825_v37  ;;  %3000 = vmatpush.msra.mxu2 %v5698_v34  ;;  %v1417_v12 = vsel %vm1407_vm2, %v6946_v5, -inf  ;;  %v6953_v37 = vpop.permute.xlu2 %970  ;;  %v5723_v34 = vunpack.i.l.bf16 %v6847_v32 }
 0x224   : > { %5421 = vmatpush.xpose.msk.msrb.mxu1 %vm710_vm1, %v6858_v46  ;;  %5663 = vmatpush.xpose.msk.msra.mxu3 %vm710_vm1, %v6858_v46  ;;  %v5713_v46 = vunpack.i.l.bf16 %v6872_v59 }
 0x225   : > { %3001 = vmatpush.msra.mxu2 %v5699_v48  ;;  %1418 = vmax.xlane.f32.xlu2 %v1417_v12  ;;  %v6959_v33 = vpop.permute.xlu1 %5726  ;;  %v6961_v42 = vpop.permute.xlu0 %1324 }
 0x227   : > { %5483 = vmatpush.xpose.msk.msra.mxu0 %vm710_vm1, %v1242_v35  ;;  %3002 = vmatpush.msra.mxu2 %v5693_v29 }
 0x228   : > { %5422 = vmatpush.xpose.msk.msrb.mxu1 %vm710_vm1, %v6832_v56  ;;  %5664 = vmatpush.xpose.msk.msra.mxu3 %vm710_vm1, %v6832_v56  ;;  %v5708_v56 = vunpack.i.l.bf16 %v6864_v19 }
 0x229   : > { %3003 = vmatpush.msra.mxu2 %v5694_v31 }
 0x22a   : > { %5459 = vmatmul.msk.f32.gmra.mxu0 %vm710_vm1, %v6455_v45  ;;  %5465 = vmatmul.msk.f32.gmra.mxu2 %vm710_vm1, %v6602_v25  ;;  %v6975_v35 = vpop.f32.mrf.mxu1 }
 0x22b   : > { %5484 = vmatpush.xpose.msk.msra.mxu0 %vm710_vm1, %v6866_v38  ;;  %3004 = vmatpush.msra.mxu2 %v5723_v34  ;;  %v1420_v38 = vsel %vm1407_vm2, %v6975_v35, -inf  ;;  %v6991_v29 = vpop.permute.xlu2 %1326 }
 0x22c   : > { %5423 = vmatpush.xpose.msk.msrb.mxu1 %vm710_vm1, %v6841_v60  ;;  %5665 = vmatpush.xpose.msk.msra.mxu3 %vm710_vm1, %v6841_v60 }
 0x22d   : > { %3005 = vmatpush.msra.mxu2 %v5718_v17  ;;  %1421 = vmax.xlane.f32.xlu1 %v1420_v38  ;;  %v6987_v25 = vpop.permute.xlu1 %1322  ;;  %v6989_v48 = vpop.permute.xlu0 %1148  ;;  %v5703_v17 = vunpack.i.l.bf16 %v6744_v54  ;;  %v5729_v38 = vunpack.i.h.bf16 %v6959_v33 }
 0x22f   : > { %5485 = vmatpush.xpose.msk.msra.mxu0 %vm710_vm1, %v6852_v50  ;;  %3006 = vmatpush.msra.mxu2 %v5713_v46  ;;  %v5704_v46 = vunpack.i.h.bf16 %v6744_v54 }
 0x230   : > { %5424 = vmatpush.xpose.msk.msrb.mxu1 %vm710_vm1, %v6830_v22  ;;  %5666 = vmatpush.xpose.msk.msra.mxu3 %vm710_vm1, %v6830_v22 }
 0x231   : > { %3007 = vmatpush.msra.mxu2 %v5708_v56 }
 0x232   : > { %5460 = vmatmul.msk.f32.gmra.mxu0 %vm710_vm1, %v6532_v3  ;;  %v7001_v50 = vpop.f32.mrf.mxu1 }
 0x233   : > { %5486 = vmatpush.xpose.msk.msra.mxu0 %vm710_vm1, %v6843_v36  ;;  %v1423_v60 = vsel %vm1407_vm2, %v7001_v50, -inf  ;;  %v973_v12 = vpop.permute.xlu2 %972 }
 0x234   : > { %5425 = vmatpush.xpose.msk.msrb.mxu1 %vm710_vm1, %v6752_v26  ;;  %5667 = vmatpush.xpose.msk.msra.mxu3 %vm710_vm1, %v6752_v26 }
 0x235   : > { %1424 = vmax.xlane.f32.xlu0 %v1423_v60  ;;  %v7011_v22 = vpop.permute.xlu1 %1146  ;;  %v7013_v36 = vpop.permute.xlu0 %1328 }
 0x237   : > { %5487 = vmatpush.xpose.msk.msra.mxu0 %vm710_vm1, %v6815_v44  ;;  %5426 = vmatmul.msk.f32.vlgmr.msrb.gmra.mxu1 %vm710_vm1, %v6477_v51  ;;  %v5724_v44 = vunpack.i.h.bf16 %v6847_v32  ;;  %v5719_v51 = vunpack.i.h.bf16 %v6876_v14  ;;  %v5709_v32 = vunpack.i.h.bf16 %v6864_v19  ;;  %v5728_v19 = vunpack.i.l.bf16 %v6959_v33 }
 0x238   : > { %5430 = vmatmul.msk.f32.vlgmr.msra.gmra.mxu3 %vm710_vm1, %v6534_v4 }
 0x23a   : > { %5461 = vmatmul.msk.f32.gmra.mxu0 %vm710_vm1, %v6507_v61  ;;  %v7023_v26 = vpop.f32.mrf.mxu1 }
 0x23b   : > { %5488 = vmatpush.xpose.msk.msra.mxu0 %vm710_vm1, %v6718_v21  ;;  %v1426_v31 = vsel %vm1407_vm2, %v7023_v26, -inf  ;;  %v5714_v21 = vunpack.i.h.bf16 %v6872_v59 }
 0x23c   : > { %1427 = vmax.xlane.f32.xlu2 %v1426_v31 }
 0x23d   : > { %v975_v4 = vpop.permute.xlu0 %974  ;;  %v7031_v34 = vpop.permute.xlu1 %1330 }
 0x23f   : > { %5489 = vmatpush.xpose.msk.msra.mxu0 %vm710_vm1, %v6797_v40  ;;  %5427 = vmatmul.msk.f32.gmra.mxu1 %vm710_vm1, %v6518_v63  ;;  %v1151_v40 = vpop.permute.xlu2 %1150 }
 0x240   : > { %5431 = vmatmul.msk.f32.gmra.mxu3 %vm710_vm1, %v6579_v16 }
 0x242   : > { %5462 = vmatmul.msk.f32.gmra.mxu0 %vm710_vm1, %v6542_v6  ;;  %v7041_v14 = vpop.f32.mrf.mxu1 }
 0x243   : > { %3178 = vmatpush.msrb.mxu0 %v5724_v44  ;;  %v1429_v63 = vsel %vm1407_vm2, %v7041_v14, -inf }
 0x244   : > { %1430 = vmax.xlane.f32.xlu2 %v1429_v63  ;;  %v9897_v63 = vld [vmem:[#allocation34_spill] sm:$0xff] }
 0x245   : > { %3179 = vmatpush.msrb.mxu0 %v5719_v51  ;;  %v1153_v59 = vpop.permute.xlu0 %1152  ;;  %v977_v16 = vpop.permute.xlu1 %976  ;;  %v9887_v51 = vld [vmem:[#allocation10_spill] sm:$0xff] }
 0x246   : > { %5434 = vmatpush.xpose.msk.msra.mxu1 %vm710_vm1, %v977_v16 }
 0x247   : > { %3180 = vmatpush.msrb.mxu0 %v5714_v21  ;;  %5428 = vmatmul.msk.f32.gmra.mxu1 %vm710_vm1, %v6479_v52  ;;  %v5742_v54 = vpop.permute.xlu2 %5741  ;;  %v9891_v21 = vld [vmem:[#allocation16_spill] sm:$0xff] }
 0x248   : > { %5432 = vmatmul.msk.f32.gmra.mxu3 %vm710_vm1, %v6604_v27  ;;  %v5744_v27 = vunpack.i.h.bf16 %v5742_v54 }
 0x249   : > { %3181 = vmatpush.msrb.mxu0 %v5709_v32  ;;  %v9893_v32 = vld [vmem:[#allocation9_spill] sm:$0xff] }
 0x24a   : > { %5463 = vmatmul.msk.f32.gmra.mxu0 %vm710_vm1, %v6546_v8  ;;  %5435 = vmatpush.xpose.msk.msra.mxu1 %vm710_vm1, %v975_v4  ;;  %v9889_v4 = vld [vmem:[#allocation25_spill] sm:$0xff] }
 0x24b   : > { %3182 = vmatpush.msrb.mxu0 %v5703_v17  ;;  %v9896_v17 = vld [vmem:[#allocation32_spill] sm:$0xff] }
 0x24d   : > { %3183 = vmatpush.msrb.mxu0 %v5704_v46  ;;  %v5737_v56 = vpop.permute.xlu0 %5736  ;;  %v1155_v52 = vpop.permute.xlu1 %1154 }
 0x24e   : > { %v5739_v60 = vunpack.i.h.bf16 %v5737_v56  ;;  %5466 = vmatpush.xpose.msk.msrb.mxu3 %vm710_vm1, %v1155_v52  ;;  %5436 = vmatpush.xpose.msk.msra.mxu1 %vm710_vm1, %v973_v12 }
 0x24f   : > { %3184 = vmatpush.msrb.mxu0 %v5728_v19  ;;  %5429 = vmatmul.msk.f32.gmra.mxu1 %vm710_vm1, %v6559_v11 }
 0x250   : > { %5433 = vmatmul.msk.f32.gmra.mxu3 %vm710_vm1, %v6592_v20  ;;  %3356 = vmatpush.msrb.mxu2 %v5739_v60 }
 0x251   : > { %3185 = vmatpush.msrb.mxu0 %v5729_v38  ;;  %v9900_v38 = vld [vmem:[#allocation35_spill] sm:$0xff] }
 0x252   : > { %5467 = vmatpush.xpose.msk.msrb.mxu3 %vm710_vm1, %v1153_v59  ;;  %3357 = vmatpush.msrb.mxu2 %v5744_v27  ;;  %v9898_v59 = vld [vmem:[#allocation26_spill] sm:$0xff] }
 0x253   : > { %5490 = vmatmul.msk.f32.vlgmr.msra.gmra.mxu0 %vm710_vm1, %v6490_v55  ;;  %5437 = vmatpush.xpose.msk.msra.mxu1 %vm710_vm1, %v6953_v37 }
 0x255   : > { %v5747_v8 = vpop.permute.xlu1 %5746 }
 0x256   : > { %v5749_v11 = vunpack.i.h.bf16 %v5747_v8  ;;  %5468 = vmatpush.xpose.msk.msrb.mxu3 %vm710_vm1, %v1151_v40  ;;  %v5748_v12 = vunpack.i.l.bf16 %v5747_v8  ;;  %v9895_v40 = vld [vmem:[#allocation31_spill] sm:$0xff]  ;;  %v9903_v8 = vld [vmem:[#allocation13_spill] sm:$0xff] }
 0x257   : > { %5438 = vmatpush.xpose.msk.msra.mxu1 %vm710_vm1, %v6914_v2 }
 0x258   : > { %v7071_v20 = vpop.f32.mrf.mxu2  ;;  %3358 = vmatpush.msrb.mxu2 %v5749_v11 }
 0x259   : > { %v1432_v33 = vsel %vm1407_vm2, %v7071_v20, -inf }
 0x25a   : > { %1433 = vmax.xlane.f32.xlu2 %v1432_v33  ;;  %5469 = vmatpush.xpose.msk.msrb.mxu3 %vm710_vm1, %v6989_v48  ;;  %v1333_v48 = vpop.permute.xlu2 %1332 }
 0x25b   : > { %5491 = vmatmul.msk.f32.gmra.mxu0 %vm710_vm1, %v6520_v0  ;;  %5439 = vmatpush.xpose.msk.msra.mxu1 %vm710_vm1, %v6898_v62  ;;  %v5733_v62 = vunpack.i.l.bf16 %v6856_v23 }
 0x25e   : > { %5470 = vmatpush.xpose.msk.msrb.mxu3 %vm710_vm1, %v7011_v22  ;;  %v5743_v22 = vunpack.i.l.bf16 %v5742_v54  ;;  %v9901_v54 = vld [vmem:[#allocation15_spill] sm:$0xff] }
 0x25f   : > { %5440 = vmatpush.xpose.msk.msra.mxu1 %vm710_vm1, %v6862_v41 }
 0x260   : > { %v7085_v2 = vpop.f32.mrf.mxu2 }
 0x261   : > { %v1435_v37 = vsel %vm1407_vm2, %v7085_v2, -inf }
 0x262   : > { %1436 = vmax.xlane.f32.xlu0 %v1435_v37  ;;  %5471 = vmatpush.xpose.msk.msrb.mxu3 %vm710_vm1, %v6928_v30 }
 0x263   : > { %5492 = vmatmul.msk.f32.gmra.mxu0 %vm710_vm1, %v6544_v7  ;;  %5441 = vmatpush.xpose.msk.msra.mxu1 %vm710_vm1, %v6890_v24  ;;  %v5734_v24 = vunpack.i.h.bf16 %v6856_v23 }
 0x266   : > { %5442 = vmatmul.msk.f32.vlgmr.msra.gmra.mxu1 %vm710_vm1, %v6571_v15  ;;  %5472 = vmatpush.xpose.msk.msrb.mxu3 %vm710_vm1, %v6870_v39  ;;  %v5738_v39 = vunpack.i.l.bf16 %v5737_v56 }
 0x267   : > { %5498 = vmatpush.xpose.msk.msrb.mxu1 %vm710_vm1, %v1333_v48 }
 0x268   : > { %v7102_v41 = vpop.f32.mrf.mxu2 }
 0x269   : > { %v1438_v30 = vsel %vm1407_vm2, %v7102_v41, -inf }
 0x26a   : > { %1439 = vmax.xlane.f32.xlu0 %v1438_v30  ;;  %5473 = vmatpush.xpose.msk.msrb.mxu3 %vm710_vm1, %v6926_v9 }
 0x26b   : > { %5499 = vmatpush.xpose.msk.msrb.mxu1 %vm710_vm1, %v7031_v34  ;;  %5493 = vmatmul.msk.f32.gmra.mxu0 %vm710_vm1, %v6522_v1 }
 0x26d   : > { %5474 = vmatmul.msk.f32.vlgmr.msrb.gmra.mxu3 %vm710_vm1, %v6669_v43 }
 0x26e   : > { %3089 = vmatpush.msra.mxu3 %v5733_v62  ;;  %5443 = vmatmul.msk.f32.gmra.mxu1 %vm710_vm1, %v6583_v18  ;;  %v9905_v62 = vld [vmem:[#allocation24_spill] sm:$0xff] }
 0x26f   : > { %5500 = vmatpush.xpose.msk.msrb.mxu1 %vm710_vm1, %v7013_v36  ;;  %v9885_v36 = vld [vmem:[#allocation18_spill] sm:$0xff] }
 0x270   : > { %3090 = vmatpush.msra.mxu3 %v5734_v24  ;;  %v7120_v9 = vpop.f32.mrf.mxu2 }
 0x271   : > { %9884 = vst [vmem:[#allocation37_spill] sm:$0xff] %v7120_v9  ;;  %v1441_v23 = vsel %vm1407_vm2, %v7120_v9, -inf }
 0x272   : > { %3091 = vmatpush.msra.mxu3 %v5738_v39  ;;  %1442 = vmax.xlane.f32.xlu0 %v1441_v23  ;;  %v9906_v23 = vld [vmem:[#allocation36_spill] sm:$0xff] }
 0x273   : > { %5501 = vmatpush.xpose.msk.msrb.mxu1 %vm710_vm1, %v6991_v29  ;;  %5494 = vmatmul.msk.f32.gmra.mxu0 %vm710_vm1, %v6557_v10  ;;  %v9886_v29 = vld [vmem:[#allocation20_spill] sm:$0xff] }
 0x274   : > { %3092 = vmatpush.msra.mxu3 %v5743_v22 }
 0x275   : > { %5475 = vmatmul.msk.f32.gmra.mxu3 %vm710_vm1, %v9885_v36 }
 0x276   : > { %3093 = vmatpush.msra.mxu3 %v5748_v12  ;;  %5444 = vmatmul.msk.f32.gmra.mxu1 %vm710_vm1, %v9886_v29 }
 0x277   : > { %5502 = vmatpush.xpose.msk.msrb.mxu1 %vm710_vm1, %v6961_v42  ;;  %v9888_v42 = vld [vmem:[#allocation23_spill] sm:$0xff] }
 0x278   : > { %v7134_v44 = vpop.f32.mrf.mxu2 }
 0x279   : > { %v1444_v31 = vsel %vm1407_vm2, %v7134_v44, -inf }
 0x27a   : > { %1445 = vmax.xlane.f32.xlu2 %v1444_v31 }
 0x27b   : > { %5503 = vmatpush.xpose.msk.msrb.mxu1 %vm710_vm1, %v6987_v25  ;;  %5495 = vmatmul.msk.f32.gmra.mxu0 %vm710_vm1, %v9887_v51 }
 0x27d   : > { %5476 = vmatmul.msk.f32.gmra.mxu3 %vm710_vm1, %v9888_v42 }
 0x27e   : > { %5445 = vmatmul.msk.f32.gmra.mxu1 %vm710_vm1, %v9889_v4 }
 0x27f   : > { %5504 = vmatpush.xpose.msk.msrb.mxu1 %vm710_vm1, %v6880_v13  ;;  %v9892_v13 = vld [vmem:[#allocation17_spill] sm:$0xff] }
 0x280   : > { %v7148_v25 = vpop.f32.mrf.mxu2  ;;  %v1410_v30 = vpop.xlane.xlu1 %1409 }
 0x281   : > { %9890 = vst [vmem:[#allocation20_spill] sm:$0xff] %v7148_v25  ;;  %v1447_v34 = vsel %vm1407_vm2, %v7148_v25, -inf  ;;  %v1600_v12 = vsub.f32 %v9906_v23, %v1410_v30 }
 0x282   : > { %1448 = vmax.xlane.f32.xlu1 %v1447_v34 }
 0x283   : > { %5505 = vmatpush.xpose.msk.msrb.mxu1 %vm710_vm1, %v6908_v57  ;;  %5496 = vmatmul.msk.f32.gmra.mxu0 %vm710_vm1, %v9891_v21  ;;  %v9894_v57 = vld [vmem:[#allocation30_spill] sm:$0xff] }
 0x285   : > { %5477 = vmatmul.msk.f32.gmra.mxu3 %vm710_vm1, %v6714_v47  ;;  %v9915_v47 = vld [vmem:[#allocation33_spill] sm:$0xff] }
 0x286   : > { %5446 = vmatmul.msk.f32.gmra.mxu1 %vm710_vm1, %v9892_v13 }
 0x287   : > { %v1413_v24 = vpop.xlane.xlu2 %1412 }
 0x288   : > { %v7176_v19 = vpop.f32.mrf.mxu2 }
 0x289   : > { %9899 = vst [vmem:[#allocation10_spill] sm:$0xff] %v7176_v19  ;;  %v1450_v52 = vsel %vm1407_vm2, %v7176_v19, -inf }
 0x28b   : > { %5497 = vmatmul.msk.f32.gmra.mxu0 %vm710_vm1, %v9893_v32 }
 0x28d   : > { %5478 = vmatmul.msk.f32.gmra.mxu3 %vm710_vm1, %v6728_v28 }
 0x28e   : > { %5447 = vmatmul.msk.f32.gmra.mxu1 %vm710_vm1, %v9894_v57 }
 0x290   : > { %v7188_v27 = vpop.f32.mrf.mxu2 }
 0x291   : > { %9902 = vst [vmem:[#allocation25_spill] sm:$0xff] %v7188_v27  ;;  %v1453_v11 = vsel %vm1407_vm2, %v7188_v27, -inf }
 0x295   : > { %5479 = vmatmul.msk.f32.gmra.mxu3 %vm710_vm1, %v9895_v40 }
 0x296   : > { %5448 = vmatmul.msk.f32.gmra.mxu1 %vm710_vm1, %v9896_v17 }
 0x29d   : > { %5480 = vmatmul.msk.f32.gmra.mxu3 %vm710_vm1, %v9897_v63 }
 0x29e   : > { %5449 = vmatmul.msk.f32.gmra.mxu1 %vm710_vm1, %v9898_v59 }
 0x29f   : > { %v7172_v16 = vpop.f32.mrf.mxu0 }
 0x2a0   : > { %v1504_v46 = vsel %vm1407_vm2, %v7172_v16, -inf }
 0x2a1   : > { %1505 = vmax.xlane.f32.xlu1 %v1504_v46 }
 0x2a5   : > { %5481 = vmatmul.msk.f32.gmra.mxu3 %vm710_vm1, %v9900_v38  ;;  %v7198_v48 = vpop.f32.mrf.mxu2 }
 0x2a6   : > { %5506 = vmatmul.msk.f32.vlgmr.msrb.gmra.mxu1 %vm710_vm1, %v9901_v54  ;;  %9904 = vst [vmem:[#allocation16_spill] sm:$0xff] %v7198_v48  ;;  %v1522_v22 = vsel %vm1407_vm2, %v7198_v48, -inf }
 0x2a7   : > { %v7182_v56 = vpop.f32.mrf.mxu0 }
 0x2a8   : > { %v1507_v60 = vsel %vm1407_vm2, %v7182_v56, -inf }
 0x2a9   : > { %1451 = vmax.xlane.f32.xlu1 %v1450_v52  ;;  %1508 = vmax.xlane.f32.xlu2 %v1507_v60  ;;  %v1664_v52 = vmul.f32 1.442695, %v1600_v12  ;;  %v9907_v60 = vld [vmem:[#allocation14_spill] sm:$0xff]  ;;  %v9909_v12 = vld [vmem:[#allocation28_spill] sm:$0xff] }
 0x2ab   : > { %5858 = vpow2.f32 %v1664_v52  ;;  %v1601_v52 = vsub.f32 %v6900_v49, %v1413_v24 }
 0x2ad   : > { %v1666_v24 = vmul.f32 1.442695, %v1601_v52  ;;  %v9914_v52 = vld [vmem:[#allocation22_spill] sm:$0xff] }
 0x2ae   : > { %5507 = vmatmul.msk.f32.gmra.mxu1 %vm710_vm1, %v9903_v8 }
 0x2af   : > { %v7202_v39 = vpop.f32.mrf.mxu0  ;;  %5860 = vpow2.f32 %v1666_v24  ;;  %v1425_v24 = vpop.xlane.xlu0 %1424 }
 0x2b1   : > { %1454 = vmax.xlane.f32.xlu2 %v1453_v11  ;;  %v1416_v11 = vpop.xlane.xlu2 %1415  ;;  %v7227_v8 = vpop.eup %5858 }
 0x2b4   : > { %v7194_v33 = vpop.f32.mrf.mxu1 }
 0x2b5   : > { %v1456_v37 = vsel %vm1407_vm2, %v7194_v33, -inf }
 0x2b6   : > { %1457 = vmax.xlane.f32.xlu0 %v1456_v37  ;;  %5508 = vmatmul.msk.f32.gmra.mxu1 %vm710_vm1, %v9905_v62 }
 0x2b7   : > { %v7215_v37 = vpop.f32.mrf.mxu0 }
 0x2b8   : > { %9908 = vst [vmem:[#allocation17_spill] sm:$0xff] %v7215_v37 }
 0x2b9   : > { %1523 = vmax.xlane.f32.xlu2 %v1522_v22  ;;  %v1419_v43 = vpop.xlane.xlu2 %1418 }
 0x2bb   : > { %v7207_v31 = vpop.f32.mrf.mxu3 }
 0x2bc   : > { %v7209_v34 = vpop.f32.mrf.mxu1  ;;  %v1468_v46 = vsel %vm1407_vm2, %v7207_v31, -inf }
 0x2bd   : > { %1469 = vmax.xlane.f32.xlu1 %v1468_v46  ;;  %v1459_v23 = vsel %vm1407_vm2, %v7209_v34, -inf  ;;  %v1422_v46 = vpop.xlane.xlu1 %1421 }
 0x2be   : > { %5509 = vmatmul.msk.f32.gmra.mxu1 %vm710_vm1, %v9907_v60  ;;  %v1604_v62 = vsub.f32 %v6975_v35, %v1422_v46  ;;  %v1602_v60 = vsub.f32 %v6916_v53, %v1416_v11  ;;  %v9911_v53 = vld [vmem:[#allocation19_spill] sm:$0xff]  ;;  %v7244_v46 = vpop.f32.mrf.mxu2 }
 0x2bf   : > { %9912 = vst [vmem:[#allocation30_spill] sm:$0xff] %v7244_v46 }
 0x2c0   : > { %v1672_v35 = vmul.f32 1.442695, %v1604_v62  ;;  %v1668_v11 = vmul.f32 1.442695, %v1602_v60  ;;  %v1513_v62 = vsel %vm1407_vm2, %v7215_v37, -inf }
 0x2c2   : > { %5862 = vpow2.f32 %v1672_v35 }
 0x2c3   : > { %v7217_v54 = vpop.f32.mrf.mxu3  ;;  %5864 = vpow2.f32 %v1668_v11 }
 0x2c4   : > { %v1471_v30 = vsel %vm1407_vm2, %v7217_v54, -inf  ;;  %v7221_v22 = vpop.f32.mrf.mxu1 }
 0x2c5   : > { %1472 = vmax.xlane.f32.xlu0 %v1471_v30  ;;  %1460 = vmax.xlane.f32.xlu1 %v1459_v23  ;;  %v1462_v28 = vsel %vm1407_vm2, %v7221_v22, -inf  ;;  %v1792_v30 = vsel %vm1407_vm2, %v7227_v8, 0.0  ;;  %v7238_v23 = vpop.f32.mrf.mxu0 }
 0x2c6   : > { %5510 = vmatmul.msk.f32.gmra.mxu1 %vm710_vm1, %v9909_v12  ;;  %9910 = vst [vmem:[#allocation9_spill] sm:$0xff] %v7238_v23  ;;  %v7246_v12 = vpop.xlane.xlu2 %1427 }
 0x2cb   : > { %v7260_v35 = vpop.f32.mrf.mxu3 }
 0x2cc   : > { %v7234_v40 = vpop.f32.mrf.mxu1  ;;  %v1474_v38 = vsel %vm1407_vm2, %v7260_v35, -inf }
 0x2cd   : > { %1463 = vmax.xlane.f32.xlu0 %v1462_v28  ;;  %1793 = vadd.xlane.f32.xlu1 %v1792_v30  ;;  %v1465_v49 = vsel %vm1407_vm2, %v7234_v40, -inf  ;;  %v1525_v28 = vsel %vm1407_vm2, %v7244_v46, -inf  ;;  %v1510_v30 = vsel %vm1407_vm2, %v7202_v39, -inf  ;;  %v7254_v60 = vpop.f32.mrf.mxu0 }
 0x2ce   : > { %1466 = vmax.xlane.f32.xlu2 %v1465_v49  ;;  %5511 = vmatmul.msk.f32.gmra.mxu1 %vm710_vm1, %v9911_v53  ;;  %9913 = vst [vmem:[#allocation32_spill] sm:$0xff] %v7254_v60  ;;  %v7258_v49 = vpop.eup %5860  ;;  %v1431_v36 = vpop.xlane.xlu2 %1430 }
 0x2cf   : > { %v7262_v11 = vpop.eup %5862 }
 0x2d0   : > { %v7264_v53 = vpop.eup %5864 }
 0x2d5   : > { %1526 = vmax.xlane.f32.xlu1 %v1525_v28  ;;  %1511 = vmax.xlane.f32.xlu0 %v1510_v30  ;;  %v1605_v28 = vsub.f32 %v7001_v50, %v1425_v24  ;;  %v1804_v30 = vsel %vm1407_vm2, %v7262_v11, 0.0  ;;  %v7275_v63 = vpop.f32.mrf.mxu0  ;;  %v7277_v50 = vpop.f32.mrf.mxu3  ;;  %v1603_v24 = vsub.f32 %v6946_v5, %v1419_v43 }
 0x2d6   : > { %1514 = vmax.xlane.f32.xlu2 %v1513_v62  ;;  %5512 = vmatmul.msk.f32.gmra.mxu1 %vm710_vm1, %v9914_v52  ;;  %v1795_v62 = vsel %vm1407_vm2, %v7258_v49, 0.0  ;;  %v1798_v52 = vsel %vm1407_vm2, %v7264_v53, 0.0 }
 0x2d7   : > { %v1674_v42 = vmul.f32 1.442695, %v1605_v28  ;;  %v1434_v28 = vpop.xlane.xlu2 %1433 }
 0x2d8   : > { %v1608_v43 = vsub.f32 %v7071_v20, %v1434_v28 }
 0x2d9   : > { %5866 = vpow2.f32 %v1674_v42 }
 0x2da   : > { %v1680_v55 = vmul.f32 1.442695, %v1608_v43 }
 0x2dd   : > { %1805 = vadd.xlane.f32.xlu1 %v1804_v30  ;;  %1796 = vadd.xlane.f32.xlu0 %v1795_v62  ;;  %v1552_v30 = vsel %vm1407_vm2, %v7275_v63, -inf  ;;  %v7297_v0 = vpop.f32.mrf.mxu0 }
 0x2de   : > { %1799 = vadd.xlane.f32.xlu2 %v1798_v52  ;;  %5513 = vmatmul.msk.f32.gmra.mxu1 %vm710_vm1, %v9915_v47  ;;  %v1477_v52 = vsel %vm1407_vm2, %v7277_v50, -inf  ;;  %v1670_v47 = vmul.f32 1.442695, %v1603_v24 }
 0x2df   : > { %v7288_v46 = vpop.eup %5866 }
 0x2e0   : > { %5868 = vpow2.f32 %v1670_v47  ;;  %v1807_v42 = vsel %vm1407_vm2, %v7288_v46, 0.0 }
 0x2e1   : > { %5870 = vpow2.f32 %v1680_v55 }
 0x2e3   : > { %v7282_v62 = vpop.f32.mrf.mxu1 }
 0x2e4   : > { %v1480_v43 = vsel %vm1407_vm2, %v7282_v62, -inf }
 0x2e5   : > { %1553 = vmax.xlane.f32.xlu1 %v1552_v30  ;;  %1475 = vmax.xlane.f32.xlu0 %v1474_v38  ;;  %v1516_v38 = vsel %vm1407_vm2, %v7238_v23, -inf  ;;  %v1437_v30 = vpop.xlane.xlu0 %1436 }
 0x2e6   : > { %1478 = vmax.xlane.f32.xlu2 %v1477_v52  ;;  %v1609_v24 = vsub.f32 %v7085_v2, %v1437_v30  ;;  %v7302_v47 = vpop.eup %5868 }
 0x2e7   : > { %v1801_v55 = vsel %vm1407_vm2, %v7302_v47, 0.0  ;;  %v7312_v2 = vpop.eup %5870 }
 0x2e8   : > { %v1816_v30 = vsel %vm1407_vm2, %v7312_v2, 0.0 }
 0x2eb   : > { %v7291_v5 = vpop.f32.mrf.mxu1 }
 0x2ed   : > { %1808 = vadd.xlane.f32.xlu0 %v1807_v42  ;;  %v1682_v42 = vmul.f32 1.442695, %v1609_v24 }
 0x2ee   : > { %1517 = vmax.xlane.f32.xlu2 %v1516_v38  ;;  %v7314_v38 = vpop.f32.mrf.mxu0 }
 0x2ef   : > { %5872 = vpow2.f32 %v1682_v42  ;;  %9917 = vst [vmem:[#allocation36_spill] sm:$0xff] %v7314_v38  ;;  %v1558_v24 = vsel %vm1407_vm2, %v7314_v38, -inf }
 0x2f0   : > { %v7300_v52 = vpop.f32.mrf.mxu3 }
 0x2f1   : > { %9916 = vst [vmem:[#allocation26_spill] sm:$0xff] %v7300_v52  ;;  %v1528_v20 = vsel %vm1407_vm2, %v7300_v52, -inf }
 0x2f2   : > { %1529 = vmax.xlane.f32.xlu1 %v1528_v20  ;;  %v1606_v20 = vsub.f32 %v7023_v26, %v7246_v12  ;;  %v1607_v26 = vsub.f32 %v7041_v14, %v1431_v36  ;;  %v9922_v36 = vld [vmem:[#allocation3_spill] sm:$0xff] }
 0x2f3   : > { %v7306_v28 = vpop.f32.mrf.mxu1 }
 0x2f5   : > { %1481 = vmax.xlane.f32.xlu0 %v1480_v43  ;;  %v1519_v43 = vsel %vm1407_vm2, %v7254_v60, -inf  ;;  %v7326_v42 = vpop.eup %5872 }
 0x2f6   : > { %1802 = vadd.xlane.f32.xlu2 %v1801_v55  ;;  %v1676_v55 = vmul.f32 1.442695, %v1606_v20  ;;  %v1819_v52 = vsel %vm1407_vm2, %v7326_v42, 0.0 }
 0x2f8   : > { %5874 = vpow2.f32 %v1676_v55  ;;  %v5755_v55 = vpack.i.bf16 %v9922_v36, %v6542_v6  ;;  %v7359_v36 = vpop.xlane.xlu2 %1445 }
 0x2fa   : > { %1817 = vadd.xlane.f32.xlu1 %v1816_v30  ;;  %v1555_v30 = vsel %vm1407_vm2, %v7297_v0, -inf }
 0x2fb   : > { %v7320_v23 = vpop.f32.mrf.mxu1 }
 0x2fc   : > { %9918 = vst [vmem:[#allocation38_spill] sm:$0xff] %v7320_v23 }
 0x2fd   : > { %1559 = vmax.xlane.f32.xlu0 %v1558_v24  ;;  %v1678_v24 = vmul.f32 1.442695, %v1607_v26 }
 0x2fe   : > { %1520 = vmax.xlane.f32.xlu2 %v1519_v43  ;;  %v7335_v27 = vpop.eup %5874 }
 0x2ff   : > { %5876 = vpow2.f32 %v1678_v24  ;;  %v1810_v14 = vsel %vm1407_vm2, %v7335_v27, 0.0 }
 0x302   : > { %1820 = vadd.xlane.f32.xlu1 %v1819_v52  ;;  %v7341_v52 = vpop.xlane.xlu1 %1448 }
 0x303   : > { %v7331_v12 = vpop.f32.mrf.mxu1  ;;  %9921 = vst [vmem:[#allocation41_spill] sm:$0xff] %v7341_v52 }
 0x304   : > { %9919 = vst [vmem:[#allocation39_spill] sm:$0xff] %v7331_v12  ;;  %v1492_v43 = vsel %vm1407_vm2, %v7331_v12, -inf }
 0x305   : > { %v7348_v26 = vpop.eup %5876 }
 0x306   : > { %1556 = vmax.xlane.f32.xlu2 %v1555_v30  ;;  %v1813_v60 = vsel %vm1407_vm2, %v7348_v26, 0.0 }
 0x30a   : > { %1493 = vmax.xlane.f32.xlu1 %v1492_v43 }
 0x30b   : > { %v7339_v20 = vpop.f32.mrf.mxu1 }
 0x30c   : > { %9920 = vst [vmem:[#allocation40_spill] sm:$0xff] %v7339_v20  ;;  %v1495_v30 = vsel %vm1407_vm2, %v7339_v20, -inf  ;;  %v7363_v20 = vpop.xlane.xlu0 %1439 }
 0x30e   : > { %1811 = vadd.xlane.f32.xlu2 %v1810_v14 }
 0x311   : > { %5756 = vrot.lane.b32.xlu0 %v5755_v55, %s6208_s30 }
 0x312   : > { %1496 = vmax.xlane.f32.xlu1 %v1495_v30 }
 0x313   : > { %v7352_v24 = vpop.f32.mrf.mxu1 }
 0x314   : > { %v1506_v43 = vpop.xlane.xlu1 %1505 }
 0x315   : > { %v1632_v12 = vsub.f32 %v7172_v16, %v1506_v43  ;;  %v9927_v43 = vld [vmem:[#allocation4_spill] sm:$0xff] }
 0x316   : > { %1814 = vadd.xlane.f32.xlu2 %v1813_v60  ;;  %v7371_v60 = vpop.xlane.xlu0 %1442 }
 0x317   : > { %v1728_v14 = vmul.f32 1.442695, %v1632_v12  ;;  %9925 = vst [vmem:[#allocation43_spill] sm:$0xff] %v7371_v60 }
 0x319   : > { %5878 = vpow2.f32 %v1728_v14  ;;  %v5750_v14 = vpack.i.bf16 %v9898_v59, %v9927_v43  ;;  %v7387_v59 = vpop.f32.mrf.mxu0 }
 0x31a   : > { %9930 = vst [vmem:[#allocation46_spill] sm:$0xff] %v7387_v59 }
 0x31b   : > { %v7357_v6 = vpop.f32.mrf.mxu1 }
 0x31c   : > { %9923 = vst [vmem:[#allocation3_spill] sm:$0xff] %v7357_v6  ;;  %v1501_v55 = vsel %vm1407_vm2, %v7357_v6, -inf  ;;  %v7367_v48 = vpop.xlane.xlu2 %1508  ;;  %v7373_v12 = vpop.xlane.xlu1 %1451 }
 0x31d   : > { %1502 = vmax.xlane.f32.xlu1 %v1501_v55  ;;  %9926 = vst [vmem:[#allocation44_spill] sm:$0xff] %v7373_v12 }
 0x31f   : > { %v7365_v30 = vpop.eup %5878 }
 0x320   : > { %9924 = vst [vmem:[#allocation42_spill] sm:$0xff] %v7365_v30  ;;  %v1888_v16 = vsel %vm1407_vm2, %v7365_v30, 0.0  ;;  %v1483_v30 = vsel %vm1407_vm2, %v7291_v5, -inf }
 0x324   : > { %v7378_v6 = vpop.xlane.xlu2 %1454 }
 0x325   : > { %1889 = vadd.xlane.f32.xlu1 %v1888_v16  ;;  %9928 = vst [vmem:[#allocation4_spill] sm:$0xff] %v7378_v6 }
 0x329   : > { %v1458_v55 = vpop.xlane.xlu0 %1457 }
 0x32c   : > { %v7382_v25 = vpop.xlane.xlu2 %1523 }
 0x32d   : > { %9929 = vst [vmem:[#allocation45_spill] sm:$0xff] %v7382_v25  ;;  %v1561_v25 = vsel %vm1407_vm2, %v7387_v59, -inf }
 0x32e   : > { %5751 = vrot.lane.b32.xlu2 %v5750_v14, %s6208_s30 }
 0x330   : > { %v1470_v19 = vpop.xlane.xlu1 %1469 }
 0x338   : > { %v7380_v38 = vpop.xlane.xlu0 %1472  ;;  %v1461_v37 = vpop.xlane.xlu1 %1460 }
 0x339   : > { %v1617_v16 = vsub.f32 %v7209_v34, %v1461_v37  ;;  %v1616_v37 = vsub.f32 %v7194_v33, %v1458_v55 }
 0x33b   : > { %v1698_v12 = vmul.f32 1.442695, %v1617_v16  ;;  %1484 = vmax.xlane.f32.xlu0 %v1483_v30 }
 0x33d   : > { %5880 = vpow2.f32 %v1698_v12 }
 0x340   : > { %v1464_v43 = vpop.xlane.xlu0 %1463  ;;  %v1794_v14 = vpop.xlane.xlu1 %1793 }
 0x341   : > { %v1618_v6 = vsub.f32 %v7221_v22, %v1464_v43  ;;  %5882 = vrcp.f32 %v1794_v14  ;;  %v7390_v52 = vpop.xlane.xlu2 %1466  ;;  %v1696_v43 = vmul.f32 1.442695, %v1616_v37  ;;  %v1995_v59 = vand.u32 2147483648, %v1794_v14 }
 0x342   : > { %v1993_v33 = vand.u32 2147483647, %v1794_v14  ;;  %vm1989_vm4 = vweird.f32 %v1794_v14 }
 0x343   : > { %v1700_v9 = vmul.f32 1.442695, %v1618_v6  ;;  %1562 = vmax.xlane.f32.xlu0 %v1561_v25  ;;  %v7394_v34 = vpop.eup %5880  ;;  %v1486_v25 = vsel %vm1407_vm2, %v7306_v28, -inf }
 0x344   : > { %v1843_v30 = vsel %vm1407_vm2, %v7394_v34, 0.0  ;;  %vm1994_vm6 = vcmp.eq.f32.partialorder %v1993_v33, 8.507059e+37 }
 0x345   : > { %5884 = vpow2.f32 %v1700_v9  ;;  %1844 = vadd.xlane.f32.xlu1 %v1843_v30  ;;  %v1620_v30 = vsub.f32 %v7207_v31, %v1470_v19 }
 0x346   : > { %5886 = vpow2.f32 %v1696_v43 }
 0x347   : > { %v5883_v12 = vpop.eup %5882 }
 0x348   : > { %v1985_v16 = vmul.f32 %v5883_v12, %v1794_v14  ;;  %v7399_v22 = vpop.xlane.xlu0 %1511  ;;  %vm1990_vm3 = vweird.f32 %v5883_v12  ;;  %v7423_v14 = vpop.xlane.xlu1 %1526 }
 0x349   : > { %v7401_v60 = vpop.xlane.xlu2 %1514  ;;  %vm1991_vm5 = vmor %vm1989_vm4, %vm1990_vm3  ;;  %9934 = vst [vmem:[#allocation50_spill] sm:$0xff] %v7423_v14 }
 0x34a   : > { %9931 = vst [vmem:[#allocation47_spill] sm:$0xff] %v7401_v60  ;;  %v1986_v15 = vsub.f32 1.0, %v1985_v16  ;;  %v7410_v16 = vpop.f32.mrf.mxu0  ;;  %v1996_v60 = vor.u32 1.1754944e-38, %v1995_v59  ;;  %v1633_v59 = vsub.f32 %v7182_v56, %v7367_v48  ;;  %v1619_v48 = vsub.f32 %v7234_v40, %v7390_v52 }
 0x34b   : > { %v7405_v6 = vpop.eup %5884  ;;  %1487 = vmax.xlane.f32.xlu0 %v1486_v25  ;;  %9933 = vst [vmem:[#allocation49_spill] sm:$0xff] %v7410_v16  ;;  %v1704_v25 = vmul.f32 1.442695, %v1620_v30  ;;  %v1564_v43 = vsel %vm1407_vm2, %v7410_v16, -inf }
 0x34c   : > { %9932 = vst [vmem:[#allocation48_spill] sm:$0xff] %v7405_v6  ;;  %v1987_v9 = vmul.f32 %v5883_v12, %v1986_v15  ;;  %v1846_v55 = vsel %vm1407_vm2, %v7405_v6, 0.0  ;;  %v7417_v31 = vpop.eup %5886 }
 0x34d   : > { %1847 = vadd.xlane.f32.xlu1 %v1846_v55  ;;  %v1489_v55 = vsel %vm1407_vm2, %v7320_v23, -inf }
 0x34e   : > { %v1988_v37 = vadd.f32 %v5883_v12, %v1987_v9 }
 0x350   : > { %v1992_v7 = vsel %vm1991_vm5, %v5883_v12, %v1988_v37  ;;  %v1797_v18 = vpop.xlane.xlu0 %1796  ;;  %v7442_v23 = vpop.xlane.xlu1 %1805 }
 0x351   : > { %v7412_v15 = vpop.xlane.xlu2 %1799  ;;  %v1997_v1 = vsel %vm1994_vm6, %v1996_v60, %v1992_v7  ;;  %5888 = vrcp.f32 %v1797_v18  ;;  %v1840_v7 = vsel %vm1407_vm2, %v7417_v31, 0.0  ;;  %vm2003_vm8 = vweird.f32 %v1797_v18 }
 0x352   : > { %v2880_v19 = vmul.f32 %v7227_v8, %v1997_v1  ;;  %5890 = vrcp.f32 %v7412_v15  ;;  %v1730_v1 = vmul.f32 1.442695, %v1633_v59  ;;  %vm2017_vm12 = vweird.f32 %v7412_v15 }
 0x353   : > { %1565 = vmax.xlane.f32.xlu0 %v1564_v43  ;;  %5892 = vpow2.f32 %v1704_v25  ;;  %v2009_v25 = vand.u32 2147483648, %v1797_v18  ;;  %v7436_v43 = vpop.f32.mrf.mxu0 }
 0x354   : > { %5514 = vmatmul.msk.f32.vlgmr.msra.gmra.mxu2 %vm1407_vm2, %v2880_v19  ;;  %5894 = vpow2.f32 %v1730_v1 }
 0x355   : > { %v2010_v40 = vor.u32 1.1754944e-38, %v2009_v25  ;;  %5896 = vrcp.f32 %v7442_v23 }
 0x357   : > { %1841 = vadd.xlane.f32.xlu2 %v1840_v7  ;;  %v5889_v60 = vpop.eup %5888  ;;  %v2007_v7 = vand.u32 2147483647, %v1797_v18 }
 0x358   : > { %v5891_v12 = vpop.eup %5890  ;;  %v1999_v8 = vmul.f32 %v5889_v60, %v1797_v18  ;;  %v7438_v19 = vpop.xlane.xlu0 %1475  ;;  %vm2004_vm7 = vweird.f32 %v5889_v60 }
 0x359   : > { %v7427_v9 = vpop.xlane.xlu2 %1478  ;;  %v2013_v33 = vmul.f32 %v5891_v12, %v7412_v15  ;;  %v7432_v30 = vpop.eup %5892  ;;  %vm2005_vm9 = vmor %vm2003_vm8, %vm2004_vm7  ;;  %vm2008_vm10 = vcmp.eq.f32.partialorder %v2007_v7, 8.507059e+37  ;;  %vm2018_vm11 = vweird.f32 %v5891_v12  ;;  %vm2045_vm7 = vweird.f32 %v7442_v23 }
 0x35a   : > { %v2000_v56 = vsub.f32 1.0, %v1999_v8  ;;  %v1852_v14 = vsel %vm1407_vm2, %v7432_v30, 0.0  ;;  %vm2019_vm13 = vmor %vm2017_vm12, %vm2018_vm11 }
 0x35b   : > { %1490 = vmax.xlane.f32.xlu0 %v1489_v55  ;;  %v2014_v37 = vsub.f32 1.0, %v2013_v33  ;;  %v1702_v55 = vmul.f32 1.442695, %v1619_v48  ;;  %v7460_v7 = vpop.f32.mrf.mxu0 }
 0x35c   : > { %v2001_v59 = vmul.f32 %v5889_v60, %v2000_v56  ;;  %v1567_v56 = vsel %vm1407_vm2, %v7436_v43, -inf }
 0x35d   : > { %v2015_v16 = vmul.f32 %v5891_v12, %v2014_v37  ;;  %v2023_v37 = vand.u32 2147483648, %v7412_v15  ;;  %5898 = vpow2.f32 %v1702_v55 }
 0x35e   : > { %v2002_v8 = vadd.f32 %v5889_v60, %v2001_v59 }
 0x35f   : > { %1853 = vadd.xlane.f32.xlu2 %v1852_v14  ;;  %v2016_v33 = vadd.f32 %v5891_v12, %v2015_v16  ;;  %v7449_v14 = vpop.eup %5894  ;;  %v5760_v16 = vpack.i.bf16 %v6507_v61, %v9896_v17  ;;  %v2024_v59 = vor.u32 1.1754944e-38, %v2023_v37  ;;  %v1621_v61 = vsub.f32 %v7217_v54, %v7380_v38 }
 0x360   : > { %v2006_v1 = vsel %vm2005_vm9, %v5889_v60, %v2002_v8  ;;  %v2021_v60 = vand.u32 2147483647, %v7412_v15  ;;  %v1891_v25 = vsel %vm1407_vm2, %v7449_v14, 0.0  ;;  %v7462_v8 = vpop.xlane.xlu0 %1808  ;;  %v1570_v15 = vsel %vm1407_vm2, %v7460_v7, -inf }
 0x361   : > { %v7444_v52 = vpop.xlane.xlu2 %1517  ;;  %v2011_v6 = vsel %vm2008_vm10, %v2010_v40, %v2006_v1  ;;  %v2020_v48 = vsel %vm2019_vm13, %v5891_v12, %v2016_v33  ;;  %v9935_v1 = vld [vmem:[#allocation2_spill] sm:$0xff]  ;;  %vm2059_vm11 = vweird.f32 %v7462_v8 }
 0x362   : > { %v2881_v18 = vmul.f32 %v7258_v49, %v2011_v6  ;;  %vm2022_vm14 = vcmp.eq.f32.partialorder %v2021_v60, 8.507059e+37  ;;  %v7465_v6 = vpop.eup %5896  ;;  %v5765_v33 = vpack.i.bf16 %v9935_v1, %v9893_v32 }
 0x363   : > { %1568 = vmax.xlane.f32.xlu0 %v1567_v56  ;;  %v2025_v49 = vsel %vm2022_vm14, %v2024_v59, %v2020_v48  ;;  %v7471_v12 = vpop.eup %5898  ;;  %v2041_v40 = vmul.f32 %v7465_v6, %v7442_v23  ;;  %v1706_v56 = vmul.f32 1.442695, %v1621_v61  ;;  %v1498_v48 = vsel %vm1407_vm2, %v7352_v24, -inf }
 0x364   : > { %5515 = vmatmul.msk.f32.gmra.mxu2 %vm1407_vm2, %v2881_v18  ;;  %v2882_v55 = vmul.f32 %v7264_v53, %v2025_v49  ;;  %v1849_v54 = vsel %vm1407_vm2, %v7471_v12, 0.0  ;;  %v1622_v53 = vsub.f32 %v7260_v35, %v7438_v19  ;;  %v5770_v49 = vpack.i.bf16 %v6532_v3, %v9894_v57 }
 0x365   : > { %v2042_v37 = vsub.f32 1.0, %v2041_v40  ;;  %v1623_v57 = vsub.f32 %v7277_v50, %v7427_v9  ;;  %vm2046_vm5 = vweird.f32 %v7465_v6 }
 0x366   : > { %5761 = vrot.lane.b32.xlu1 %v5760_v16, %s6208_s30  ;;  %v1708_v61 = vmul.f32 1.442695, %v1622_v53  ;;  %vm2047_vm8 = vmor %vm2045_vm7, %vm2046_vm5 }
 0x367   : > { %1892 = vadd.xlane.f32.xlu2 %v1891_v25  ;;  %v7493_v25 = vpop.f32.mrf.mxu0  ;;  %v2043_v19 = vmul.f32 %v7465_v6, %v2042_v37 }
 0x368   : > { %v7485_v18 = vpop.xlane.xlu0 %1481  ;;  %v1573_v1 = vsel %vm1407_vm2, %v7493_v25, -inf }
 0x369   : > { %v1803_v17 = vpop.xlane.xlu2 %1802 }
 0x36a   : > { %5900 = vrcp.f32 %v1803_v17  ;;  %v2037_v35 = vand.u32 2147483648, %v1803_v17  ;;  %v2035_v40 = vand.u32 2147483647, %v1803_v17  ;;  %vm2031_vm3 = vweird.f32 %v1803_v17 }
 0x36b   : > { %1571 = vmax.xlane.f32.xlu0 %v1570_v15  ;;  %5902 = vrcp.f32 %v7462_v8 }
 0x36c   : > { %5516 = vmatmul.msk.f32.gmra.mxu2 %vm1407_vm2, %v2882_v55  ;;  %5904 = vpow2.f32 %v1706_v56  ;;  %v1554_v56 = vpop.xlane.xlu1 %1553  ;;  %vm2036_vm6 = vcmp.eq.f32.partialorder %v2035_v40, 8.507059e+37 }
 0x36d   : > { %5906 = vpow2.f32 %v1708_v61  ;;  %v7514_v61 = vpop.f32.mrf.mxu3 }
 0x36e   : > { %5766 = vrot.lane.b32.xlu1 %v5765_v33, %s6208_s30  ;;  %v1531_v40 = vsel %vm1407_vm2, %v7514_v61, -inf }
 0x36f   : > { %1850 = vadd.xlane.f32.xlu2 %v1849_v54  ;;  %v2038_v54 = vor.u32 1.1754944e-38, %v2037_v35  ;;  %v1710_v35 = vmul.f32 1.442695, %v1623_v57 }
 0x370   : > { %v5901_v38 = vpop.eup %5900  ;;  %v7516_v50 = vpop.xlane.xlu0 %1559 }
 0x371   : > { %v2027_v60 = vmul.f32 %v5901_v38, %v1803_v17  ;;  %v7487_v16 = vpop.xlane.xlu2 %1520  ;;  %v7489_v32 = vpop.eup %5902  ;;  %vm2032_vm15 = vweird.f32 %v5901_v38  ;;  %v2051_v17 = vand.u32 2147483648, %v7442_v23  ;;  %5908 = vpow2.f32 %v1710_v35 }
 0x372   : > { %v2055_v15 = vmul.f32 %v7489_v32, %v7462_v8  ;;  %v7502_v33 = vpop.eup %5904  ;;  %vm2033_vm4 = vmor %vm2031_vm3, %vm2032_vm15  ;;  %vm2060_vm10 = vweird.f32 %v7489_v32 }
 0x373   : > { %v2028_v59 = vsub.f32 1.0, %v2027_v60  ;;  %1499 = vmax.xlane.f32.xlu0 %v1498_v48  ;;  %v2044_v48 = vadd.f32 %v7465_v6, %v2043_v19  ;;  %vm2061_vm12 = vmor %vm2059_vm11, %vm2060_vm10 }
 0x374   : > { %v2056_v37 = vsub.f32 1.0, %v2055_v15 }
 0x375   : > { %v2029_v55 = vmul.f32 %v5901_v38, %v2028_v59  ;;  %v1855_v59 = vsel %vm1407_vm2, %v7502_v33, 0.0  ;;  %v2048_v19 = vsel %vm2047_vm8, %v7465_v6, %v2044_v48 }
 0x376   : > { %5771 = vrot.lane.b32.xlu1 %v5770_v49, %s6208_s30  ;;  %v2057_v15 = vmul.f32 %v7489_v32, %v2056_v37  ;;  %v2065_v37 = vand.u32 2147483648, %v7462_v8 }
 0x377   : > { %1574 = vmax.xlane.f32.xlu2 %v1573_v1  ;;  %v2030_v3 = vadd.f32 %v5901_v38, %v2029_v55  ;;  %v7526_v55 = vpop.eup %5906  ;;  %v7530_v1 = vpop.xlane.xlu1 %1529 }
 0x378   : > { %v1858_v6 = vsel %vm1407_vm2, %v7526_v55, 0.0 }
 0x379   : > { %v7508_v53 = vpop.xlane.xlu2 %1556  ;;  %v2034_v60 = vsel %vm2033_vm4, %v5901_v38, %v2030_v3  ;;  %v2049_v38 = vand.u32 2147483647, %v7442_v23  ;;  %v1648_v3 = vsub.f32 %v7275_v63, %v1554_v56  ;;  %v2063_v63 = vand.u32 2147483647, %v7462_v8 }
 0x37a   : > { %v2039_v49 = vsel %vm2036_vm6, %v2038_v54, %v2034_v60  ;;  %v2058_v54 = vadd.f32 %v7489_v32, %v2057_v15 }
 0x37b   : > { %1856 = vadd.xlane.f32.xlu0 %v1855_v59  ;;  %v2883_v9 = vmul.f32 %v7302_v47, %v2039_v49  ;;  %v2052_v47 = vor.u32 1.1754944e-38, %v2051_v17  ;;  %vm2050_vm9 = vcmp.eq.f32.partialorder %v2049_v38, 8.507059e+37  ;;  %v1760_v59 = vmul.f32 1.442695, %v1648_v3 }
 0x37c   : > { %v2062_v49 = vsel %vm2061_vm12, %v7489_v32, %v2058_v54  ;;  %v2066_v17 = vor.u32 1.1754944e-38, %v2065_v37  ;;  %vm2064_vm13 = vcmp.eq.f32.partialorder %v2063_v63, 8.507059e+37 }
 0x37d   : > { %5517 = vmatmul.msk.f32.gmra.mxu2 %vm1407_vm2, %v2883_v9  ;;  %v2053_v23 = vsel %vm2050_vm9, %v2052_v47, %v2048_v19  ;;  %v7543_v9 = vpop.eup %5908 }
 0x37e   : > { %v2884_v48 = vmul.f32 %v7262_v11, %v2053_v23  ;;  %v2067_v35 = vsel %vm2064_vm13, %v2066_v17, %v2062_v49  ;;  %v1610_v11 = vsub.f32 %v7102_v41, %v7363_v20 }
 0x37f   : > { %1532 = vmax.xlane.f32.xlu2 %v1531_v40  ;;  %v7547_v19 = vpop.xlane.xlu1 %1817  ;;  %v1861_v40 = vsel %vm1407_vm2, %v7543_v9, 0.0  ;;  %v2885_v47 = vmul.f32 %v7288_v46, %v2067_v35 }
 0x380   : > { %v1684_v3 = vmul.f32 1.442695, %v1610_v11  ;;  %vm2101_vm9 = vweird.f32 %v7547_v19 }
 0x381   : > { %v1812_v57 = vpop.xlane.xlu2 %1811 }
 0x382   : > { %5910 = vrcp.f32 %v1812_v57  ;;  %v2079_v23 = vand.u32 2147483648, %v1812_v57  ;;  %v2077_v41 = vand.u32 2147483647, %v1812_v57  ;;  %vm2073_vm15 = vweird.f32 %v1812_v57 }
 0x383   : > { %1859 = vadd.xlane.f32.xlu0 %v1858_v6  ;;  %v5757_v60 = vpop.permute.xlu0 %5756  ;;  %5912 = vpow2.f32 %v1760_v59  ;;  %v1624_v6 = vsub.f32 %v7282_v62, %v7485_v18 }
 0x384   : > { %v5758_v56 = vunpack.i.l.bf16 %v5757_v60  ;;  %v2080_v63 = vor.u32 1.1754944e-38, %v2079_v23  ;;  %vm2078_vm4 = vcmp.eq.f32.partialorder %v2077_v41, 8.507059e+37 }
 0x385   : > { %5518 = vmatmul.msk.f32.gmra.mxu2 %vm1407_vm2, %v2884_v48 }
 0x386   : > { %3359 = vmatpush.msrb.mxu2 %v5758_v56 }
 0x388   : > { %v5911_v38 = vpop.eup %5910 }
 0x389   : > { %v2069_v8 = vmul.f32 %v5911_v38, %v1812_v57  ;;  %v1815_v15 = vpop.xlane.xlu2 %1814  ;;  %vm2074_vm14 = vweird.f32 %v5911_v38  ;;  %v7553_v20 = vpop.eup %5912  ;;  %v5759_v57 = vunpack.i.h.bf16 %v5757_v60 }
 0x38a   : > { %5914 = vrcp.f32 %v1815_v15  ;;  %9936 = vst [vmem:[#allocation2_spill] sm:$0xff] %v7553_v20  ;;  %vm2075_vm3 = vmor %vm2073_vm15, %vm2074_vm14  ;;  %v1936_v35 = vsel %vm1407_vm2, %v7553_v20, 0.0  ;;  %vm2087_vm6 = vweird.f32 %v1815_v15 }
 0x38b   : > { %v2070_v32 = vsub.f32 1.0, %v2069_v8  ;;  %1862 = vadd.xlane.f32.xlu0 %v1861_v40  ;;  %5916 = vpow2.f32 %v1684_v3  ;;  %v1712_v8 = vmul.f32 1.442695, %v1624_v6  ;;  %v7559_v40 = vpop.xlane.xlu1 %1820  ;;  %v1634_v3 = vsub.f32 %v7202_v39, %v7399_v22 }
 0x38d   : > { %5519 = vmatmul.msk.f32.gmra.mxu2 %vm1407_vm2, %v2885_v47  ;;  %v2071_v54 = vmul.f32 %v5911_v38, %v2070_v32  ;;  %v2093_v32 = vand.u32 2147483648, %v1815_v15  ;;  %v2091_v47 = vand.u32 2147483647, %v1815_v15  ;;  %5918 = vpow2.f32 %v1712_v8 }
 0x38e   : > { %v1732_v6 = vmul.f32 1.442695, %v1634_v3 }
 0x38f   : > { %v2072_v37 = vadd.f32 %v5911_v38, %v2071_v54  ;;  %v2094_v60 = vor.u32 1.1754944e-38, %v2093_v32  ;;  %vm2092_vm8 = vcmp.eq.f32.partialorder %v2091_v47, 8.507059e+37 }
 0x390   : > { %v5915_v48 = vpop.eup %5914  ;;  %5920 = vpow2.f32 %v1732_v6 }
 0x391   : > { %v2083_v56 = vmul.f32 %v5915_v48, %v1815_v15  ;;  %v5752_v46 = vpop.permute.xlu2 %5751  ;;  %v2076_v59 = vsel %vm2075_vm3, %v5911_v38, %v2072_v37  ;;  %vm2088_vm5 = vweird.f32 %v5915_v48  ;;  %v7563_v23 = vpop.eup %5916 }
 0x392   : > { %v5754_v49 = vunpack.i.h.bf16 %v5752_v46  ;;  %v5753_v17 = vunpack.i.l.bf16 %v5752_v46  ;;  %v2081_v11 = vsel %vm2078_vm4, %v2080_v63, %v2076_v59  ;;  %vm2089_vm7 = vmor %vm2087_vm6, %vm2088_vm5  ;;  %v1822_v41 = vsel %vm1407_vm2, %v7563_v23, 0.0 }
 0x393   : > { %v2084_v62 = vsub.f32 1.0, %v2083_v56  ;;  %1937 = vadd.xlane.f32.xlu0 %v1936_v35  ;;  %v2886_v18 = vmul.f32 %v7335_v27, %v2081_v11  ;;  %v7570_v56 = vpop.eup %5918  ;;  %v7572_v46 = vpop.xlane.xlu1 %1493  ;;  %v1649_v35 = vsub.f32 %v7297_v0, %v7508_v53  ;;  %v5790_v0 = vpack.i.bf16 %v9886_v29, %v6557_v10 }
 0x394   : > { %3094 = vmatpush.msra.mxu3 %v5753_v17  ;;  %3267 = vmatpush.msra.mxu1 %v5754_v49  ;;  %9937 = vst [vmem:[#allocation51_spill] sm:$0xff] %v7570_v56  ;;  %v1864_v39 = vsel %vm1407_vm2, %v7570_v56, 0.0 }
 0x395   : > { %5520 = vmatmul.msk.f32.gmra.mxu2 %vm1407_vm2, %v2886_v18  ;;  %v2085_v38 = vmul.f32 %v5915_v48, %v2084_v62  ;;  %v1762_v8 = vmul.f32 1.442695, %v1649_v35  ;;  %v5780_v35 = vpack.i.bf16 %v9887_v51, %v6455_v45 }
 0x396   : > { %3095 = vmatpush.msra.mxu3 %v5759_v57  ;;  %v7577_v22 = vpop.eup %5920 }
 0x397   : > { %v2086_v54 = vadd.f32 %v5915_v48, %v2085_v38  ;;  %9938 = vst [vmem:[#allocation52_spill] sm:$0xff] %v7577_v22 }
 0x399   : > { %v2090_v27 = vsel %vm2089_vm7, %v5915_v48, %v2086_v54  ;;  %v1894_v48 = vsel %vm1407_vm2, %v7577_v22, 0.0  ;;  %vm2115_vm7 = vweird.f32 %v7559_v40 }
 0x39a   : > { %v2095_v37 = vsel %vm2092_vm8, %v2094_v60, %v2090_v27 }
 0x39b   : > { %1823 = vadd.xlane.f32.xlu0 %v1822_v41  ;;  %v2887_v63 = vmul.f32 %v7348_v26, %v2095_v37  ;;  %v7579_v15 = vpop.xlane.xlu1 %1496  ;;  %v5775_v26 = vpack.i.bf16 %v9892_v13, %v9891_v21 }
 0x39d   : > { %5521 = vmatmul.msk.f32.gmra.mxu2 %vm1407_vm2, %v2887_v63 }
 0x3a0   : > { %1865 = vadd.xlane.f32.xlu1 %v1864_v39 }
 0x3a3   : > { %v7585_v49 = vpop.xlane.xlu1 %1502 }
 0x3a4   : > { %9939 = vst [vmem:[#allocation53_spill] sm:$0xff] %v7585_v49 }
 0x3a8   : > { %1895 = vadd.xlane.f32.xlu1 %v1894_v48  ;;  %v7632_v48 = vpop.f32.mrf.mxu1 }
 0x3ab   : > { %v7595_v57 = vpop.xlane.xlu1 %1889 }
 0x3ae   : > { %v1485_v59 = vpop.xlane.xlu0 %1484 }
 0x3af   : > { %v1625_v17 = vsub.f32 %v7291_v5, %v1485_v59  ;;  %5776 = vrot.lane.b32.xlu0 %v5775_v26, %s6208_s30 }
 0x3b1   : > { %v1714_v11 = vmul.f32 1.442695, %v1625_v17 }
 0x3b3   : > { %5922 = vpow2.f32 %v1714_v11 }
 0x3b4   : > { %5924 = vpow2.f32 %v1762_v8 }
 0x3b5   : > { %5926 = vrcp.f32 %v7547_v19 }
 0x3b6   : > { %v7591_v62 = vpop.xlane.xlu0 %1562 }
 0x3b8   : > { %v7605_v53 = vpop.xlane.xlu1 %1844 }
 0x3b9   : > { %v7593_v18 = vpop.eup %5922  ;;  %5928 = vrcp.f32 %v7605_v53  ;;  %vm2227_vm4 = vweird.f32 %v7605_v53 }
 0x3ba   : > { %9940 = vst [vmem:[#allocation54_spill] sm:$0xff] %v7593_v18  ;;  %v1867_v21 = vsel %vm1407_vm2, %v7593_v18, 0.0  ;;  %v7601_v5 = vpop.eup %5924  ;;  %5930 = vrcp.f32 %v7559_v40 }
 0x3bb   : > { %1868 = vadd.xlane.f32.xlu2 %v1867_v21  ;;  %9941 = vst [vmem:[#allocation55_spill] sm:$0xff] %v7601_v5  ;;  %v1939_v38 = vsel %vm1407_vm2, %v7601_v5, 0.0  ;;  %v7614_v47 = vpop.eup %5926 }
 0x3bc   : > { %v2097_v29 = vmul.f32 %v7614_v47, %v7547_v19  ;;  %vm2102_vm11 = vweird.f32 %v7614_v47 }
 0x3bd   : > { %vm7662_vm15 = vmor %vm2101_vm9, %vm2102_vm11 }
 0x3be   : > { %v7599_v13 = vpop.xlane.xlu0 %1487  ;;  %v2098_v41 = vsub.f32 1.0, %v2097_v29  ;;  %v1576_v29 = vsel %vm1407_vm2, %v7632_v48, -inf }
 0x3bf   : > { %v7616_v54 = vpop.eup %5928  ;;  %v1626_v20 = vsub.f32 %v7306_v28, %v7599_v13 }
 0x3c0   : > { %v7619_v10 = vpop.xlane.xlu1 %1847  ;;  %v2223_v27 = vmul.f32 %v7616_v54, %v7605_v53  ;;  %v7628_v6 = vpop.eup %5930  ;;  %v2099_v17 = vmul.f32 %v7614_v47, %v2098_v41  ;;  %vm2228_vm13 = vweird.f32 %v7616_v54 }
 0x3c1   : > { %5791 = vrot.lane.b32.xlu1 %v5790_v0, %s6208_s30  ;;  %v2111_v11 = vmul.f32 %v7628_v6, %v7559_v40  ;;  %vm7678_vm5 = vmor %vm2227_vm4, %vm2228_vm13  ;;  %vm2116_vm9 = vweird.f32 %v7628_v6 }
 0x3c2   : > { %v2224_v63 = vsub.f32 1.0, %v2223_v27  ;;  %v2100_v51 = vadd.f32 %v7614_v47, %v2099_v17  ;;  %vm7711_vm11 = vmor %vm2115_vm7, %vm2116_vm9 }
 0x3c3   : > { %1940 = vadd.xlane.f32.xlu2 %v1939_v38  ;;  %v2112_v5 = vsub.f32 1.0, %v2111_v11 }
 0x3c4   : > { %v2225_v21 = vmul.f32 %v7616_v54, %v2224_v63  ;;  %v2107_v63 = vand.u32 2147483648, %v7547_v19 }
 0x3c6   : > { %v7612_v32 = vpop.xlane.xlu0 %1565 }
 0x3ca   : > { %v1842_v3 = vpop.xlane.xlu2 %1841 }
 0x3cb   : > { %5932 = vrcp.f32 %v1842_v3  ;;  %v2219_v0 = vand.u32 2147483648, %v1842_v3  ;;  %v2217_v45 = vand.u32 2147483647, %v1842_v3  ;;  %vm2213_vm12 = vweird.f32 %v1842_v3 }
 0x3cc   : > { %5934 = vrcp.f32 %v7619_v10 }
 0x3cd   : > { %vm2218_vm3 = vcmp.eq.f32.partialorder %v2217_v45, 8.507059e+37 }
 0x3ce   : > { %v7626_v60 = vpop.xlane.xlu0 %1490 }
 0x3d1   : > { %v5933_v37 = vpop.eup %5932 }
 0x3d2   : > { %v7630_v39 = vpop.xlane.xlu2 %1853  ;;  %v2209_v26 = vmul.f32 %v5933_v37, %v1842_v3  ;;  %v7634_v59 = vpop.eup %5934  ;;  %vm2214_vm10 = vweird.f32 %v5933_v37  ;;  %v2226_v3 = vadd.f32 %v7616_v54, %v2225_v21  ;;  %v1612_v21 = vsub.f32 %v7134_v44, %v7359_v36  ;;  %v9952_v44 = vld [vmem:[#allocation48_spill] sm:$0xff] }
 0x3d3   : > { %v2237_v27 = vmul.f32 %v7634_v59, %v7619_v10  ;;  %vm2215_vm14 = vmor %vm2213_vm12, %vm2214_vm10  ;;  %5936 = vrcp.f32 %v7630_v39  ;;  %vm2242_vm10 = vweird.f32 %v7634_v59  ;;  %vm2241_vm12 = vweird.f32 %v7619_v10 }
 0x3d4   : > { %v2210_v8 = vsub.f32 1.0, %v2209_v26  ;;  %v2105_v26 = vand.u32 2147483647, %v7547_v19  ;;  %vm7724_vm13 = vmor %vm2241_vm12, %vm2242_vm10 }
 0x3d5   : > { %v2238_v28 = vsub.f32 1.0, %v2237_v27 }
 0x3d6   : > { %v7643_v38 = vpop.xlane.xlu0 %1568  ;;  %v2211_v41 = vmul.f32 %v5933_v37, %v2210_v8  ;;  %v2220_v8 = vor.u32 1.1754944e-38, %v2219_v0  ;;  %v2233_v0 = vand.u32 2147483648, %v7605_v53  ;;  %vm2106_vm6 = vcmp.eq.f32.partialorder %v2105_v26, 8.507059e+37 }
 0x3d8   : > { %v2212_v18 = vadd.f32 %v5933_v37, %v2211_v41  ;;  %v5762_v56 = vpop.permute.xlu1 %5761 }
 0x3d9   : > { %1577 = vmax.xlane.f32.xlu0 %v1576_v29  ;;  %v5764_v49 = vunpack.i.h.bf16 %v5762_v56  ;;  %v5763_v17 = vunpack.i.l.bf16 %v5762_v56  ;;  %v2104_v56 = vsel %vm7662_vm15, %v7614_v47, %v2100_v51  ;;  %v1716_v47 = vmul.f32 1.442695, %v1626_v20  ;;  %v7703_v11 = vpop.eup %5936 }
 0x3da   : > { %v7656_v22 = vpop.xlane.xlu2 %1892  ;;  %v2216_v13 = vsel %vm2215_vm14, %v5933_v37, %v2212_v18  ;;  %v2231_v18 = vand.u32 2147483647, %v7605_v53  ;;  %v2113_v37 = vmul.f32 %v7628_v6, %v2112_v5  ;;  %v5785_v5 = vpack.i.bf16 %v6497_v58, %v9889_v4 }
 0x3db   : > { %5781 = vrot.lane.b32.xlu2 %v5780_v35, %s6208_s30  ;;  %v2221_v29 = vsel %vm2218_vm3, %v2220_v8, %v2216_v13  ;;  %3268 = vmatpush.msra.mxu1 %v5763_v17  ;;  %v2108_v35 = vor.u32 1.1754944e-38, %v2107_v63  ;;  %v2234_v53 = vor.u32 1.1754944e-38, %v2233_v0  ;;  %v2121_v51 = vand.u32 2147483648, %v7559_v40 }
 0x3dc   : > { %3360 = vmatpush.msrb.mxu2 %v5764_v49  ;;  %v2896_v19 = vmul.f32 %v7417_v31, %v2221_v29  ;;  %v2239_v49 = vmul.f32 %v7634_v59, %v2238_v28  ;;  %v2230_v31 = vsel %vm7678_vm5, %v7616_v54, %v2226_v3  ;;  %vm2232_vm8 = vcmp.eq.f32.partialorder %v2231_v18, 8.507059e+37 }
 0x3dd   : > { %v2109_v41 = vsel %vm2106_vm6, %v2108_v35, %v2104_v56  ;;  %v2114_v45 = vadd.f32 %v7628_v6, %v2113_v37  ;;  %5938 = vpow2.f32 %v1716_v47  ;;  %v2235_v54 = vsel %vm2232_vm8, %v2234_v53, %v2230_v31 }
 0x3de   : > { %v7683_v27 = vpop.xlane.xlu0 %1571  ;;  %5530 = vmatmul.msk.f32.vlgmr.msrb.gmra.mxu0 %vm1407_vm2, %v2896_v19  ;;  %v2888_v58 = vmul.f32 %v7312_v2, %v2109_v41  ;;  %v2119_v4 = vand.u32 2147483647, %v7559_v40  ;;  %v2240_v17 = vadd.f32 %v7634_v59, %v2239_v49  ;;  %v2247_v28 = vand.u32 2147483648, %v7619_v10 }
 0x3df   : > { %v2897_v2 = vmul.f32 %v7394_v34, %v2235_v54  ;;  %v2118_v3 = vsel %vm7711_vm11, %v7628_v6, %v2114_v45  ;;  %v2245_v56 = vand.u32 2147483647, %v7619_v10  ;;  %v2122_v29 = vor.u32 1.1754944e-38, %v2121_v51  ;;  %v9951_v45 = vld [vmem:[#allocation12_spill] sm:$0xff] }
 0x3e0   : > { %v5767_v20 = vpop.permute.xlu1 %5766  ;;  %v2265_v19 = vmul.f32 %v7703_v11, %v7630_v39  ;;  %vm2120_vm14 = vcmp.eq.f32.partialorder %v2119_v4, 8.507059e+37  ;;  %v2244_v34 = vsel %vm7724_vm13, %v7634_v59, %v2240_v17  ;;  %v2248_v6 = vor.u32 1.1754944e-38, %v2247_v28  ;;  %v7752_v4 = vpop.f32.mrf.mxu1 }
 0x3e1   : > { %v5769_v26 = vunpack.i.h.bf16 %v5767_v20  ;;  %v5768_v63 = vunpack.i.l.bf16 %v5767_v20  ;;  %v2123_v18 = vsel %vm2120_vm14, %v2122_v29, %v2118_v3  ;;  %vm2246_vm15 = vcmp.eq.f32.partialorder %v2245_v56, 8.507059e+37  ;;  %v9950_v20 = vld [vmem:[#allocation7_spill] sm:$0xff] }
 0x3e2   : > { %v7696_v8 = vpop.xlane.xlu2 %1850  ;;  %v2249_v31 = vsel %vm2246_vm15, %v2248_v6, %v2244_v34  ;;  %v2889_v59 = vmul.f32 %v7326_v42, %v2123_v18  ;;  %v5795_v51 = vpack.i.bf16 %v9951_v45, %v9950_v20  ;;  %v1579_v40 = vsel %vm1407_vm2, %v7752_v4, -inf  ;;  %v9954_v34 = vld [vmem:[#allocation8_spill] sm:$0xff]  ;;  %v9955_v6 = vld [vmem:[#allocation11_spill] sm:$0xff]  ;;  %v9958_v45 = vld [vmem:[#allocation46_spill] sm:$0xff] }
 0x3e3   : > { %5786 = vrot.lane.b32.xlu2 %v5785_v5, %s6208_s30  ;;  %5940 = vrcp.f32 %v7696_v8  ;;  %3096 = vmatpush.msra.mxu3 %v5769_v26  ;;  %v7736_v10 = vpop.eup %5938  ;;  %v2266_v5 = vsub.f32 1.0, %v2265_v19  ;;  %v2898_v36 = vmul.f32 %v9952_v44, %v2249_v31  ;;  %v2261_v54 = vand.u32 2147483648, %v7696_v8 }
 0x3e4   : > { %3534 = vmatpush.msra.mxu0 %v5768_v63  ;;  %5522 = vmatmul.msk.f32.vlgmr.msra.gmra.mxu3 %vm1407_vm2, %v2888_v58  ;;  %v1870_v41 = vsel %vm1407_vm2, %v7736_v10, 0.0  ;;  %v1688_v63 = vmul.f32 1.442695, %v1612_v21  ;;  %v2259_v28 = vand.u32 2147483647, %v7696_v8  ;;  %vm2255_vm4 = vweird.f32 %v7696_v8 }
 0x3e5   : > { %v2267_v42 = vmul.f32 %v7703_v11, %v2266_v5  ;;  %v2262_v56 = vor.u32 1.1754944e-38, %v2261_v54  ;;  %vm2270_vm6 = vweird.f32 %v7703_v11  ;;  %v5800_v18 = vpack.i.bf16 %v9955_v6, %v9954_v34  ;;  %v9962_v6 = vld [vmem:[#allocation17_spill] sm:$0xff] }
 0x3e6   : > { %v7728_v0 = vpop.xlane.xlu0 %1499  ;;  %5531 = vmatmul.msk.f32.gmra.mxu0 %vm1407_vm2, %v2897_v2  ;;  %v9953_v2 = vld [vmem:[#allocation38_spill] sm:$0xff]  ;;  %vm2260_vm7 = vcmp.eq.f32.partialorder %v2259_v28, 8.507059e+37  ;;  %vm2269_vm8 = vweird.f32 %v7630_v39  ;;  %v2273_v21 = vand.u32 2147483647, %v7630_v39 }
 0x3e7   : > { %v1627_v3 = vsub.f32 %v9953_v2, %v7626_v60  ;;  %v2268_v19 = vadd.f32 %v7703_v11, %v2267_v42  ;;  %vm2271_vm9 = vmor %vm2269_vm8, %vm2270_vm6 }
 0x3e8   : > { %v5772_v37 = vpop.permute.xlu1 %5771  ;;  %vm2274_vm10 = vcmp.eq.f32.partialorder %v2273_v21, 8.507059e+37  ;;  %v7803_v21 = vpop.f32.mrf.mxu3 }
 0x3e9   : > { %v5941_v35 = vpop.eup %5940  ;;  %v5774_v47 = vunpack.i.h.bf16 %v5772_v37  ;;  %v5773_v49 = vunpack.i.l.bf16 %v5772_v37  ;;  %v2272_v5 = vsel %vm2271_vm9, %v7703_v11, %v2268_v19 }
 0x3ea   : > { %v2251_v53 = vmul.f32 %v5941_v35, %v7696_v8  ;;  %vm2256_vm3 = vweird.f32 %v5941_v35  ;;  %v2275_v8 = vand.u32 2147483648, %v7630_v39  ;;  %v9957_v39 = vld [vmem:[#allocation37_spill] sm:$0xff] }
 0x3eb   : > { %1871 = vadd.xlane.f32.xlu1 %v1870_v41  ;;  %3269 = vmatpush.msra.mxu1 %v5773_v49  ;;  %vm2257_vm5 = vmor %vm2255_vm4, %vm2256_vm3  ;;  %v1718_v49 = vmul.f32 1.442695, %v1627_v3 }
 0x3ec   : > { %v2252_v26 = vsub.f32 1.0, %v2251_v53  ;;  %3361 = vmatpush.msrb.mxu2 %v5774_v47  ;;  %5523 = vmatmul.msk.f32.gmra.mxu3 %vm1407_vm2, %v2889_v59  ;;  %v2276_v41 = vor.u32 1.1754944e-38, %v2275_v8 }
 0x3ed   : > { %5796 = vrot.lane.b32.xlu0 %v5795_v51, %s6208_s30  ;;  %v1651_v51 = vsub.f32 %v9958_v45, %v7591_v62 }
 0x3ee   : > { %v7750_v58 = vpop.xlane.xlu0 %1856  ;;  %v2253_v17 = vmul.f32 %v5941_v35, %v2252_v26  ;;  %5532 = vmatmul.msk.f32.gmra.mxu0 %vm1407_vm2, %v2898_v36  ;;  %v2277_v26 = vsel %vm2274_vm10, %v2276_v41, %v2272_v5 }
 0x3ef   : > { %5942 = vrcp.f32 %v7750_v58  ;;  %v2289_v11 = vand.u32 2147483648, %v7750_v58  ;;  %v2287_v42 = vand.u32 2147483647, %v7750_v58  ;;  %vm2283_vm12 = vweird.f32 %v7750_v58 }
 0x3f0   : > { %v2254_v13 = vadd.f32 %v5941_v35, %v2253_v17  ;;  %5944 = vpow2.f32 %v1688_v63  ;;  %v2900_v17 = vmul.f32 %v7432_v30, %v2277_v26  ;;  %v9960_v30 = vld [vmem:[#allocation20_spill] sm:$0xff] }
 0x3f1   : > { %vm2288_vm14 = vcmp.eq.f32.partialorder %v2287_v42, 8.507059e+37 }
 0x3f2   : > { %v2258_v29 = vsel %vm2257_vm5, %v5941_v35, %v2254_v13  ;;  %v1766_v13 = vmul.f32 1.442695, %v1651_v51 }
 0x3f3   : > { %1580 = vmax.xlane.f32.xlu1 %v1579_v40  ;;  %v2263_v37 = vsel %vm2260_vm7, %v2262_v56, %v2258_v29  ;;  %v2290_v56 = vor.u32 1.1754944e-38, %v2289_v11  ;;  %v9959_v29 = vld [vmem:[#allocation41_spill] sm:$0xff] }
 0x3f4   : > { %v2899_v60 = vmul.f32 %v7471_v12, %v2263_v37  ;;  %v9956_v12 = vld [vmem:[#allocation43_spill] sm:$0xff]  ;;  %v1613_v19 = vsub.f32 %v9960_v30, %v9959_v29 }
 0x3f5   : > { %v5943_v47 = vpop.eup %5942  ;;  %5801 = vrot.lane.b32.xlu0 %v5800_v18, %s6208_s30  ;;  %v1611_v59 = vsub.f32 %v9957_v39, %v9956_v12 }
 0x3f6   : > { %v7772_v35 = vpop.xlane.xlu0 %1859  ;;  %v2279_v31 = vmul.f32 %v5943_v47, %v7750_v58  ;;  %5533 = vmatmul.msk.f32.gmra.mxu0 %vm1407_vm2, %v2899_v60  ;;  %v7777_v53 = vpop.eup %5944  ;;  %vm2284_vm11 = vweird.f32 %v5943_v47  ;;  %v9961_v58 = vld [vmem:[#allocation47_spill] sm:$0xff] }
 0x3f7   : > { %5946 = vrcp.f32 %v7772_v35  ;;  %v1828_v36 = vsel %vm1407_vm2, %v7777_v53, 0.0  ;;  %v1686_v63 = vmul.f32 1.442695, %v1611_v59  ;;  %vm2285_vm13 = vmor %vm2283_vm12, %vm2284_vm11  ;;  %v1635_v18 = vsub.f32 %v9962_v6, %v9961_v58 }
 0x3f8   : > { %v2280_v20 = vsub.f32 1.0, %v2279_v31  ;;  %5948 = vpow2.f32 %v1718_v49  ;;  %v1690_v31 = vmul.f32 1.442695, %v1613_v19  ;;  %v2301_v41 = vand.u32 2147483647, %v7772_v35 }
 0x3f9   : > { %v1734_v39 = vmul.f32 1.442695, %v1635_v18  ;;  %vm2297_vm3 = vweird.f32 %v7772_v35 }
 0x3fa   : > { %v2281_v44 = vmul.f32 %v5943_v47, %v2280_v20  ;;  %vm2302_vm5 = vcmp.eq.f32.partialorder %v2301_v41, 8.507059e+37  ;;  %v9966_v41 = vld [vmem:[#allocation10_spill] sm:$0xff] }
 0x3fb   : > { %1829 = vadd.xlane.f32.xlu1 %v1828_v36 }
 0x3fc   : > { %v2282_v54 = vadd.f32 %v5943_v47, %v2281_v44 }
 0x3fd   : > { %v5947_v28 = vpop.eup %5946 }
 0x3fe   : > { %v7790_v62 = vpop.xlane.xlu0 %1862  ;;  %v2293_v2 = vmul.f32 %v5947_v28, %v7772_v35  ;;  %5534 = vmatmul.msk.f32.gmra.mxu0 %vm1407_vm2, %v2900_v17  ;;  %v7795_v3 = vpop.eup %5948  ;;  %v2286_v40 = vsel %vm2285_vm13, %v5943_v47, %v2282_v54  ;;  %vm2298_vm15 = vweird.f32 %v5947_v28  ;;  %v2303_v47 = vand.u32 2147483648, %v7772_v35 }
 0x3ff   : > { %5950 = vrcp.f32 %v7790_v62  ;;  %v2291_v8 = vsel %vm2288_vm14, %v2290_v56, %v2286_v40  ;;  %v1873_v60 = vsel %vm1407_vm2, %v7795_v3, 0.0  ;;  %vm2299_vm4 = vmor %vm2297_vm3, %vm2298_vm15  ;;  %vm2311_vm7 = vweird.f32 %v7790_v62 }
 0x400   : > { %5952 = vpow2.f32 %v1686_v63  ;;  %v2294_v34 = vsub.f32 1.0, %v2293_v2  ;;  %v2901_v12 = vmul.f32 %v7502_v33, %v2291_v8  ;;  %v2304_v26 = vor.u32 1.1754944e-38, %v2303_v47  ;;  %v9963_v33 = vld [vmem:[#allocation36_spill] sm:$0xff]  ;;  %v7827_v2 = vpop.f32.mrf.mxu3 }
 0x401   : > { %5954 = vpow2.f32 %v1766_v13  ;;  %v1650_v35 = vsub.f32 %v9963_v33, %v7516_v50  ;;  %v2317_v13 = vand.u32 2147483648, %v7790_v62  ;;  %vm2437_vm15 = vweird.f32 %v7595_v57 }
 0x402   : > { %v2295_v37 = vmul.f32 %v5947_v28, %v2294_v34  ;;  %5956 = vpow2.f32 %v1690_v31 }
 0x403   : > { %1874 = vadd.xlane.f32.xlu1 %v1873_v60  ;;  %5958 = vpow2.f32 %v1734_v39  ;;  %v1764_v56 = vmul.f32 1.442695, %v1650_v35  ;;  %v2318_v34 = vor.u32 1.1754944e-38, %v2317_v13 }
 0x404   : > { %v2296_v5 = vadd.f32 %v5947_v28, %v2295_v37 }
 0x405   : > { %v5951_v49 = vpop.eup %5950 }
 0x406   : > { %v2307_v59 = vmul.f32 %v5951_v49, %v7790_v62  ;;  %v7810_v20 = vpop.xlane.xlu0 %1937  ;;  %v7812_v45 = vpop.eup %5952  ;;  %5535 = vmatmul.msk.f32.gmra.mxu0 %vm1407_vm2, %v2901_v12  ;;  %v2300_v36 = vsel %vm2299_vm4, %v5947_v28, %v2296_v5  ;;  %vm2312_vm6 = vweird.f32 %v5951_v49  ;;  %v2315_v28 = vand.u32 2147483647, %v7790_v62  ;;  %v9964_v62 = vld [vmem:[#allocation49_spill] sm:$0xff]  ;;  %v9965_v5 = vld [vmem:[#allocation44_spill] sm:$0xff] }
 0x407   : > { %v7815_v51 = vpop.eup %5954  ;;  %v2305_v63 = vsel %vm2302_vm5, %v2304_v26, %v2300_v36  ;;  %v1825_v42 = vsel %vm1407_vm2, %v7812_v45, 0.0  ;;  %vm2313_vm8 = vmor %vm2311_vm7, %vm2312_vm6  ;;  %v1652_v58 = vsub.f32 %v9964_v62, %v7612_v32  ;;  %v1614_v12 = vsub.f32 %v9966_v41, %v9965_v5  ;;  %v7852_v36 = vpop.xlane.xlu2 %1574 }
 0x408   : > { %v2308_v44 = vsub.f32 1.0, %v2307_v59  ;;  %v1945_v54 = vsel %vm1407_vm2, %v7815_v51, 0.0  ;;  %v2902_v50 = vmul.f32 %v7526_v55, %v2305_v63  ;;  %v7829_v29 = vpop.eup %5956  ;;  %vm2316_vm9 = vcmp.eq.f32.partialorder %v2315_v28, 8.507059e+37  ;;  %v7844_v31 = vpop.f32.mrf.mxu3 }
 0x409   : > { %v7832_v19 = vpop.eup %5958  ;;  %v1831_v6 = vsel %vm1407_vm2, %v7829_v29, 0.0  ;;  %v1768_v60 = vmul.f32 1.442695, %v1652_v58  ;;  %v7877_v41 = vpop.f32.mrf.mxu1  ;;  %vm2451_vm6 = vweird.f32 %v7656_v22 }
 0x40a   : > { %v2309_v11 = vmul.f32 %v5951_v49, %v2308_v44  ;;  %v1897_v18 = vsel %vm1407_vm2, %v7832_v19, 0.0 }
 0x40b   : > { %1946 = vadd.xlane.f32.xlu1 %v1945_v54  ;;  %v1534_v54 = vsel %vm1407_vm2, %v7803_v21, -inf }
 0x40c   : > { %v2310_v17 = vadd.f32 %v5951_v49, %v2309_v11  ;;  %1826 = vadd.xlane.f32.xlu2 %v1825_v42  ;;  %v1692_v11 = vmul.f32 1.442695, %v1614_v12 }
 0x40e   : > { %v1824_v40 = vpop.xlane.xlu0 %1823  ;;  %5536 = vmatmul.msk.f32.gmra.mxu0 %vm1407_vm2, %v2902_v50  ;;  %v2314_v30 = vsel %vm2313_vm8, %v5951_v49, %v2310_v17  ;;  %v9967_v50 = vld [vmem:[#allocation45_spill] sm:$0xff] }
 0x40f   : > { %5960 = vrcp.f32 %v1824_v40  ;;  %v2319_v55 = vsel %vm2316_vm9, %v2318_v34, %v2314_v30  ;;  %v2135_v39 = vand.u32 2147483648, %v1824_v40  ;;  %v2133_v26 = vand.u32 2147483647, %v1824_v40 }
 0x410   : > { %5962 = vpow2.f32 %v1764_v56  ;;  %v2903_v37 = vmul.f32 %v7543_v9, %v2319_v55  ;;  %v1540_v9 = vsel %vm1407_vm2, %v7844_v31, -inf  ;;  %vm2129_vm11 = vweird.f32 %v1824_v40  ;;  %v9968_v56 = vld [vmem:[#allocation16_spill] sm:$0xff]  ;;  %v9969_v55 = vld [vmem:[#allocation39_spill] sm:$0xff] }
 0x411   : > { %5964 = vpow2.f32 %v1768_v60  ;;  %v2136_v35 = vor.u32 1.1754944e-38, %v2135_v39  ;;  %vm2134_vm13 = vcmp.eq.f32.partialorder %v2133_v26, 8.507059e+37  ;;  %v9971_v60 = vld [vmem:[#allocation25_spill] sm:$0xff]  ;;  %v9972_v39 = vld [vmem:[#allocation32_spill] sm:$0xff] }
 0x412   : > { %5966 = vpow2.f32 %v1692_v11  ;;  %v9974_v11 = vld [vmem:[#allocation5_spill] sm:$0xff] }
 0x413   : > { %1832 = vadd.xlane.f32.xlu1 %v1831_v6  ;;  %v1628_v6 = vsub.f32 %v9969_v55, %v7572_v46  ;;  %5968 = vrcp.f32 %v7595_v57  ;;  %v7879_v46 = vpop.xlane.xlu1 %1865 }
 0x414   : > { %1898 = vadd.xlane.f32.xlu2 %v1897_v18  ;;  %v1537_v18 = vsel %vm1407_vm2, %v7827_v2, -inf }
 0x415   : > { %v5961_v8 = vpop.eup %5960 }
 0x416   : > { %v2125_v47 = vmul.f32 %v5961_v8, %v1824_v40  ;;  %5537 = vmatmul.msk.f32.gmra.mxu0 %vm1407_vm2, %v2903_v37  ;;  %v7842_v49 = vpop.eup %5962  ;;  %vm2130_vm10 = vweird.f32 %v5961_v8  ;;  %v1638_v40 = vsub.f32 %v9968_v56, %v9967_v50  ;;  %v9970_v37 = vld [vmem:[#allocation4_spill] sm:$0xff] }
 0x417   : > { %v1942_v44 = vsel %vm1407_vm2, %v7842_v49, 0.0  ;;  %vm2131_vm12 = vmor %vm2129_vm11, %vm2130_vm10  ;;  %v7856_v17 = vpop.eup %5964 }
 0x418   : > { %v2126_v32 = vsub.f32 1.0, %v2125_v47  ;;  %v1948_v62 = vsel %vm1407_vm2, %v7856_v17, 0.0  ;;  %v1740_v58 = vmul.f32 1.442695, %v1638_v40  ;;  %v1615_v47 = vsub.f32 %v9971_v60, %v9970_v37 }
 0x41a   : > { %v2127_v59 = vmul.f32 %v5961_v8, %v2126_v32  ;;  %5970 = vpow2.f32 %v1740_v58  ;;  %v1720_v32 = vmul.f32 1.442695, %v1628_v6  ;;  %v1694_v12 = vmul.f32 1.442695, %v1615_v47 }
 0x41b   : > { %1541 = vmax.xlane.f32.xlu1 %v1540_v9 }
 0x41c   : > { %1943 = vadd.xlane.f32.xlu2 %v1942_v44  ;;  %v2128_v33 = vadd.f32 %v5961_v8, %v2127_v59  ;;  %v1637_v59 = vsub.f32 %v9972_v39, %v7487_v16  ;;  %5972 = vpow2.f32 %v1720_v32  ;;  %v1582_v44 = vsel %vm1407_vm2, %v7877_v41, -inf  ;;  %v9978_v39 = vld [vmem:[#allocation40_spill] sm:$0xff] }
 0x41d   : > { %5974 = vrcp.f32 %v7656_v22 }
 0x41e   : > { %v2132_v63 = vsel %vm2131_vm12, %v5961_v8, %v2128_v33  ;;  %v7870_v8 = vpop.eup %5966  ;;  %5976 = vpow2.f32 %v1694_v12 }
 0x41f   : > { %v2137_v42 = vsel %vm2134_vm13, %v2136_v35, %v2132_v63  ;;  %1535 = vmax.xlane.f32.xlu0 %v1534_v54  ;;  %v1834_v5 = vsel %vm1407_vm2, %v7870_v8, 0.0  ;;  %v7885_v9 = vpop.eup %5968  ;;  %v9973_v35 = vld [vmem:[#allocation6_spill] sm:$0xff] }
 0x420   : > { %v2890_v13 = vmul.f32 %v7563_v23, %v2137_v42  ;;  %v7866_v23 = vpop.xlane.xlu2 %1532  ;;  %v7889_v33 = vpop.eup %5970  ;;  %v5805_v63 = vpack.i.bf16 %v9974_v11, %v9973_v35  ;;  %v9975_v54 = vld [vmem:[#allocation50_spill] sm:$0xff]  ;;  %vm2438_vm14 = vweird.f32 %v7885_v9 }
 0x421   : > { %v5777_v28 = vpop.permute.xlu0 %5776  ;;  %v9976_v42 = vld [vmem:[#allocation30_spill] sm:$0xff]  ;;  %v1906_v50 = vsel %vm1407_vm2, %v7889_v33, 0.0  ;;  %vm7940_vm3 = vmor %vm2437_vm15, %vm2438_vm14  ;;  %vm2325_vm14 = vweird.f32 %v7879_v46 }
 0x422   : > { %v5779_v30 = vunpack.i.h.bf16 %v5777_v28  ;;  %v5778_v34 = vunpack.i.l.bf16 %v5777_v28  ;;  %5524 = vmatmul.msk.f32.gmra.mxu3 %vm1407_vm2, %v2890_v13  ;;  %v1639_v16 = vsub.f32 %v9976_v42, %v9975_v54  ;;  %v1738_v13 = vmul.f32 1.442695, %v1637_v59  ;;  %v7900_v56 = vpop.eup %5972 }
 0x423   : > { %1949 = vadd.xlane.f32.xlu1 %v1948_v62  ;;  %v2433_v28 = vmul.f32 %v7885_v9, %v7595_v57  ;;  %v7907_v58 = vpop.eup %5974  ;;  %v1876_v55 = vsel %vm1407_vm2, %v7900_v56, 0.0  ;;  %v1629_v59 = vsub.f32 %v9978_v39, %v7579_v15  ;;  %v2443_v54 = vand.u32 2147483648, %v7595_v57 }
 0x424   : > { %3270 = vmatpush.msra.mxu1 %v5779_v30  ;;  %3535 = vmatpush.msra.mxu0 %v5778_v34  ;;  %v1742_v40 = vmul.f32 1.442695, %v1639_v16  ;;  %5978 = vpow2.f32 %v1738_v13  ;;  %v7903_v34 = vpop.xlane.xlu1 %1895  ;;  %v7911_v6 = vpop.eup %5976  ;;  %v2447_v47 = vmul.f32 %v7907_v58, %v7656_v22  ;;  %v2441_v15 = vand.u32 2147483647, %v7595_v57 }
 0x425   : > { %v2434_v30 = vsub.f32 1.0, %v2433_v28  ;;  %5980 = vrcp.f32 %v7903_v34  ;;  %v1837_v32 = vsel %vm1407_vm2, %v7911_v6, 0.0  ;;  %vm2452_vm5 = vweird.f32 %v7907_v58 }
 0x426   : > { %5982 = vpow2.f32 %v1742_v40  ;;  %v1722_v40 = vmul.f32 1.442695, %v1629_v59  ;;  %vm2442_vm4 = vcmp.eq.f32.partialorder %v2441_v15, 8.507059e+37  ;;  %vm7970_vm7 = vmor %vm2451_vm6, %vm2452_vm5  ;;  %vm2465_vm10 = vweird.f32 %v7903_v34 }
 0x427   : > { %1538 = vmax.xlane.f32.xlu0 %v1537_v18  ;;  %v9977_v18 = vld [vmem:[#allocation26_spill] sm:$0xff]  ;;  %v2435_v60 = vmul.f32 %v7885_v9, %v2434_v30 }
 0x428   : > { %v1640_v37 = vsub.f32 %v9977_v18, %v7530_v1 }
 0x429   : > { %v2436_v1 = vadd.f32 %v7885_v9, %v2435_v60 }
 0x42a   : > { %v1744_v12 = vmul.f32 1.442695, %v1640_v37  ;;  %v1655_v37 = vsub.f32 %v7493_v25, %v7852_v36 }
 0x42b   : > { %1835 = vadd.xlane.f32.xlu1 %v1834_v5  ;;  %v7921_v5 = vpop.eup %5978  ;;  %v2440_v18 = vsel %vm7940_vm3, %v7885_v9, %v2436_v1 }
 0x42c   : > { %v1903_v13 = vsel %vm1407_vm2, %v7921_v5, 0.0  ;;  %5984 = vpow2.f32 %v1744_v12  ;;  %v1653_v12 = vsub.f32 %v7436_v43, %v7643_v38  ;;  %v1774_v39 = vmul.f32 1.442695, %v1655_v37 }
 0x42d   : > { %5986 = vpow2.f32 %v1722_v40  ;;  %v2455_v38 = vand.u32 2147483647, %v7656_v22  ;;  %v1641_v37 = vsub.f32 %v7514_v61, %v7866_v23 }
 0x42e   : > { %v7883_v26 = vpop.xlane.xlu2 %1868  ;;  %v1770_v40 = vmul.f32 1.442695, %v1653_v12  ;;  %5988 = vpow2.f32 %v1774_v39  ;;  %v2471_v12 = vand.u32 2147483648, %v7903_v34 }
 0x42f   : > { %1583 = vmax.xlane.f32.xlu0 %v1582_v44  ;;  %v2448_v44 = vsub.f32 1.0, %v2447_v47  ;;  %v2444_v47 = vor.u32 1.1754944e-38, %v2443_v54  ;;  %5990 = vrcp.f32 %v7879_v46  ;;  %vm2456_vm8 = vcmp.eq.f32.partialorder %v2455_v38, 8.507059e+37 }
 0x430   : > { %5992 = vpow2.f32 %v1770_v40  ;;  %vm2339_vm5 = vweird.f32 %v7883_v26 }
 0x431   : > { %v2449_v60 = vmul.f32 %v7907_v58, %v2448_v44  ;;  %v2445_v9 = vsel %vm2442_vm4, %v2444_v47, %v2440_v18  ;;  %v1630_v47 = vsub.f32 %v7352_v24, %v7728_v0  ;;  %v2469_v24 = vand.u32 2147483647, %v7903_v34 }
 0x433   : > { %1907 = vadd.xlane.f32.xlu1 %v1906_v50  ;;  %v5792_v35 = vpop.permute.xlu1 %5791  ;;  %v7934_v50 = vpop.f32.mrf.mxu1  ;;  %v2450_v36 = vadd.f32 %v7907_v58, %v2449_v60  ;;  %vm2470_vm12 = vcmp.eq.f32.partialorder %v2469_v24, 8.507059e+37 }
 0x434   : > { %5806 = vrot.lane.b32.xlu2 %v5805_v63, %s6208_s30  ;;  %v7927_v63 = vpop.eup %5980  ;;  %v1585_v54 = vsel %vm1407_vm2, %v7934_v50, -inf  ;;  %v5794_v30 = vunpack.i.h.bf16 %v5792_v35 }
 0x435   : > { %v7932_v28 = vpop.eup %5982  ;;  %v2461_v57 = vmul.f32 %v7927_v63, %v7903_v34  ;;  %vm2466_vm9 = vweird.f32 %v7927_v63 }
 0x436   : > { %v7905_v62 = vpop.xlane.xlu2 %1940  ;;  %9979 = vst [vmem:[#allocation7_spill] sm:$0xff] %v7932_v28  ;;  %v7958_v1 = vpop.eup %5984  ;;  %vm2467_vm11 = vmor %vm2465_vm10, %vm2466_vm9 }
 0x437   : > { %1877 = vadd.xlane.f32.xlu0 %v1876_v55  ;;  %v5793_v55 = vunpack.i.l.bf16 %v5792_v35  ;;  %v2462_v59 = vsub.f32 1.0, %v2461_v57  ;;  %9982 = vst [vmem:[#allocation12_spill] sm:$0xff] %v7958_v1  ;;  %v7983_v35 = vpop.eup %5986  ;;  %v1912_v57 = vsel %vm1407_vm2, %v7958_v1, 0.0 }
 0x438   : > { %v1879_v39 = vsel %vm1407_vm2, %v7983_v35, 0.0 }
 0x43b   : > { %1838 = vadd.xlane.f32.xlu1 %v1837_v32  ;;  %v1909_v32 = vsel %vm1407_vm2, %v7932_v28, 0.0  ;;  %v7974_v18 = vpop.f32.mrf.mxu1 }
 0x43e   : > { %v5782_v11 = vpop.permute.xlu2 %5781 }
 0x43f   : > { %v5784_v42 = vunpack.i.h.bf16 %v5782_v11  ;;  %v5783_v16 = vunpack.i.l.bf16 %v5782_v11  ;;  %1904 = vadd.xlane.f32.xlu0 %v1903_v13  ;;  %v9984_v13 = vld [vmem:[#allocation9_spill] sm:$0xff] }
 0x440   : > { %v1636_v15 = vsub.f32 %v9984_v13, %v7444_v52  ;;  %v2454_v52 = vsel %vm7970_vm7, %v7907_v58, %v2450_v36  ;;  %v1724_v36 = vmul.f32 1.442695, %v1630_v47  ;;  %v9991_v47 = vld [vmem:[#allocation3_spill] sm:$0xff] }
 0x441   : > { %3362 = vmatpush.msrb.mxu2 %v5783_v16  ;;  %3536 = vmatpush.msra.mxu0 %v5784_v42  ;;  %v2457_v42 = vand.u32 2147483648, %v7656_v22  ;;  %v9983_v16 = vld [vmem:[#allocation42_spill] sm:$0xff]  ;;  %v2463_v22 = vmul.f32 %v7927_v63, %v2462_v59  ;;  %v7995_v59 = vpop.eup %5988 }
 0x442   : > { %v2912_v43 = vmul.f32 %v9983_v16, %v2445_v9  ;;  %v1736_v61 = vmul.f32 1.442695, %v1636_v15  ;;  %v8000_v0 = vpop.eup %5990 }
 0x443   : > { %3537 = vmatpush.msra.mxu0 %v5793_v55  ;;  %1910 = vadd.xlane.f32.xlu1 %v1909_v32  ;;  %v2458_v60 = vor.u32 1.1754944e-38, %v2457_v42  ;;  %v1746_v32 = vmul.f32 1.442695, %v1641_v37  ;;  %v2464_v58 = vadd.f32 %v7927_v63, %v2463_v22  ;;  %v2472_v42 = vor.u32 1.1754944e-38, %v2471_v12  ;;  %v8010_v34 = vpop.f32.mrf.mxu1 }
 0x444   : > { %5994 = vpow2.f32 %v1736_v61  ;;  %v2321_v16 = vmul.f32 %v8000_v0, %v7879_v46  ;;  %vm2326_vm13 = vweird.f32 %v8000_v0 }
 0x445   : > { %v2459_v23 = vsel %vm2456_vm8, %v2458_v60, %v2454_v52  ;;  %5996 = vpow2.f32 %v1746_v32  ;;  %vm2327_vm15 = vmor %vm2325_vm14, %vm2326_vm13 }
 0x446   : > { %v5787_v25 = vpop.permute.xlu2 %5786  ;;  %5998 = vrcp.f32 %v7883_v26  ;;  %v2322_v40 = vsub.f32 1.0, %v2321_v16  ;;  %v2329_v16 = vand.u32 2147483647, %v7879_v46 }
 0x447   : > { %v5789_v44 = vunpack.i.h.bf16 %v5787_v25  ;;  %v5788_v11 = vunpack.i.l.bf16 %v5787_v25  ;;  %1586 = vmax.xlane.f32.xlu0 %v1585_v54  ;;  %v2913_v25 = vmul.f32 %v7449_v14, %v2459_v23  ;;  %v8005_v54 = vpop.eup %5992  ;;  %v1957_v14 = vsel %vm1407_vm2, %v7995_v59, 0.0  ;;  %v9990_v23 = vld [vmem:[#allocation53_spill] sm:$0xff] }
 0x448   : > { %6000 = vpow2.f32 %v1724_v36  ;;  %v1951_v13 = vsel %vm1407_vm2, %v8005_v54, 0.0  ;;  %v2323_v52 = vmul.f32 %v8000_v0, %v2322_v40  ;;  %v1631_v32 = vsub.f32 %v9991_v47, %v9990_v23  ;;  %v8048_v36 = vpop.f32.mrf.mxu3 }
 0x449   : > { %3271 = vmatpush.msra.mxu1 %v5788_v11  ;;  %3363 = vmatpush.msrb.mxu2 %v5789_v44  ;;  %v2468_v11 = vsel %vm2467_vm11, %v7927_v63, %v2464_v58  ;;  %v1543_v40 = vsel %vm1407_vm2, %v8048_v36, -inf  ;;  %vm2330_vm3 = vcmp.eq.f32.partialorder %v2329_v16, 8.507059e+37  ;;  %v2345_v23 = vand.u32 2147483648, %v7883_v26 }
 0x44a   : > { %5546 = vmatmul.msk.f32.vlgmr.msrb.gmra.mxu2 %vm1407_vm2, %v2912_v43  ;;  %v1654_v43 = vsub.f32 %v7460_v7, %v7683_v27  ;;  %v8016_v38 = vpop.eup %5994  ;;  %v1588_v16 = vsel %vm1407_vm2, %v7974_v18, -inf }
 0x44b   : > { %3272 = vmatpush.msra.mxu1 %v5794_v30  ;;  %1913 = vadd.xlane.f32.xlu1 %v1912_v57  ;;  %v8020_v15 = vpop.eup %5996  ;;  %v9988_v30 = vld [vmem:[#allocation52_spill] sm:$0xff]  ;;  %v1900_v60 = vsel %vm1407_vm2, %v8016_v38, 0.0  ;;  %v8035_v61 = vpop.f32.mrf.mxu1 }
 0x44c   : > { %v1578_v9 = vpop.xlane.xlu0 %1577  ;;  %9987 = vst [vmem:[#allocation48_spill] sm:$0xff] %v8020_v15  ;;  %v8023_v37 = vpop.eup %5998  ;;  %v1772_v22 = vmul.f32 1.442695, %v1654_v43  ;;  %v1915_v7 = vsel %vm1407_vm2, %v8020_v15, 0.0 }
 0x44d   : > { %v1656_v44 = vsub.f32 %v7632_v48, %v1578_v9  ;;  %v2473_v48 = vsel %vm2470_vm12, %v2472_v42, %v2468_v11  ;;  %v2335_v57 = vmul.f32 %v8023_v37, %v7883_v26  ;;  %9989 = vst [vmem:[#allocation38_spill] sm:$0xff] %v8035_v61  ;;  %vm2340_vm4 = vweird.f32 %v8023_v37 }
 0x44e   : > { %v2914_v55 = vmul.f32 %v9988_v30, %v2473_v48  ;;  %v8028_v27 = vpop.eup %6000  ;;  %vm8074_vm6 = vmor %vm2339_vm5, %vm2340_vm4 }
 0x44f   : > { %1880 = vadd.xlane.f32.xlu0 %v1879_v39  ;;  %v1776_v63 = vmul.f32 1.442695, %v1656_v44  ;;  %v1882_v12 = vsel %vm1407_vm2, %v8028_v27, 0.0  ;;  %v2324_v39 = vadd.f32 %v8000_v0, %v2323_v52  ;;  %v2331_v44 = vand.u32 2147483648, %v7879_v46 }
 0x451   : > { %6002 = vpow2.f32 %v1776_v63  ;;  %v2328_v63 = vsel %vm2327_vm15, %v8000_v0, %v2324_v39  ;;  %v2332_v30 = vor.u32 1.1754944e-38, %v2331_v44  ;;  %v9994_v39 = vld [vmem:[#allocation51_spill] sm:$0xff] }
 0x452   : > { %5547 = vmatmul.msk.f32.gmra.mxu2 %vm1407_vm2, %v2913_v25  ;;  %6004 = vpow2.f32 %v1772_v22  ;;  %v2336_v25 = vsub.f32 1.0, %v2335_v57 }
 0x453   : > { %1958 = vadd.xlane.f32.xlu1 %v1957_v14  ;;  %v1726_v14 = vmul.f32 1.442695, %v1631_v32  ;;  %v2333_v46 = vsel %vm2330_vm3, %v2332_v30, %v2328_v63  ;;  %v8066_v0 = vpop.f32.mrf.mxu1 }
 0x454   : > { %9993 = vst [vmem:[#allocation11_spill] sm:$0xff] %v8066_v0 }
 0x457   : > { %1952 = vadd.xlane.f32.xlu0 %v1951_v13  ;;  %v8043_v9 = vpop.eup %6002  ;;  %v2337_v13 = vmul.f32 %v8023_v37, %v2336_v25  ;;  %v2904_v25 = vmul.f32 %v9994_v39, %v2333_v46  ;;  %v8092_v46 = vpop.f32.mrf.mxu3  ;;  %v1591_v39 = vsel %vm1407_vm2, %v8010_v34, -inf }
 0x458   : > { %9992 = vst [vmem:[#allocation8_spill] sm:$0xff] %v8043_v9  ;;  %v1960_v48 = vsel %vm1407_vm2, %v8043_v9, 0.0  ;;  %v8055_v43 = vpop.eup %6004 }
 0x459   : > { %v1954_v52 = vsel %vm1407_vm2, %v8055_v43, 0.0  ;;  %v2338_v57 = vadd.f32 %v8023_v37, %v2337_v13 }
 0x45a   : > { %5548 = vmatmul.msk.f32.gmra.mxu2 %vm1407_vm2, %v2914_v55 }
 0x45b   : > { %1916 = vadd.xlane.f32.xlu1 %v1915_v7 }
 0x45d   : > { %1901 = vadd.xlane.f32.xlu2 %v1900_v60 }
 0x45e   : > { %v8039_v58 = vpop.xlane.xlu1 %1871 }
 0x45f   : > { %6006 = vrcp.f32 %v8039_v58  ;;  %v5797_v24 = vpop.permute.xlu0 %5796  ;;  %1883 = vadd.xlane.f32.xlu0 %v1882_v12  ;;  %vm2353_vm9 = vweird.f32 %v8039_v58 }
 0x460   : > { %v5799_v11 = vunpack.i.h.bf16 %v5797_v24  ;;  %v5798_v42 = vunpack.i.l.bf16 %v5797_v24  ;;  %6008 = vpow2.f32 %v1726_v14  ;;  %v2343_v24 = vand.u32 2147483647, %v7883_v26 }
 0x461   : > { %v2342_v26 = vsel %vm8074_vm6, %v8023_v37, %v2338_v57  ;;  %v2357_v37 = vand.u32 2147483647, %v8039_v58  ;;  %6010 = vrcp.f32 %v7810_v20 }
 0x462   : > { %3273 = vmatpush.msra.mxu1 %v5799_v11  ;;  %3538 = vmatpush.msra.mxu0 %v5798_v42  ;;  %v1597_v11 = vsel %vm1407_vm2, %v8066_v0, -inf  ;;  %vm2344_vm7 = vcmp.eq.f32.partialorder %v2343_v24, 8.507059e+37 }
 0x463   : > { %1961 = vadd.xlane.f32.xlu1 %v1960_v48  ;;  %v2346_v48 = vor.u32 1.1754944e-38, %v2345_v23  ;;  %vm2358_vm11 = vcmp.eq.f32.partialorder %v2357_v37, 8.507059e+37 }
 0x465   : > { %1544 = vmax.xlane.f32.xlu2 %v1543_v40  ;;  %v6007_v55 = vpop.eup %6006  ;;  %v2347_v40 = vsel %vm2344_vm7, %v2346_v48, %v2342_v26  ;;  %v10000_v48 = vld [vmem:[#allocation35_spill] sm:$0xff] }
 0x466   : > { %v2349_v22 = vmul.f32 %v6007_v55, %v8039_v58  ;;  %v8062_v7 = vpop.xlane.xlu1 %1580  ;;  %v8080_v42 = vpop.eup %6008  ;;  %vm2354_vm8 = vweird.f32 %v6007_v55 }
 0x467   : > { %v5802_v60 = vpop.permute.xlu0 %5801  ;;  %1955 = vadd.xlane.f32.xlu0 %v1954_v52  ;;  %9997 = vst [vmem:[#allocation43_spill] sm:$0xff] %v8080_v42  ;;  %v1885_v13 = vsel %vm1407_vm2, %v8080_v42, 0.0  ;;  %v9998_v52 = vld [vmem:[#allocation54_spill] sm:$0xff]  ;;  %vm2355_vm10 = vmor %vm2353_vm9, %vm2354_vm8  ;;  %vm2661_vm9 = vweird.f32 %v7810_v20 }
 0x468   : > { %v2350_v47 = vsub.f32 1.0, %v2349_v22  ;;  %v5804_v32 = vunpack.i.h.bf16 %v5802_v60  ;;  %v5803_v12 = vunpack.i.l.bf16 %v5802_v60  ;;  %v2359_v22 = vand.u32 2147483648, %v8039_v58 }
 0x469   : > { %v2905_v57 = vmul.f32 %v9998_v52, %v2347_v40  ;;  %v1546_v60 = vsel %vm1407_vm2, %v8092_v46, -inf }
 0x46a   : > { %3274 = vmatpush.msra.mxu1 %v5804_v32  ;;  %3539 = vmatpush.msra.mxu0 %v5803_v12  ;;  %v2351_v14 = vmul.f32 %v6007_v55, %v2350_v47  ;;  %v2360_v47 = vor.u32 1.1754944e-38, %v2359_v22 }
 0x46b   : > { %1598 = vmax.xlane.f32.xlu1 %v1597_v11  ;;  %5538 = vmatmul.msk.f32.vlgmr.msra.gmra.mxu1 %vm1407_vm2, %v2904_v25  ;;  %v8107_v25 = vpop.eup %6010 }
 0x46c   : > { %v2352_v30 = vadd.f32 %v6007_v55, %v2351_v14  ;;  %vm2662_vm3 = vweird.f32 %v8107_v25 }
 0x46d   : > { %1589 = vmax.xlane.f32.xlu2 %v1588_v16  ;;  %v8116_v16 = vpop.f32.mrf.mxu3 }
 0x46e   : > { %v8088_v63 = vpop.xlane.xlu1 %1829  ;;  %v2356_v23 = vsel %vm2355_vm10, %v6007_v55, %v2352_v30  ;;  %9999 = vst [vmem:[#allocation37_spill] sm:$0xff] %v8116_v16  ;;  %v1549_v52 = vsel %vm1407_vm2, %v8116_v16, -inf }
 0x46f   : > { %1886 = vadd.xlane.f32.xlu0 %v1885_v13  ;;  %v2361_v12 = vsel %vm2358_vm11, %v2360_v47, %v2356_v23  ;;  %v10001_v13 = vld [vmem:[#allocation34_spill] sm:$0xff]  ;;  %vm2157_vm6 = vweird.f32 %v8088_v63 }
 0x470   : > { %v2906_v58 = vmul.f32 %v7736_v10, %v2361_v12  ;;  %v2657_v10 = vmul.f32 %v8107_v25, %v7810_v20  ;;  %v5810_v40 = vpack.i.bf16 %v10001_v13, %v10000_v48 }
 0x473   : > { %5539 = vmatmul.msk.f32.gmra.mxu1 %vm1407_vm2, %v2905_v57  ;;  %v2658_v57 = vsub.f32 1.0, %v2657_v10 }
 0x475   : > { %1547 = vmax.xlane.f32.xlu2 %v1546_v60 }
 0x476   : > { %v1875_v32 = vpop.xlane.xlu1 %1874 }
 0x477   : > { %6012 = vrcp.f32 %v1875_v32  ;;  %v2373_v37 = vand.u32 2147483648, %v1875_v32  ;;  %vm2367_vm13 = vweird.f32 %v1875_v32  ;;  %v2371_v23 = vand.u32 2147483647, %v1875_v32 }
 0x478   : > { %6014 = vrcp.f32 %v8088_v63 }
 0x479   : > { %6016 = vrcp.f32 %v7905_v62  ;;  %v2374_v10 = vor.u32 1.1754944e-38, %v2373_v37  ;;  %vm2372_vm15 = vcmp.eq.f32.partialorder %v2371_v23, 8.507059e+37  ;;  %v10006_v37 = vld [vmem:[#allocation33_spill] sm:$0xff]  ;;  %v2667_v23 = vand.u32 2147483648, %v7810_v20 }
 0x47b   : > { %5540 = vmatmul.msk.f32.gmra.mxu1 %vm1407_vm2, %v2906_v58 }
 0x47d   : > { %1592 = vmax.xlane.f32.xlu2 %v1591_v39  ;;  %v6013_v55 = vpop.eup %6012 }
 0x47e   : > { %v8109_v24 = vpop.eup %6014  ;;  %v2363_v44 = vmul.f32 %v6013_v55, %v1875_v32  ;;  %v8111_v11 = vpop.xlane.xlu1 %1946  ;;  %vm2368_vm12 = vweird.f32 %v6013_v55  ;;  %v10004_v32 = vld [vmem:[#allocation27_spill] sm:$0xff] }
 0x47f   : > { %v8113_v14 = vpop.xlane.xlu2 %1826  ;;  %v2153_v30 = vmul.f32 %v8109_v24, %v8088_v63  ;;  %v8128_v47 = vpop.eup %6016  ;;  %vm8130_vm14 = vmor %vm2367_vm13, %vm2368_vm12  ;;  %vm2158_vm5 = vweird.f32 %v8109_v24 }
 0x480   : > { %v2364_v26 = vsub.f32 1.0, %v2363_v44  ;;  %6018 = vrcp.f32 %v8113_v14  ;;  %v2149_v0 = vand.u32 2147483648, %v8113_v14  ;;  %vm2143_vm7 = vweird.f32 %v8113_v14  ;;  %vm8187_vm11 = vmor %vm2157_vm6, %vm2158_vm5 }
 0x481   : > { %v2154_v12 = vsub.f32 1.0, %v2153_v30  ;;  %vm8193_vm12 = vmor %vm2661_vm9, %vm2662_vm3  ;;  %vm2676_vm3 = vweird.f32 %v8128_v47  ;;  %vm2675_vm9 = vweird.f32 %v7905_v62 }
 0x482   : > { %v2365_v22 = vmul.f32 %v6013_v55, %v2364_v26 }
 0x483   : > { %5811 = vrot.lane.b32.xlu0 %v5810_v40, %s6208_s30  ;;  %v10005_v40 = vld [vmem:[#allocation23_spill] sm:$0xff]  ;;  %v2155_v9 = vmul.f32 %v8109_v24, %v2154_v12 }
 0x484   : > { %v2366_v60 = vadd.f32 %v6013_v55, %v2365_v22  ;;  %v5820_v30 = vpack.i.bf16 %v10005_v40, %v10004_v32  ;;  %v2659_v22 = vmul.f32 %v8107_v25, %v2658_v57  ;;  %v1594_v32 = vsel %vm1407_vm2, %v8035_v61, -inf }
 0x485   : > { %1550 = vmax.xlane.f32.xlu2 %v1549_v52  ;;  %v2671_v52 = vmul.f32 %v8128_v47, %v7905_v62  ;;  %v2665_v57 = vand.u32 2147483647, %v7810_v20 }
 0x486   : > { %v6019_v39 = vpop.eup %6018  ;;  %v8134_v44 = vpop.xlane.xlu1 %1832  ;;  %v2370_v48 = vsel %vm8130_vm14, %v6013_v55, %v2366_v60  ;;  %v10007_v60 = vld [vmem:[#allocation18_spill] sm:$0xff]  ;;  %v2660_v12 = vadd.f32 %v8107_v25, %v2659_v22 }
 0x487   : > { %v8136_v26 = vpop.xlane.xlu2 %1898  ;;  %v2139_v13 = vmul.f32 %v6019_v39, %v8113_v14  ;;  %6020 = vrcp.f32 %v8134_v44  ;;  %v2375_v55 = vsel %vm2372_vm15, %v2374_v10, %v2370_v48  ;;  %v5825_v15 = vpack.i.bf16 %v10007_v60, %v10006_v37 }
 0x488   : > { %6022 = vrcp.f32 %v8136_v26  ;;  %v2907_v1 = vmul.f32 %v7795_v3, %v2375_v55  ;;  %vm2144_vm4 = vweird.f32 %v6019_v39  ;;  %v2147_v3 = vand.u32 2147483647, %v8113_v14 }
 0x489   : > { %v2140_v58 = vsub.f32 1.0, %v2139_v13  ;;  %v2672_v10 = vsub.f32 1.0, %v2671_v52  ;;  %v2150_v52 = vor.u32 1.1754944e-38, %v2149_v0  ;;  %vm2145_vm8 = vmor %vm2143_vm7, %vm2144_vm4  ;;  %v2161_v60 = vand.u32 2147483647, %v8088_v63 }
 0x48a   : > { %5541 = vmatmul.msk.f32.gmra.mxu1 %vm1407_vm2, %v2907_v1  ;;  %vm2148_vm10 = vcmp.eq.f32.partialorder %v2147_v3, 8.507059e+37  ;;  %vm8197_vm13 = vcmp.eq.f32.partialorder %v2665_v57, 8.507059e+37  ;;  %v2664_v3 = vsel %vm8193_vm12, %v8107_v25, %v2660_v12  ;;  %v2485_v25 = vand.u32 2147483648, %v8136_v26 }
 0x48b   : > { %v2141_v40 = vmul.f32 %v6019_v39, %v2140_v58  ;;  %5821 = vrot.lane.b32.xlu0 %v5820_v30, %s6208_s30  ;;  %v2156_v58 = vadd.f32 %v8109_v24, %v2155_v9  ;;  %v2163_v30 = vand.u32 2147483648, %v8088_v63  ;;  %v2673_v57 = vmul.f32 %v8128_v47, %v2672_v10 }
 0x48c   : > { %vm2162_vm14 = vcmp.eq.f32.partialorder %v2161_v60, 8.507059e+37  ;;  %vm2479_vm4 = vweird.f32 %v8136_v26  ;;  %v2486_v60 = vor.u32 1.1754944e-38, %v2485_v25 }
 0x48d   : > { %1595 = vmax.xlane.f32.xlu2 %v1594_v32  ;;  %v8162_v48 = vpop.eup %6020  ;;  %v2142_v13 = vadd.f32 %v6019_v39, %v2141_v40  ;;  %v2160_v63 = vsel %vm8187_vm11, %v8109_v24, %v2156_v58  ;;  %vm8254_vm11 = vmor %vm2675_vm9, %vm2676_vm3 }
 0x48e   : > { %v8166_v55 = vpop.eup %6022  ;;  %v2167_v1 = vmul.f32 %v8162_v48, %v8134_v44  ;;  %v8173_v22 = vpop.xlane.xlu1 %1541  ;;  %vm2172_vm6 = vweird.f32 %v8162_v48 }
 0x48f   : > { %v8175_v37 = vpop.xlane.xlu2 %1943  ;;  %v2475_v9 = vmul.f32 %v8166_v55, %v8136_v26  ;;  %v2146_v32 = vsel %vm2145_vm8, %v6019_v39, %v2142_v13  ;;  %v2668_v13 = vor.u32 1.1754944e-38, %v2667_v23  ;;  %vm2480_vm15 = vweird.f32 %v8166_v55 }
 0x490   : > { %6024 = vrcp.f32 %v8175_v37  ;;  %v2168_v14 = vsub.f32 1.0, %v2167_v1  ;;  %v2151_v39 = vsel %vm2148_vm10, %v2150_v52, %v2146_v32  ;;  %v2164_v1 = vor.u32 1.1754944e-38, %v2163_v30  ;;  %vm2481_vm5 = vmor %vm2479_vm4, %vm2480_vm15 }
 0x491   : > { %v2476_v20 = vsub.f32 1.0, %v2475_v9  ;;  %v2891_v16 = vmul.f32 %v7812_v45, %v2151_v39  ;;  %6026 = vrcp.f32 %v8111_v11  ;;  %v2674_v52 = vadd.f32 %v8128_v47, %v2673_v57 }
 0x492   : > { %v1536_v28 = vpop.xlane.xlu0 %1535  ;;  %v2169_v24 = vmul.f32 %v8162_v48, %v2168_v14  ;;  %v2165_v23 = vsel %vm2162_vm14, %v2164_v1, %v2160_v63  ;;  %v2177_v32 = vand.u32 2147483648, %v8134_v44  ;;  %vm2171_vm8 = vweird.f32 %v8134_v44 }
 0x493   : > { %v2477_v42 = vmul.f32 %v8166_v55, %v2476_v20  ;;  %v1642_v9 = vsub.f32 %v7803_v21, %v1536_v28  ;;  %5826 = vrot.lane.b32.xlu0 %v5825_v15, %s6208_s30  ;;  %5525 = vmatmul.msk.f32.gmra.mxu3 %vm1407_vm2, %v2891_v16  ;;  %v2483_v21 = vand.u32 2147483647, %v8136_v26  ;;  %v2669_v28 = vsel %vm8197_vm13, %v2668_v13, %v2664_v3  ;;  %v10014_v3 = vld [vmem:[#allocation2_spill] sm:$0xff]  ;;  %vm8248_vm10 = vmor %vm2171_vm8, %vm2172_vm6 }
 0x494   : > { %v2681_v15 = vand.u32 2147483648, %v7905_v62  ;;  %v2170_v14 = vadd.f32 %v8162_v48, %v2169_v24  ;;  %v2175_v63 = vand.u32 2147483647, %v8134_v44  ;;  %v2928_v13 = vmul.f32 %v10014_v3, %v2669_v28 }
 0x495   : > { %v1748_v45 = vmul.f32 1.442695, %v1642_v9  ;;  %v2478_v10 = vadd.f32 %v8166_v55, %v2477_v42  ;;  %v2892_v42 = vmul.f32 %v7777_v53, %v2165_v23  ;;  %vm2484_vm7 = vcmp.eq.f32.partialorder %v2483_v21, 8.507059e+37 }
 0x496   : > { %v8216_v12 = vpop.eup %6024  ;;  %v8227_v58 = vpop.xlane.xlu1 %1949  ;;  %v2679_v1 = vand.u32 2147483647, %v7905_v62  ;;  %v2178_v24 = vor.u32 1.1754944e-38, %v2177_v32  ;;  %v2678_v23 = vsel %vm8254_vm11, %v8128_v47, %v2674_v52  ;;  %vm2176_vm12 = vcmp.eq.f32.partialorder %v2175_v63, 8.507059e+37  ;;  %v10019_v47 = vld [vmem:[#allocation31_spill] sm:$0xff] }
 0x497   : > { %v2685_v16 = vmul.f32 %v8216_v12, %v8175_v37  ;;  %v5807_v30 = vpop.permute.xlu2 %5806  ;;  %6028 = vpow2.f32 %v1748_v45  ;;  %v2482_v40 = vsel %vm2481_vm5, %v8166_v55, %v2478_v10  ;;  %v8236_v20 = vpop.eup %6026  ;;  %v2682_v45 = vor.u32 1.1754944e-38, %v2681_v15  ;;  %v10020_v15 = vld [vmem:[#allocation29_spill] sm:$0xff] }
 0x498   : > { %v5808_v61 = vunpack.i.l.bf16 %v5807_v30  ;;  %v5809_v26 = vunpack.i.h.bf16 %v5807_v30  ;;  %v2487_v53 = vsel %vm2484_vm7, %v2486_v60, %v2482_v40  ;;  %6030 = vrcp.f32 %v8227_v58 }
 0x499   : > { %v2686_v0 = vsub.f32 1.0, %v2685_v16  ;;  %v2915_v55 = vmul.f32 %v7832_v19, %v2487_v53  ;;  %v2174_v19 = vsel %vm8248_vm10, %v8162_v48, %v2170_v14  ;;  %v2699_v44 = vmul.f32 %v8236_v20, %v8111_v11 }
 0x49a   : > { %v8239_v39 = vpop.xlane.xlu0 %1538  ;;  %3540 = vmatpush.msra.mxu0 %v5808_v61  ;;  %vm2680_vm13 = vcmp.eq.f32.partialorder %v2679_v1, 8.507059e+37  ;;  %v2179_v21 = vsel %vm2176_vm12, %v2178_v24, %v2174_v19  ;;  %vm2690_vm14 = vweird.f32 %v8216_v12  ;;  %v5815_v52 = vpack.i.bf16 %v10020_v15, %v10019_v47  ;;  %v10022_v1 = vld [vmem:[#allocation22_spill] sm:$0xff]  ;;  %v8326_v15 = vpop.f32.mrf.mxu2 }
 0x49b   : > { %5526 = vmatmul.msk.f32.gmra.mxu3 %vm1407_vm2, %v2892_v42  ;;  %v2687_v25 = vmul.f32 %v8216_v12, %v2686_v0  ;;  %5549 = vmatmul.msk.f32.gmra.mxu2 %vm1407_vm2, %v2915_v55  ;;  %v2683_v28 = vsel %vm2680_vm13, %v2682_v45, %v2678_v23  ;;  %v2700_v16 = vsub.f32 1.0, %v2699_v44  ;;  %v2695_v60 = vand.u32 2147483648, %v8175_v37  ;;  %v10021_v0 = vld [vmem:[#allocation55_spill] sm:$0xff]  ;;  %v10023_v55 = vld [vmem:[#allocation21_spill] sm:$0xff] }
 0x49c   : > { %3541 = vmatpush.msra.mxu0 %v5809_v26  ;;  %v2893_v14 = vmul.f32 %v7829_v29, %v2179_v21  ;;  %vm2689_vm15 = vweird.f32 %v8175_v37  ;;  %v2693_v32 = vand.u32 2147483647, %v8175_v37  ;;  %v2929_v40 = vmul.f32 %v10021_v0, %v2683_v28 }
 0x49d   : > { %v8263_v62 = vpop.eup %6028  ;;  %5562 = vmatmul.msk.f32.vlgmr.msra.gmra.mxu0 %vm1407_vm2, %v2928_v13  ;;  %v2688_v30 = vadd.f32 %v8216_v12, %v2687_v25  ;;  %vm2691_vm3 = vmor %vm2689_vm15, %vm2690_vm14  ;;  %v2701_v26 = vmul.f32 %v8236_v20, %v2700_v16  ;;  %v2696_v3 = vor.u32 1.1754944e-38, %v2695_v60  ;;  %v5830_v57 = vpack.i.bf16 %v10023_v55, %v10022_v1 }
 0x49e   : > { %v8273_v10 = vpop.xlane.xlu1 %1835  ;;  %v1918_v48 = vsel %vm1407_vm2, %v8263_v62, 0.0  ;;  %v8280_v42 = vpop.eup %6030  ;;  %vm2694_vm4 = vcmp.eq.f32.partialorder %v2693_v32, 8.507059e+37  ;;  %vm2704_vm5 = vweird.f32 %v8236_v20  ;;  %vm2703_vm6 = vweird.f32 %v8111_v11 }
 0x49f   : > { %1919 = vadd.xlane.f32.xlu1 %v1918_v48  ;;  %6032 = vrcp.f32 %v8273_v10  ;;  %v2713_v53 = vmul.f32 %v8280_v42, %v8227_v58  ;;  %v2692_v29 = vsel %vm2691_vm3, %v8216_v12, %v2688_v30  ;;  %v2702_v19 = vadd.f32 %v8236_v20, %v2701_v26  ;;  %vm8312_vm7 = vmor %vm2703_vm6, %vm2704_vm5  ;;  %v10027_v26 = vld [vmem:[#allocation24_spill] sm:$0xff] }
 0x4a0   : > { %v2697_v9 = vsel %vm2694_vm4, %v2696_v3, %v2692_v29  ;;  %v1657_v12 = vsub.f32 %v7752_v4, %v8062_v7  ;;  %v2707_v25 = vand.u32 2147483647, %v8111_v11  ;;  %v2709_v23 = vand.u32 2147483648, %v8111_v11 }
 0x4a1   : > { %v2714_v44 = vsub.f32 1.0, %v2713_v53  ;;  %v2191_v21 = vand.u32 2147483648, %v8273_v10  ;;  %v2930_v28 = vmul.f32 %v7842_v49, %v2697_v9  ;;  %v2189_v4 = vand.u32 2147483647, %v8273_v10 }
 0x4a2   : > { %v8285_v61 = vpop.xlane.xlu0 %1583  ;;  %v2706_v30 = vsel %vm8312_vm7, %v8236_v20, %v2702_v19  ;;  %v2710_v47 = vor.u32 1.1754944e-38, %v2709_v23  ;;  %vm2185_vm9 = vweird.f32 %v8273_v10  ;;  %vm2708_vm10 = vcmp.eq.f32.partialorder %v2707_v25, 8.507059e+37 }
 0x4a3   : > { %5527 = vmatmul.msk.f32.gmra.mxu3 %vm1407_vm2, %v2893_v14  ;;  %v2715_v7 = vmul.f32 %v8280_v42, %v2714_v44  ;;  %v2192_v60 = vor.u32 1.1754944e-38, %v2191_v21  ;;  %vm2190_vm12 = vcmp.eq.f32.partialorder %v2189_v4, 8.507059e+37  ;;  %vm2718_vm13 = vweird.f32 %v8280_v42  ;;  %v10030_v44 = vld [vmem:[#allocation19_spill] sm:$0xff]  ;;  %v8353_v21 = vpop.f32.mrf.mxu2 }
 0x4a4   : > { %v2711_v32 = vsel %vm2708_vm10, %v2710_v47, %v2706_v30  ;;  %v2723_v29 = vand.u32 2147483648, %v8227_v58  ;;  %vm2717_vm14 = vweird.f32 %v8227_v58 }
 0x4a5   : > { %5816 = vrot.lane.b32.xlu2 %v5815_v52, %s6208_s30  ;;  %5563 = vmatmul.msk.f32.gmra.mxu0 %vm1407_vm2, %v2929_v40  ;;  %v6033_v63 = vpop.eup %6032  ;;  %v1778_v52 = vmul.f32 1.442695, %v1657_v12  ;;  %v2716_v40 = vadd.f32 %v8280_v42, %v2715_v7  ;;  %v2931_v55 = vmul.f32 %v7815_v51, %v2711_v32  ;;  %vm8340_vm15 = vmor %vm2717_vm14, %vm2718_vm13 }
 0x4a6   : > { %v8298_v13 = vpop.xlane.xlu1 %1907  ;;  %v2181_v37 = vmul.f32 %v6033_v63, %v8273_v10  ;;  %vm2186_vm8 = vweird.f32 %v6033_v63  ;;  %v10026_v10 = vld [vmem:[#allocation14_spill] sm:$0xff] }
 0x4a7   : > { %vm2187_vm11 = vmor %vm2185_vm9, %vm2186_vm8  ;;  %v5840_v53 = vpack.i.bf16 %v10027_v26, %v10026_v10  ;;  %v2720_v51 = vsel %vm8340_vm15, %v8280_v42, %v2716_v40 }
 0x4a8   : > { %v2182_v24 = vsub.f32 1.0, %v2181_v37 }
 0x4aa   : > { %v1878_v45 = vpop.xlane.xlu0 %1877  ;;  %v2183_v48 = vmul.f32 %v6033_v63, %v2182_v24  ;;  %v10031_v24 = vld [vmem:[#allocation28_spill] sm:$0xff] }
 0x4ab   : > { %6034 = vrcp.f32 %v1878_v45  ;;  %v2385_v12 = vand.u32 2147483647, %v1878_v45  ;;  %v2387_v25 = vand.u32 2147483648, %v1878_v45  ;;  %vm2381_vm5 = vweird.f32 %v1878_v45 }
 0x4ac   : > { %v2184_v11 = vadd.f32 %v6033_v63, %v2183_v48 }
 0x4ad   : > { %5831 = vrot.lane.b32.xlu2 %v5830_v57, %s6208_s30  ;;  %5564 = vmatmul.msk.f32.gmra.mxu0 %vm1407_vm2, %v2930_v28  ;;  %vm2386_vm7 = vcmp.eq.f32.partialorder %v2385_v12, 8.507059e+37  ;;  %v10032_v12 = vld [vmem:[#allocation13_spill] sm:$0xff] }
 0x4ae   : > { %v8324_v49 = vpop.xlane.xlu1 %1838  ;;  %v2188_v14 = vsel %vm2187_vm11, %v6033_v63, %v2184_v11  ;;  %v2721_v63 = vand.u32 2147483647, %v8227_v58  ;;  %v2724_v58 = vor.u32 1.1754944e-38, %v2723_v29  ;;  %v2388_v11 = vor.u32 1.1754944e-38, %v2387_v25  ;;  %v10033_v25 = vld [vmem:[#allocation15_spill] sm:$0xff] }
 0x4af   : > { %6036 = vrcp.f32 %v8324_v49  ;;  %v2193_v20 = vsel %vm2190_vm12, %v2192_v60, %v2188_v14  ;;  %v2205_v30 = vand.u32 2147483648, %v8324_v49  ;;  %vm2199_vm9 = vweird.f32 %v8324_v49 }
 0x4b0   : > { %v2894_v1 = vmul.f32 %v7870_v8, %v2193_v20  ;;  %6038 = vpow2.f32 %v1778_v52  ;;  %v5835_v8 = vpack.i.bf16 %v10031_v24, %v10030_v44  ;;  %vm2722_vm4 = vcmp.eq.f32.partialorder %v2721_v63, 8.507059e+37 }
 0x4b1   : > { %v6035_v0 = vpop.eup %6034  ;;  %v2725_v4 = vsel %vm2722_vm4, %v2724_v58, %v2720_v51  ;;  %v5845_v51 = vpack.i.bf16 %v10033_v25, %v10032_v12 }
 0x4b2   : > { %v2377_v3 = vmul.f32 %v6035_v0, %v1878_v45  ;;  %v8334_v37 = vpop.xlane.xlu0 %1904  ;;  %5528 = vmatmul.msk.f32.gmra.mxu3 %vm1407_vm2, %v2894_v1  ;;  %vm2382_vm3 = vweird.f32 %v6035_v0  ;;  %v2932_v60 = vmul.f32 %v7856_v17, %v2725_v4  ;;  %v2203_v45 = vand.u32 2147483647, %v8324_v49 }
 0x4b3   : > { %vm2383_vm6 = vmor %vm2381_vm5, %vm2382_vm3  ;;  %6040 = vrcp.f32 %v8334_v37  ;;  %v1658_v1 = vsub.f32 %v7877_v41, %v8285_v61  ;;  %vm2507_vm3 = vweird.f32 %v8334_v37 }
 0x4b4   : > { %v2378_v9 = vsub.f32 1.0, %v2377_v3  ;;  %vm2204_vm11 = vcmp.eq.f32.partialorder %v2203_v45, 8.507059e+37  ;;  %v1643_v3 = vsub.f32 %v7827_v2, %v8239_v39 }
 0x4b5   : > { %5841 = vrot.lane.b32.xlu2 %v5840_v53, %s6208_s30  ;;  %v6037_v19 = vpop.eup %6036  ;;  %5565 = vmatmul.msk.f32.gmra.mxu0 %vm1407_vm2, %v2931_v55  ;;  %v8371_v53 = vpop.f32.mrf.mxu2 }
 0x4b6   : > { %v2379_v23 = vmul.f32 %v6035_v0, %v2378_v9  ;;  %v2195_v48 = vmul.f32 %v6037_v19, %v8324_v49  ;;  %v8356_v7 = vpop.eup %6038  ;;  %vm2200_vm8 = vweird.f32 %v6037_v19  ;;  %v8367_v10 = vpop.xlane.xlu1 %1910  ;;  %v1780_v9 = vmul.f32 1.442695, %v1658_v1 }
 0x4b7   : > { %v1963_v32 = vsel %vm1407_vm2, %v8356_v7, 0.0  ;;  %vm2201_vm10 = vmor %vm2199_vm9, %vm2200_vm8 }
 0x4b8   : > { %v2380_v28 = vadd.f32 %v6035_v0, %v2379_v23  ;;  %v2196_v16 = vsub.f32 1.0, %v2195_v48  ;;  %5836 = vrot.lane.b32.xlu1 %v5835_v8, %s6208_s30 }
 0x4ba   : > { %v2197_v42 = vmul.f32 %v6037_v19, %v2196_v16  ;;  %v8359_v47 = vpop.xlane.xlu0 %1586  ;;  %v2384_v52 = vsel %vm2383_vm6, %v6035_v0, %v2380_v28  ;;  %v2206_v0 = vor.u32 1.1754944e-38, %v2205_v30 }
 0x4bb   : > { %v2389_v14 = vsel %vm2386_vm7, %v2388_v11, %v2384_v52 }
 0x4bc   : > { %v2908_v40 = vmul.f32 %v7900_v56, %v2389_v14  ;;  %v2198_v20 = vadd.f32 %v6037_v19, %v2197_v42  ;;  %v1644_v56 = vsub.f32 %v7844_v31, %v8173_v22  ;;  %v1750_v31 = vmul.f32 1.442695, %v1643_v3 }
 0x4bd   : > { %1964 = vadd.xlane.f32.xlu0 %v1963_v32  ;;  %5566 = vmatmul.msk.f32.gmra.mxu0 %vm1407_vm2, %v2932_v60  ;;  %v8387_v57 = vpop.f32.mrf.mxu2 }
 0x4be   : > { %5542 = vmatmul.msk.f32.gmra.mxu1 %vm1407_vm2, %v2908_v40  ;;  %v2202_v17 = vsel %vm2201_vm10, %v6037_v19, %v2198_v20  ;;  %v1752_v63 = vmul.f32 1.442695, %v1644_v56  ;;  %v8383_v55 = vpop.xlane.xlu1 %1913  ;;  %v2527_v56 = vand.u32 2147483648, %v8298_v13 }
 0x4bf   : > { %v2207_v26 = vsel %vm2204_vm11, %v2206_v0, %v2202_v17 }
 0x4c0   : > { %v2895_v49 = vmul.f32 %v7911_v6, %v2207_v26  ;;  %v8385_v6 = vpop.eup %6040 }
 0x4c1   : > { %v2503_v41 = vmul.f32 %v8385_v6, %v8334_v37  ;;  %vm2508_vm4 = vweird.f32 %v8385_v6 }
 0x4c2   : > { %v1881_v29 = vpop.xlane.xlu0 %1880  ;;  %5529 = vmatmul.msk.f32.gmra.mxu3 %vm1407_vm2, %v2895_v49  ;;  %vm8478_vm7 = vmor %vm2507_vm3, %vm2508_vm4 }
 0x4c3   : > { %6042 = vrcp.f32 %v1881_v29  ;;  %v2401_v8 = vand.u32 2147483648, %v1881_v29  ;;  %v2399_v58 = vand.u32 2147483647, %v1881_v29  ;;  %v2504_v28 = vsub.f32 1.0, %v2503_v41 }
 0x4c4   : > { %6044 = vrcp.f32 %v8298_v13  ;;  %vm2395_vm13 = vweird.f32 %v1881_v29 }
 0x4c5   : > { %6046 = vpow2.f32 %v1752_v63  ;;  %v2402_v60 = vor.u32 1.1754944e-38, %v2401_v8  ;;  %v8425_v20 = vpop.f32.mrf.mxu2  ;;  %vm2400_vm15 = vcmp.eq.f32.partialorder %v2399_v58, 8.507059e+37  ;;  %v2505_v0 = vmul.f32 %v8385_v6, %v2504_v28 }
 0x4c6   : > { %v8412_v42 = vpop.xlane.xlu1 %1958  ;;  %v2511_v58 = vand.u32 2147483647, %v8334_v37 }
 0x4c7   : > { %v8456_v8 = vadd.f32 %v8385_v6, %v2505_v0 }
 0x4c9   : > { %v6043_v22 = vpop.eup %6042 }
 0x4ca   : > { %v2391_v19 = vmul.f32 %v6043_v22, %v1881_v29  ;;  %v8389_v44 = vpop.xlane.xlu0 %1952  ;;  %v8391_v2 = vpop.eup %6044  ;;  %vm2396_vm12 = vweird.f32 %v6043_v22 }
 0x4cb   : > { %6048 = vrcp.f32 %v8389_v44  ;;  %v2517_v61 = vmul.f32 %v8391_v2, %v8298_v13  ;;  %v8403_v48 = vpop.eup %6046  ;;  %vm8408_vm14 = vmor %vm2395_vm13, %vm2396_vm12  ;;  %vm2731_vm6 = vweird.f32 %v8389_v44  ;;  %vm2522_vm8 = vweird.f32 %v8391_v2 }
 0x4cc   : > { %6050 = vpow2.f32 %v1750_v31  ;;  %v2392_v39 = vsub.f32 1.0, %v2391_v19  ;;  %v8438_v1 = vsel %vm1407_vm2, %v8403_v48, 0.0  ;;  %vm2521_vm12 = vweird.f32 %v8298_v13 }
 0x4cd   : > { %6052 = vpow2.f32 %v1780_v9  ;;  %v2518_v52 = vsub.f32 1.0, %v2517_v61  ;;  %v2737_v9 = vand.u32 2147483648, %v8389_v44 }
 0x4ce   : > { %v2393_v24 = vmul.f32 %v6043_v22, %v2392_v39  ;;  %6054 = vrcp.f32 %v8367_v10 }
 0x4cf   : > { %v2519_v31 = vmul.f32 %v8391_v2, %v2518_v52 }
 0x4d0   : > { %v8401_v23 = vpop.xlane.xlu2 %1901  ;;  %v2394_v16 = vadd.f32 %v6043_v22, %v2393_v24  ;;  %v2735_v24 = vand.u32 2147483647, %v8389_v44 }
 0x4d1   : > { %6056 = vrcp.f32 %v8401_v23  ;;  %v8406_v4 = vpop.eup %6048  ;;  %5846 = vrot.lane.b32.xlu0 %v5845_v51, %s6208_s30  ;;  %v2499_v11 = vand.u32 2147483648, %v8401_v23  ;;  %vm2493_vm13 = vweird.f32 %v8401_v23 }
 0x4d2   : > { %v8415_v30 = vpop.eup %6050  ;;  %v2727_v14 = vmul.f32 %v8406_v4, %v8389_v44  ;;  %v8419_v45 = vpop.xlane.xlu0 %1883  ;;  %v2398_v32 = vsel %vm8408_vm14, %v6043_v22, %v2394_v16  ;;  %vm2732_vm5 = vweird.f32 %v8406_v4  ;;  %v2738_v16 = vor.u32 1.1754944e-38, %v2737_v9 }
 0x4d3   : > { %v8423_v40 = vpop.eup %6052  ;;  %6058 = vrcp.f32 %v8419_v45  ;;  %v2403_v26 = vsel %vm2400_vm15, %v2402_v60, %v2398_v32  ;;  %v1921_v3 = vsel %vm1407_vm2, %v8415_v30, 0.0  ;;  %vm2733_vm9 = vmor %vm2731_vm6, %vm2732_vm5  ;;  %vm2736_vm11 = vcmp.eq.f32.partialorder %v2735_v24, 8.507059e+37 }
 0x4d4   : > { %6060 = vrcp.f32 %v8412_v42  ;;  %v2728_v17 = vsub.f32 1.0, %v2727_v14  ;;  %v8430_v49 = vpop.eup %6054  ;;  %v2909_v29 = vmul.f32 %v7983_v35, %v2403_v26  ;;  %v8445_v19 = vsel %vm1407_vm2, %v8423_v40, 0.0 }
 0x4d5   : > { %v2513_v35 = vand.u32 2147483648, %v8334_v37  ;;  %v8462_v25 = vmul.f32 %v8430_v49, %v8367_v10  ;;  %v2497_v14 = vand.u32 2147483647, %v8401_v23  ;;  %v2510_v37 = vsel %vm8478_vm7, %v8385_v6, %v8456_v8  ;;  %v3658_v6 = vld [vmem:[%s9749_s3 + $0x10] sm:$0xff] }
 0x4d6   : > { %v2729_v22 = vmul.f32 %v8406_v4, %v2728_v17  ;;  %5543 = vmatmul.msk.f32.gmra.mxu1 %vm1407_vm2, %v2909_v29  ;;  %v8492_v29 = vpop.f32.mrf.mxu2  ;;  %3949 = vmatpush.msrb.mxu0 %v3658_v6  ;;  %v8512_v44 = vadd.f32 %v8391_v2, %v2519_v31  ;;  %vm2409_vm4 = vweird.f32 %v8419_v45  ;;  %vm2512_vm5 = vcmp.eq.f32.partialorder %v2511_v58, 8.507059e+37  ;;  %v8523_v31 = vpop.xlane.xlu1 %1916 }
 0x4d7   : > { %v6057_v63 = vpop.eup %6056  ;;  %vm2498_vm15 = vcmp.eq.f32.partialorder %v2497_v14, 8.507059e+37 }
 0x4d8   : > { %v2489_v41 = vmul.f32 %v6057_v63, %v8401_v23  ;;  %v1545_v39 = vpop.xlane.xlu2 %1544  ;;  %v2730_v61 = vadd.f32 %v8406_v4, %v2729_v22  ;;  %vm2494_vm10 = vweird.f32 %v6057_v63 }
 0x4d9   : > { %v8458_v12 = vpop.eup %6058  ;;  %v1645_v0 = vsub.f32 %v8048_v36, %v1545_v39  ;;  %v2413_v39 = vand.u32 2147483647, %v8419_v45  ;;  %vm2495_vm14 = vmor %vm2493_vm13, %vm2494_vm10 }
 0x4da   : > { %v2490_v51 = vsub.f32 1.0, %v2489_v41  ;;  %v8466_v28 = vpop.eup %6060  ;;  %v2405_v52 = vmul.f32 %v8458_v12, %v8419_v45  ;;  %v8471_v60 = vpop.xlane.xlu0 %1955  ;;  %v2734_v26 = vsel %vm2733_vm9, %v8406_v4, %v2730_v61  ;;  %v2500_v41 = vor.u32 1.1754944e-38, %v2499_v11  ;;  %vm8540_vm9 = vmor %vm2521_vm12, %vm2522_vm8 }
 0x4db   : > { %6062 = vrcp.f32 %v8471_v60  ;;  %v2755_v22 = vmul.f32 %v8466_v28, %v8412_v42  ;;  %v2739_v36 = vsel %vm2736_vm11, %v2738_v16, %v2734_v26  ;;  %v2415_v61 = vand.u32 2147483648, %v8419_v45 }
 0x4dc   : > { %v2491_v32 = vmul.f32 %v6057_v63, %v2490_v51  ;;  %v2406_v17 = vsub.f32 1.0, %v2405_v52  ;;  %v1754_v24 = vmul.f32 1.442695, %v1645_v0  ;;  %v2933_v8 = vmul.f32 %v8005_v54, %v2739_v36 }
 0x4dd   : > { %vm2410_vm3 = vweird.f32 %v8458_v12  ;;  %v2756_v0 = vsub.f32 1.0, %v2755_v22  ;;  %vm2414_vm7 = vcmp.eq.f32.partialorder %v2413_v39, 8.507059e+37  ;;  %v2751_v58 = vand.u32 2147483648, %v8471_v60 }
 0x4de   : > { %1922 = vadd.xlane.f32.xlu2 %v1921_v3  ;;  %v2492_v9 = vadd.f32 %v6057_v63, %v2491_v32  ;;  %v2407_v4 = vmul.f32 %v8458_v12, %v2406_v17  ;;  %v2514_v32 = vor.u32 1.1754944e-38, %v2513_v35  ;;  %5567 = vmatmul.msk.f32.gmra.mxu0 %vm1407_vm2, %v2933_v8  ;;  %vm2411_vm6 = vmor %vm2409_vm4, %vm2410_vm3  ;;  %v2416_v35 = vor.u32 1.1754944e-38, %v2415_v61 }
 0x4df   : > { %6064 = vpow2.f32 %v1754_v24  ;;  %v2749_v36 = vand.u32 2147483647, %v8471_v60  ;;  %v1659_v39 = vsub.f32 %v7934_v50, %v8359_v47  ;;  %v2524_v6 = vsel %vm8540_vm9, %v8391_v2, %v8512_v44 }
 0x4e0   : > { %v1590_v23 = vpop.xlane.xlu2 %1589  ;;  %v2496_v3 = vsel %vm2495_vm14, %v6057_v63, %v2492_v9  ;;  %v2408_v51 = vadd.f32 %v8458_v12, %v2407_v4  ;;  %v2528_v4 = vor.u32 1.1754944e-38, %v2527_v56  ;;  %vm2745_vm8 = vweird.f32 %v8471_v60 }
 0x4e1   : > { %v1660_v16 = vsub.f32 %v7974_v18, %v1590_v23  ;;  %v2501_v11 = vsel %vm2498_vm15, %v2500_v41, %v2496_v3  ;;  %v8509_v52 = vpop.eup %6062  ;;  %v2532_v18 = vsub.f32 1.0, %v8462_v25  ;;  %v2757_v25 = vmul.f32 %v8466_v28, %v2756_v0  ;;  %v8548_v41 = vpop.f32.mrf.mxu2 }
 0x4e2   : > { %v2916_v54 = vmul.f32 %v8016_v38, %v2501_v11  ;;  %v2741_v63 = vmul.f32 %v8509_v52, %v8471_v60  ;;  %v8519_v17 = vpop.xlane.xlu0 %1886  ;;  %1967 = vadd.xlane.f32.xlu1 %v8445_v19  ;;  %v2515_v38 = vsel %vm2512_vm5, %v2514_v32, %v2510_v37  ;;  %v2412_v26 = vsel %vm2411_vm6, %v8458_v12, %v2408_v51  ;;  %v3656_v19 = vld [vmem:[%s9749_s3] sm:$0xff] }
 0x4e3   : > { %v1784_v14 = vmul.f32 1.442695, %v1660_v16  ;;  %v2417_v22 = vsel %vm2414_vm7, %v2416_v35, %v2412_v26  ;;  %3723 = vmatpush.msra.mxu2 %v3656_v19  ;;  %vm2746_vm10 = vweird.f32 %v8509_v52  ;;  %v2533_v24 = vmul.f32 %v8430_v49, %v2532_v18 }
 0x4e4   : > { %5550 = vmatmul.msk.f32.gmra.mxu2 %vm1407_vm2, %v2916_v54  ;;  %v2742_v45 = vsub.f32 1.0, %v2741_v63  ;;  %v2910_v9 = vmul.f32 %v8028_v27, %v2417_v22  ;;  %vm2759_vm11 = vweird.f32 %v8412_v42  ;;  %vm2760_vm12 = vweird.f32 %v8466_v28  ;;  %vm2747_vm13 = vmor %vm2745_vm8, %vm2746_vm10  ;;  %v8594_v63 = vpop.xlane.xlu1 %1961 }
 0x4e5   : > { %6066 = vpow2.f32 %v1784_v14  ;;  %v8564_v56 = vpop.eup %6064  ;;  %v2752_v50 = vor.u32 1.1754944e-38, %v2751_v58  ;;  %v2917_v47 = vmul.f32 %v7921_v5, %v2515_v38  ;;  %v2758_v60 = vadd.f32 %v8466_v28, %v2757_v25  ;;  %vm8590_vm4 = vmor %vm2759_vm11, %vm2760_vm12 }
 0x4e6   : > { %6068 = vrcp.f32 %v8519_v17  ;;  %1925 = vadd.xlane.f32.xlu2 %v8438_v1  ;;  %v2743_v37 = vmul.f32 %v8509_v52, %v2742_v45  ;;  %v2525_v1 = vand.u32 2147483647, %v8298_v13  ;;  %5544 = vmatmul.msk.f32.gmra.mxu1 %vm1407_vm2, %v2910_v9  ;;  %vm2750_vm14 = vcmp.eq.f32.partialorder %v2749_v36, 8.507059e+37 }
 0x4e7   : > { %v2763_v3 = vand.u32 2147483647, %v8412_v42  ;;  %v2765_v51 = vand.u32 2147483648, %v8412_v42  ;;  %v1927_v44 = vsel %vm1407_vm2, %v8564_v56, 0.0  ;;  %vm2535_vm3 = vweird.f32 %v8367_v10 }
 0x4e8   : > { %v1548_v61 = vpop.xlane.xlu2 %1547  ;;  %v2744_v27 = vadd.f32 %v8509_v52, %v2743_v37  ;;  %vm2526_vm15 = vcmp.eq.f32.partialorder %v2525_v1, 8.507059e+37  ;;  %v2541_v32 = vand.u32 2147483648, %v8367_v10  ;;  %v1782_v0 = vmul.f32 1.442695, %v1659_v39 }
 0x4e9   : > { %v1646_v13 = vsub.f32 %v8092_v46, %v1548_v61  ;;  %vm2536_vm5 = vweird.f32 %v8430_v49  ;;  %v2529_v14 = vsel %vm2526_vm15, %v2528_v4, %v2524_v6  ;;  %v2762_v18 = vsel %vm8590_vm4, %v8466_v28, %v2758_v60  ;;  %v8605_v58 = vpop.f32.mrf.mxu2 }
 0x4ea   : > { %v2748_v46 = vsel %vm2747_vm13, %v8509_v52, %v2744_v27  ;;  %v2534_v35 = vadd.f32 %v8430_v49, %v2533_v24  ;;  %vm2764_vm6 = vcmp.eq.f32.partialorder %v2763_v3, 8.507059e+37  ;;  %v2766_v42 = vor.u32 1.1754944e-38, %v2765_v51  ;;  %vm8615_vm9 = vmor %vm2535_vm3, %vm2536_vm5  ;;  %v10044_v27 = vld [vmem:[#allocation43_spill] sm:$0xff] }
 0x4eb   : > { %v8571_v2 = vpop.eup %6066  ;;  %v1756_v8 = vmul.f32 1.442695, %v1646_v13  ;;  %v2753_v11 = vsel %vm2750_vm14, %v2752_v50, %v2748_v46  ;;  %v2429_v38 = vand.u32 2147483648, %v8519_v17  ;;  %v2427_v19 = vand.u32 2147483647, %v8519_v17  ;;  %v10046_v3 = vld [vmem:[#allocation7_spill] sm:$0xff] }
 0x4ec   : > { %v6069_v23 = vpop.eup %6068  ;;  %5551 = vmatmul.msk.f32.gmra.mxu2 %vm1407_vm2, %v2917_v47  ;;  %v1972_v16 = vsel %vm1407_vm2, %v8571_v2, 0.0  ;;  %v2934_v52 = vmul.f32 %v8055_v43, %v2753_v11  ;;  %v2539_v22 = vand.u32 2147483647, %v8367_v10  ;;  %v2918_v28 = vmul.f32 %v7889_v33, %v2529_v14  ;;  %v10047_v11 = vld [vmem:[#allocation11_spill] sm:$0xff] }
 0x4ed   : > { %v2419_v5 = vmul.f32 %v6069_v23, %v8519_v17  ;;  %6070 = vpow2.f32 %v1756_v8  ;;  %1973 = vadd.xlane.f32.xlu1 %v1972_v16  ;;  %vm2424_vm7 = vweird.f32 %v6069_v23  ;;  %v2767_v12 = vsel %vm2764_vm6, %v2766_v42, %v2762_v18 }
 0x4ee   : > { %1928 = vadd.xlane.f32.xlu2 %v1927_v44  ;;  %5568 = vmatmul.msk.f32.gmra.mxu0 %vm1407_vm2, %v2934_v52  ;;  %6072 = vpow2.f32 %v1782_v0  ;;  %vm2423_vm10 = vweird.f32 %v8519_v17  ;;  %v2542_v1 = vor.u32 1.1754944e-38, %v2541_v32  ;;  %v2430_v4 = vor.u32 1.1754944e-38, %v2429_v38 }
 0x4ef   : > { %v2420_v43 = vsub.f32 1.0, %v2419_v5  ;;  %vm2425_vm8 = vmor %vm2423_vm10, %vm2424_vm7  ;;  %v2538_v10 = vsel %vm8615_vm9, %v8430_v49, %v2534_v35  ;;  %vm2428_vm11 = vcmp.eq.f32.partialorder %v2427_v19, 8.507059e+37  ;;  %v2935_v61 = vmul.f32 %v7995_v59, %v2767_v12  ;;  %v1599_v49 = vpop.xlane.xlu1 %1598  ;;  %v10045_v59 = vld [vmem:[#allocation37_spill] sm:$0xff]  ;;  %v10048_v35 = vld [vmem:[#allocation38_spill] sm:$0xff] }
 0x4f0   : > { %v1593_v45 = vpop.xlane.xlu2 %1592  ;;  %vm2540_vm12 = vcmp.eq.f32.partialorder %v2539_v22, 8.507059e+37  ;;  %v1663_v5 = vsub.f32 %v10047_v11, %v1599_v49  ;;  %vm2549_vm14 = vweird.f32 %v8383_v55  ;;  %vm2563_vm5 = vweird.f32 %v8523_v31 }
 0x4f1   : > { %v2421_v26 = vmul.f32 %v6069_v23, %v2420_v43  ;;  %v1661_v25 = vsub.f32 %v8010_v34, %v1593_v45  ;;  %v2543_v50 = vsel %vm2540_vm12, %v2542_v1, %v2538_v10 }
 0x4f2   : > { %v2919_v51 = vmul.f32 %v10046_v3, %v2543_v50  ;;  %v1790_v14 = vmul.f32 1.442695, %v1663_v5  ;;  %v10049_v5 = vld [vmem:[#allocation12_spill] sm:$0xff] }
 0x4f3   : > { %v8609_v37 = vpop.eup %6070  ;;  %v2422_v9 = vadd.f32 %v6069_v23, %v2421_v26  ;;  %v1786_v34 = vmul.f32 1.442695, %v1661_v25 }
 0x4f4   : > { %5552 = vmatmul.msk.f32.gmra.mxu2 %vm1407_vm2, %v2918_v28  ;;  %v1930_v33 = vsel %vm1407_vm2, %v8609_v37, 0.0  ;;  %v8630_v47 = vpop.eup %6072 }
 0x4f5   : > { %6074 = vpow2.f32 %v1786_v34  ;;  %v2426_v39 = vsel %vm2425_vm8, %v6069_v23, %v2422_v9  ;;  %v5812_v17 = vpop.permute.xlu0 %5811  ;;  %v3365_v23 = vpop.f32.mrf.mxu2  ;;  %v1969_v52 = vsel %vm1407_vm2, %v8630_v47, 0.0 }
 0x4f6   : > { %6076 = vrcp.f32 %v8383_v55  ;;  %1931 = vadd.xlane.f32.xlu2 %v1930_v33  ;;  %v2431_v6 = vsel %vm2428_vm11, %v2430_v4, %v2426_v39  ;;  %v5813_v24 = vunpack.i.l.bf16 %v5812_v17  ;;  %5569 = vmatmul.msk.f32.gmra.mxu0 %vm1407_vm2, %v2935_v61  ;;  %v5814_v8 = vunpack.i.h.bf16 %v5812_v17 }
 0x4f7   : > { %v2911_v13 = vmul.f32 %v10044_v27, %v2431_v6  ;;  %v2555_v39 = vand.u32 2147483648, %v8383_v55 }
 0x4f8   : > { %v1551_v60 = vpop.xlane.xlu2 %1550  ;;  %3445 = vmatpush.msrb.mxu3 %v5813_v24  ;;  %v2553_v24 = vand.u32 2147483647, %v8383_v55 }
 0x4f9   : > { %5545 = vmatmul.msk.f32.gmra.mxu1 %vm1407_vm2, %v2911_v13  ;;  %v1647_v46 = vsub.f32 %v10045_v59, %v1551_v60 }
 0x4fa   : > { %3446 = vmatpush.msrb.mxu3 %v5814_v8  ;;  %vm2554_vm3 = vcmp.eq.f32.partialorder %v2553_v24, 8.507059e+37 }
 0x4fb   : > { %v8635_v16 = vpop.eup %6074  ;;  %v1758_v44 = vmul.f32 1.442695, %v1647_v46  ;;  %1970 = vadd.xlane.f32.xlu0 %v1969_v52  ;;  %v2567_v52 = vand.u32 2147483647, %v8523_v31 }
 0x4fc   : > { %v6077_v32 = vpop.eup %6076  ;;  %5553 = vmatmul.msk.f32.gmra.mxu2 %vm1407_vm2, %v2919_v51  ;;  %v1975_v0 = vsel %vm1407_vm2, %v8635_v16, 0.0  ;;  %v2569_v51 = vand.u32 2147483648, %v8523_v31 }
 0x4fd   : > { %6078 = vpow2.f32 %v1758_v44  ;;  %1976 = vadd.xlane.f32.xlu1 %v1975_v0  ;;  %v5822_v54 = vpop.permute.xlu0 %5821  ;;  %v2545_v43 = vmul.f32 %v6077_v32, %v8383_v55  ;;  %v3368_v25 = vpop.f32.mrf.mxu2  ;;  %vm2550_vm13 = vweird.f32 %v6077_v32  ;;  %vm2568_vm7 = vcmp.eq.f32.partialorder %v2567_v52, 8.507059e+37 }
 0x4fe   : > { %6080 = vrcp.f32 %v8523_v31  ;;  %5610 = vmatmul.msk.f32.vlgmr.msrb.gmra.mxu0 %vm710_vm1, %v3365_v23  ;;  %vm2551_vm15 = vmor %vm2549_vm14, %vm2550_vm13  ;;  %v5823_v13 = vunpack.i.l.bf16 %v5822_v54  ;;  %v5824_v60 = vunpack.i.h.bf16 %v5822_v54  ;;  %v2570_v0 = vor.u32 1.1754944e-38, %v2569_v51 }
 0x4ff   : > { %v2546_v45 = vsub.f32 1.0, %v2545_v43  ;;  %6082 = vpow2.f32 %v1790_v14  ;;  %vm2773_vm13 = vweird.f32 %v8594_v63 }
 0x500   : > { %v1596_v18 = vpop.xlane.xlu2 %1595 }
 0x501   : > { %v1662_v42 = vsub.f32 %v10048_v35, %v1596_v18  ;;  %v2547_v12 = vmul.f32 %v6077_v32, %v2546_v45  ;;  %v10050_v18 = vld [vmem:[#allocation48_spill] sm:$0xff] }
 0x503   : > { %v8647_v38 = vpop.eup %6078  ;;  %v1788_v26 = vmul.f32 1.442695, %v1662_v42 }
 0x504   : > { %v8649_v19 = vpop.eup %6080  ;;  %5578 = vmatmul.msk.f32.vlgmr.msra.gmra.mxu2 %vm710_vm1, %v8326_v15  ;;  %v1933_v22 = vsel %vm1407_vm2, %v8647_v38, 0.0  ;;  %v2548_v15 = vadd.f32 %v6077_v32, %v2547_v12 }
 0x505   : > { %6084 = vpow2.f32 %v1788_v26  ;;  %1934 = vadd.xlane.f32.xlu2 %v1933_v22  ;;  %v5827_v28 = vpop.permute.xlu0 %5826  ;;  %v2559_v36 = vmul.f32 %v8649_v19, %v8523_v31  ;;  %v8658_v1 = vpop.eup %6082  ;;  %vm2564_vm4 = vweird.f32 %v8649_v19 }
 0x506   : > { %v5828_v9 = vunpack.i.l.bf16 %v5827_v28  ;;  %5611 = vmatmul.msk.f32.gmra.mxu0 %vm710_vm1, %v3368_v25  ;;  %v1981_v17 = vsel %vm1407_vm2, %v8658_v1, 0.0  ;;  %v3371_v27 = vpop.f32.mrf.mxu2  ;;  %v2552_v50 = vsel %vm2551_vm15, %v6077_v32, %v2548_v15  ;;  %v5829_v23 = vunpack.i.h.bf16 %v5827_v28  ;;  %vm2565_vm6 = vmor %vm2563_vm5, %vm2564_vm4 }
 0x507   : > { %v2560_v10 = vsub.f32 1.0, %v2559_v36 }
 0x508   : > { %v5817_v34 = vpop.permute.xlu2 %5816  ;;  %3623 = vmatpush.msrb.mxu1 %v5828_v9 }
 0x509   : > { %v5818_v4 = vunpack.i.l.bf16 %v5817_v34  ;;  %v5819_v61 = vunpack.i.h.bf16 %v5817_v34  ;;  %v2561_v49 = vmul.f32 %v8649_v19, %v2560_v10 }
 0x50b   : > { %v8660_v33 = vpop.eup %6084  ;;  %3447 = vmatpush.msrb.mxu3 %v5818_v4  ;;  %v2562_v3 = vadd.f32 %v8649_v19, %v2561_v49 }
 0x50c   : > { %5579 = vmatmul.msk.f32.gmra.mxu2 %vm710_vm1, %v8353_v21  ;;  %v1978_v6 = vsel %vm1407_vm2, %v8660_v33, 0.0  ;;  %v2556_v21 = vor.u32 1.1754944e-38, %v2555_v39 }
 0x50d   : > { %1982 = vadd.xlane.f32.xlu2 %v1981_v17  ;;  %1979 = vadd.xlane.f32.xlu1 %v1978_v6  ;;  %v2566_v32 = vsel %vm2565_vm6, %v8649_v19, %v2562_v3  ;;  %v3098_v6 = vpop.f32.mrf.mxu3  ;;  %v10051_v3 = vld [vmem:[#allocation8_spill] sm:$0xff] }
 0x50e   : > { %3448 = vmatpush.msrb.mxu3 %v5819_v61  ;;  %5612 = vmatmul.msk.f32.gmra.mxu0 %vm710_vm1, %v3371_v27  ;;  %v2557_v46 = vsel %vm2554_vm3, %v2556_v21, %v2552_v50  ;;  %v2571_v43 = vsel %vm2568_vm7, %v2570_v0, %v2566_v32  ;;  %v2777_v50 = vand.u32 2147483647, %v8594_v63 }
 0x50f   : > { %v2920_v44 = vmul.f32 %v10049_v5, %v2557_v46  ;;  %v2921_v35 = vmul.f32 %v10050_v18, %v2571_v43 }
 0x510   : > { %3449 = vmatpush.msrb.mxu3 %v5823_v13  ;;  %v5832_v8 = vpop.permute.xlu2 %5831  ;;  %v2779_v13 = vand.u32 2147483648, %v8594_v63  ;;  %vm2778_vm15 = vcmp.eq.f32.partialorder %v2777_v50, 8.507059e+37 }
 0x511   : > { %v5833_v59 = vunpack.i.l.bf16 %v5832_v8  ;;  %v5834_v11 = vunpack.i.h.bf16 %v5832_v8 }
 0x512   : > { %3450 = vmatpush.msrb.mxu3 %v5824_v60  ;;  %v1920_v55 = vpop.xlane.xlu1 %1919  ;;  %v2780_v21 = vor.u32 1.1754944e-38, %v2779_v13 }
 0x513   : > { %3624 = vmatpush.msrb.mxu1 %v5833_v59  ;;  %6086 = vrcp.f32 %v1920_v55  ;;  %v2583_v42 = vand.u32 2147483648, %v1920_v55  ;;  %v2581_v31 = vand.u32 2147483647, %v1920_v55  ;;  %vm2577_vm10 = vweird.f32 %v1920_v55 }
 0x514   : > { %3451 = vmatpush.msrb.mxu3 %v5829_v23  ;;  %5580 = vmatmul.msk.f32.gmra.mxu2 %vm710_vm1, %v8371_v53  ;;  %6088 = vrcp.f32 %v8594_v63 }
 0x515   : > { %v2584_v25 = vor.u32 1.1754944e-38, %v2583_v42  ;;  %vm2582_vm11 = vcmp.eq.f32.partialorder %v2581_v31, 8.507059e+37  ;;  %v3101_v46 = vpop.f32.mrf.mxu3 }
 0x516   : > { %3452 = vmatpush.msrb.mxu3 %v5834_v11 }
 0x517   : > { %5554 = vmatmul.msk.f32.vlgmr.msrb.gmra.mxu3 %vm1407_vm2, %v2920_v44 }
 0x518   : > { %v5842_v9 = vpop.permute.xlu2 %5841 }
 0x519   : > { %v6087_v54 = vpop.eup %6086  ;;  %v5843_v15 = vunpack.i.l.bf16 %v5842_v9  ;;  %v5844_v39 = vunpack.i.h.bf16 %v5842_v9 }
 0x51a   : > { %v2573_v14 = vmul.f32 %v6087_v54, %v1920_v55  ;;  %vm2578_vm9 = vweird.f32 %v6087_v54  ;;  %v6089_v4 = vpop.eup %6088 }
 0x51b   : > { %vm2579_vm8 = vmor %vm2577_vm10, %vm2578_vm9  ;;  %vm2774_vm12 = vweird.f32 %v6089_v4 }
 0x51c   : > { %5581 = vmatmul.msk.f32.gmra.mxu2 %vm710_vm1, %v8387_v57  ;;  %v2574_v53 = vsub.f32 1.0, %v2573_v14  ;;  %vm2775_vm14 = vmor %vm2773_vm13, %vm2774_vm12 }
 0x51d   : > { %v3104_v52 = vpop.f32.mrf.mxu3 }
 0x51e   : > { %v2575_v45 = vmul.f32 %v6087_v54, %v2574_v53  ;;  %v3374_v26 = vpop.f32.mrf.mxu2 }
 0x51f   : > { %5555 = vmatmul.msk.f32.gmra.mxu3 %vm1407_vm2, %v2921_v35  ;;  %5613 = vmatmul.msk.f32.gmra.mxu0 %vm710_vm1, %v3374_v26 }
 0x520   : > { %v2576_v19 = vadd.f32 %v6087_v54, %v2575_v45 }
 0x522   : > { %v2580_v22 = vsel %vm2579_vm8, %v6087_v54, %v2576_v19  ;;  %v8709_v54 = vpop.f32.mrf.mxu0 }
 0x523   : > { %v2585_v57 = vsel %vm2582_vm11, %v2584_v25, %v2580_v22 }
 0x524   : > { %5582 = vmatmul.msk.f32.gmra.mxu2 %vm710_vm1, %v8425_v20  ;;  %v2922_v28 = vmul.f32 %v8263_v62, %v2585_v57  ;;  %v2769_v20 = vmul.f32 %v6089_v4, %v8594_v63 }
 0x525   : > { %v3107_v14 = vpop.f32.mrf.mxu3 }
 0x526   : > { %v2770_v62 = vsub.f32 1.0, %v2769_v20 }
 0x527   : > { %5556 = vmatmul.msk.f32.gmra.mxu3 %vm1407_vm2, %v2922_v28 }
 0x528   : > { %v2771_v17 = vmul.f32 %v6089_v4, %v2770_v62 }
 0x52a   : > { %v5837_v12 = vpop.permute.xlu1 %5836  ;;  %v2772_v24 = vadd.f32 %v6089_v4, %v2771_v17  ;;  %v8713_v31 = vpop.f32.mrf.mxu0 }
 0x52b   : > { %v5838_v36 = vunpack.i.l.bf16 %v5837_v12  ;;  %v5839_v34 = vunpack.i.h.bf16 %v5837_v12 }
 0x52c   : > { %5583 = vmatmul.msk.f32.gmra.mxu2 %vm710_vm1, %v8492_v29  ;;  %v2776_v49 = vsel %vm2775_vm14, %v6089_v4, %v2772_v24 }
 0x52d   : > { %3625 = vmatpush.msrb.mxu1 %v5838_v36  ;;  %v2781_v8 = vsel %vm2778_vm15, %v2780_v21, %v2776_v49  ;;  %v3110_v36 = vpop.f32.mrf.mxu3 }
 0x52e   : > { %v2936_v51 = vmul.f32 %v10051_v3, %v2781_v8 }
 0x52f   : > { %3626 = vmatpush.msrb.mxu1 %v5839_v34 }
 0x530   : > { %v1965_v10 = vpop.xlane.xlu0 %1964 }
 0x531   : > { %6090 = vrcp.f32 %v1965_v10  ;;  %3627 = vmatpush.msrb.mxu1 %v5843_v15  ;;  %v2793_v23 = vand.u32 2147483648, %v1965_v10  ;;  %vm2787_vm4 = vweird.f32 %v1965_v10  ;;  %v2791_v63 = vand.u32 2147483647, %v1965_v10 }
 0x533   : > { %3628 = vmatpush.msrb.mxu1 %v5844_v39  ;;  %v2794_v5 = vor.u32 1.1754944e-38, %v2793_v23  ;;  %vm2792_vm6 = vcmp.eq.f32.partialorder %v2791_v63, 8.507059e+37 }
 0x534   : > { %5584 = vmatmul.msk.f32.gmra.mxu2 %vm710_vm1, %v8548_v41 }
 0x537   : > { %v6091_v61 = vpop.eup %6090 }
 0x538   : > { %v2783_v29 = vmul.f32 %v6091_v61, %v1965_v10  ;;  %vm2788_vm3 = vweird.f32 %v6091_v61 }
 0x539   : > { %vm2789_vm5 = vmor %vm2787_vm4, %vm2788_vm3 }
 0x53a   : > { %v2784_v27 = vsub.f32 1.0, %v2783_v29 }
 0x53c   : > { %5585 = vmatmul.msk.f32.gmra.mxu2 %vm710_vm1, %v8605_v58  ;;  %v2785_v41 = vmul.f32 %v6091_v61, %v2784_v27 }
 0x53e   : > { %v2786_v59 = vadd.f32 %v6091_v61, %v2785_v41 }
 0x540   : > { %v2790_v11 = vsel %vm2789_vm5, %v6091_v61, %v2786_v59 }
 0x541   : > { %v2795_v44 = vsel %vm2792_vm6, %v2794_v5, %v2790_v11 }
 0x542   : > { %v2937_v32 = vmul.f32 %v8356_v7, %v2795_v44 }
 0x543   : > { %v5847_v60 = vpop.permute.xlu0 %5846 }
 0x544   : > { %5586 = vmatmul.msk.f32.gmra.mxu2 %vm710_vm1, %v3098_v6  ;;  %v5848_v58 = vunpack.i.l.bf16 %v5847_v60  ;;  %v5849_v55 = vunpack.i.h.bf16 %v5847_v60  ;;  %v8720_v60 = vpop.f32.mrf.mxu0 }
 0x546   : > { %3629 = vmatpush.msrb.mxu1 %v5848_v58 }
 0x548   : > { %3630 = vmatpush.msrb.mxu1 %v5849_v55  ;;  %v3113_v55 = vpop.f32.mrf.mxu3 }
 0x549   : > { %5570 = vmatmul.msk.f32.vlgmr.msrb.gmra.mxu1 %vm1407_vm2, %v2936_v51 }
 0x54c   : > { %5587 = vmatmul.msk.f32.gmra.mxu2 %vm710_vm1, %v3101_v46 }
 0x551   : > { %v1923_v0 = vpop.xlane.xlu2 %1922  ;;  %5571 = vmatmul.msk.f32.gmra.mxu1 %vm1407_vm2, %v2937_v32 }
 0x552   : > { %6092 = vrcp.f32 %v1923_v0  ;;  %v2597_v19 = vand.u32 2147483648, %v1923_v0  ;;  %v2595_v25 = vand.u32 2147483647, %v1923_v0  ;;  %vm2591_vm9 = vweird.f32 %v1923_v0 }
 0x554   : > { %5588 = vmatmul.msk.f32.gmra.mxu2 %vm710_vm1, %v3104_v52  ;;  %v2598_v10 = vor.u32 1.1754944e-38, %v2597_v19  ;;  %vm2596_vm11 = vcmp.eq.f32.partialorder %v2595_v25, 8.507059e+37 }
 0x555   : > { %v1968_v43 = vpop.xlane.xlu1 %1967 }
 0x556   : > { %6094 = vrcp.f32 %v1968_v43  ;;  %v2807_v28 = vand.u32 2147483648, %v1968_v43  ;;  %v2805_v15 = vand.u32 2147483647, %v1968_v43  ;;  %vm2801_vm12 = vweird.f32 %v1968_v43 }
 0x558   : > { %v6093_v53 = vpop.eup %6092  ;;  %v2808_v62 = vor.u32 1.1754944e-38, %v2807_v28  ;;  %vm2806_vm15 = vcmp.eq.f32.partialorder %v2805_v15, 8.507059e+37 }
 0x559   : > { %v2587_v18 = vmul.f32 %v6093_v53, %v1923_v0  ;;  %v1926_v35 = vpop.xlane.xlu2 %1925  ;;  %vm2592_vm7 = vweird.f32 %v6093_v53 }
 0x55a   : > { %6096 = vrcp.f32 %v1926_v35  ;;  %vm2593_vm8 = vmor %vm2591_vm9, %vm2592_vm7  ;;  %v2611_v29 = vand.u32 2147483648, %v1926_v35  ;;  %v2609_v24 = vand.u32 2147483647, %v1926_v35  ;;  %vm2605_vm3 = vweird.f32 %v1926_v35 }
 0x55b   : > { %v2588_v42 = vsub.f32 1.0, %v2587_v18 }
 0x55c   : > { %5589 = vmatmul.msk.f32.gmra.mxu2 %vm710_vm1, %v3107_v14  ;;  %v6095_v45 = vpop.eup %6094  ;;  %v2612_v58 = vor.u32 1.1754944e-38, %v2611_v29  ;;  %vm2610_vm5 = vcmp.eq.f32.partialorder %v2609_v24, 8.507059e+37 }
 0x55d   : > { %v2589_v7 = vmul.f32 %v6093_v53, %v2588_v42  ;;  %v2797_v26 = vmul.f32 %v6095_v45, %v1968_v43  ;;  %vm2802_vm10 = vweird.f32 %v6095_v45 }
 0x55e   : > { %vm2803_vm13 = vmor %vm2801_vm12, %vm2802_vm10 }
 0x55f   : > { %v2798_v57 = vsub.f32 1.0, %v2797_v26  ;;  %v2590_v12 = vadd.f32 %v6093_v53, %v2589_v7 }
 0x560   : > { %v6097_v22 = vpop.eup %6096  ;;  %v8725_v59 = vpop.xlane.xlu1 %1973 }
 0x561   : > { %v2601_v9 = vmul.f32 %v6097_v22, %v1926_v35  ;;  %v8715_v34 = vpop.xlane.xlu2 %1928  ;;  %v2799_v4 = vmul.f32 %v6095_v45, %v2798_v57  ;;  %v2594_v61 = vsel %vm2593_vm8, %v6093_v53, %v2590_v12  ;;  %vm2606_vm14 = vweird.f32 %v6097_v22  ;;  %v8741_v53 = vpop.f32.mrf.mxu0  ;;  %v3657_v57 = vld [vmem:[%s9749_s3 + $0x8] sm:$0xff] }
 0x562   : > { %6098 = vrcp.f32 %v8715_v34  ;;  %v2599_v6 = vsel %vm2596_vm11, %v2598_v10, %v2594_v61  ;;  %vm2607_vm4 = vmor %vm2605_vm3, %vm2606_vm14  ;;  %v2625_v11 = vand.u32 2147483648, %v8715_v34  ;;  %v2623_v44 = vand.u32 2147483647, %v8715_v34  ;;  %v3116_v35 = vpop.f32.mrf.mxu3  ;;  %3836 = vmatpush.msra.mxu3 %v3657_v57 }
 0x563   : > { %v2602_v20 = vsub.f32 1.0, %v2601_v9  ;;  %v2800_v39 = vadd.f32 %v6095_v45, %v2799_v4  ;;  %v2923_v27 = vmul.f32 %v8415_v30, %v2599_v6  ;;  %vm2619_vm7 = vweird.f32 %v8715_v34 }
 0x564   : > { %5590 = vmatmul.msk.f32.gmra.mxu2 %vm710_vm1, %v3110_v36  ;;  %v2626_v18 = vor.u32 1.1754944e-38, %v2625_v11  ;;  %vm2624_vm10 = vcmp.eq.f32.partialorder %v2623_v44, 8.507059e+37 }
 0x565   : > { %v2603_v17 = vmul.f32 %v6097_v22, %v2602_v20  ;;  %v2804_v13 = vsel %vm2803_vm13, %v6095_v45, %v2800_v39  ;;  %5557 = vmatmul.msk.f32.gmra.mxu3 %vm1407_vm2, %v2923_v27 }
 0x566   : > { %v2809_v41 = vsel %vm2806_vm15, %v2808_v62, %v2804_v13 }
 0x567   : > { %v2604_v50 = vadd.f32 %v6097_v22, %v2603_v17  ;;  %v3377_v49 = vpop.f32.mrf.mxu2  ;;  %v2938_v8 = vmul.f32 %v8423_v40, %v2809_v41 }
 0x568   : > { %v6099_v21 = vpop.eup %6098  ;;  %5614 = vmatmul.msk.f32.gmra.mxu0 %vm710_vm1, %v3377_v49 }
 0x569   : > { %v2615_v30 = vmul.f32 %v6099_v21, %v8715_v34  ;;  %v1932_v46 = vpop.xlane.xlu2 %1931  ;;  %v2608_v23 = vsel %vm2607_vm4, %v6097_v22, %v2604_v50  ;;  %5572 = vmatmul.msk.f32.gmra.mxu1 %vm1407_vm2, %v2938_v8  ;;  %vm2620_vm6 = vweird.f32 %v6099_v21  ;;  %v8758_v24 = vpop.f32.mrf.mxu0 }
 0x56a   : > { %6100 = vrcp.f32 %v1932_v46  ;;  %v2613_v51 = vsel %vm2610_vm5, %v2612_v58, %v2608_v23  ;;  %vm2621_vm9 = vmor %vm2619_vm7, %vm2620_vm6  ;;  %v2639_v25 = vand.u32 2147483648, %v1932_v46  ;;  %v2637_v12 = vand.u32 2147483647, %v1932_v46  ;;  %v3119_v61 = vpop.f32.mrf.mxu3 }
 0x56b   : > { %v2616_v3 = vsub.f32 1.0, %v2615_v30  ;;  %6102 = vrcp.f32 %v8725_v59  ;;  %v2924_v40 = vmul.f32 %v8403_v48, %v2613_v51  ;;  %vm2633_vm11 = vweird.f32 %v1932_v46 }
 0x56c   : > { %5591 = vmatmul.msk.f32.gmra.mxu2 %vm710_vm1, %v3113_v55  ;;  %vm2638_vm13 = vcmp.eq.f32.partialorder %v2637_v12, 8.507059e+37  ;;  %v2835_v51 = vand.u32 2147483648, %v8725_v59  ;;  %vm2829_vm6 = vweird.f32 %v8725_v59 }
 0x56d   : > { %v2617_v63 = vmul.f32 %v6099_v21, %v2616_v3  ;;  %5558 = vmatmul.msk.f32.gmra.mxu3 %vm1407_vm2, %v2924_v40 }
 0x56e   : > { %v1971_v52 = vpop.xlane.xlu0 %1970 }
 0x56f   : > { %v2618_v5 = vadd.f32 %v6099_v21, %v2617_v63  ;;  %v3380_v32 = vpop.f32.mrf.mxu2  ;;  %6104 = vrcp.f32 %v1971_v52  ;;  %v2821_v39 = vand.u32 2147483648, %v1971_v52  ;;  %v2819_v29 = vand.u32 2147483647, %v1971_v52 }
 0x570   : > { %v6101_v0 = vpop.eup %6100  ;;  %5615 = vmatmul.msk.f32.gmra.mxu0 %vm710_vm1, %v3380_v32  ;;  %v8737_v14 = vpop.xlane.xlu1 %1976  ;;  %vm2815_vm15 = vweird.f32 %v1971_v52  ;;  %v2833_v63 = vand.u32 2147483647, %v8725_v59 }
 0x571   : > { %v2629_v43 = vmul.f32 %v6101_v0, %v1932_v46  ;;  %v8739_v48 = vpop.eup %6102  ;;  %v2622_v45 = vsel %vm2621_vm9, %v6099_v21, %v2618_v5  ;;  %6106 = vrcp.f32 %v8737_v14  ;;  %vm2634_vm8 = vweird.f32 %v6101_v0 }
 0x572   : > { %v2627_v7 = vsel %vm2624_vm10, %v2626_v18, %v2622_v45  ;;  %v2825_v26 = vmul.f32 %v8739_v48, %v8725_v59  ;;  %vm2635_vm12 = vmor %vm2633_vm11, %vm2634_vm8  ;;  %v2822_v41 = vor.u32 1.1754944e-38, %v2821_v39  ;;  %vm2820_vm4 = vcmp.eq.f32.partialorder %v2819_v29, 8.507059e+37 }
 0x573   : > { %v2630_v42 = vsub.f32 1.0, %v2629_v43  ;;  %v2925_v22 = vmul.f32 %v8564_v56, %v2627_v7  ;;  %v2640_v56 = vor.u32 1.1754944e-38, %v2639_v25  ;;  %vm2830_vm5 = vweird.f32 %v8739_v48  ;;  %v8794_v43 = vpop.f32.mrf.mxu0 }
 0x574   : > { %5592 = vmatmul.msk.f32.gmra.mxu2 %vm710_vm1, %v3116_v35  ;;  %v2826_v15 = vsub.f32 1.0, %v2825_v26  ;;  %vm8780_vm7 = vmor %vm2829_vm6, %vm2830_vm5  ;;  %v2836_v18 = vor.u32 1.1754944e-38, %v2835_v51  ;;  %vm2834_vm8 = vcmp.eq.f32.partialorder %v2833_v63, 8.507059e+37  ;;  %v2849_v57 = vand.u32 2147483648, %v8737_v14 }
 0x575   : > { %v2631_v19 = vmul.f32 %v6101_v0, %v2630_v42  ;;  %v6105_v28 = vpop.eup %6104  ;;  %5559 = vmatmul.msk.f32.gmra.mxu3 %vm1407_vm2, %v2925_v22 }
 0x576   : > { %v2811_v9 = vmul.f32 %v6105_v28, %v1971_v52  ;;  %vm2816_vm14 = vweird.f32 %v6105_v28  ;;  %v2827_v13 = vmul.f32 %v8739_v48, %v2826_v15 }
 0x577   : > { %v2632_v36 = vadd.f32 %v6101_v0, %v2631_v19  ;;  %v3383_v34 = vpop.f32.mrf.mxu2  ;;  %v8756_v20 = vpop.eup %6106  ;;  %vm2817_vm3 = vmor %vm2815_vm15, %vm2816_vm14  ;;  %vm2843_vm14 = vweird.f32 %v8737_v14 }
 0x578   : > { %v8752_v4 = vpop.xlane.xlu2 %1934  ;;  %5616 = vmatmul.msk.f32.gmra.mxu0 %vm710_vm1, %v3383_v34  ;;  %v2812_v10 = vsub.f32 1.0, %v2811_v9  ;;  %v2839_v49 = vmul.f32 %v8756_v20, %v8737_v14  ;;  %v2828_v23 = vadd.f32 %v8739_v48, %v2827_v13 }
 0x579   : > { %6108 = vrcp.f32 %v8752_v4  ;;  %v2636_v62 = vsel %vm2635_vm12, %v6101_v0, %v2632_v36  ;;  %v2653_v11 = vand.u32 2147483648, %v8752_v4  ;;  %v2651_v32 = vand.u32 2147483647, %v8752_v4 }
 0x57a   : > { %v2813_v17 = vmul.f32 %v6105_v28, %v2812_v10  ;;  %v2641_v6 = vsel %vm2638_vm13, %v2640_v56, %v2636_v62  ;;  %v2840_v55 = vsub.f32 1.0, %v2839_v49  ;;  %v2832_v59 = vsel %vm8780_vm7, %v8739_v48, %v2828_v23 }
 0x57b   : > { %v2926_v27 = vmul.f32 %v8609_v37, %v2641_v6  ;;  %vm2647_vm10 = vweird.f32 %v8752_v4  ;;  %v2654_v45 = vor.u32 1.1754944e-38, %v2653_v11  ;;  %vm2652_vm12 = vcmp.eq.f32.partialorder %v2651_v32, 8.507059e+37  ;;  %v3205_v10 = vpop.f32.mrf.mxu0 }
 0x57c   : > { %5593 = vmatmul.msk.f32.gmra.mxu2 %vm710_vm1, %v3119_v61  ;;  %v2814_v50 = vadd.f32 %v6105_v28, %v2813_v17  ;;  %v2841_v0 = vmul.f32 %v8756_v20, %v2840_v55  ;;  %v2837_v26 = vsel %vm2834_vm8, %v2836_v18, %v2832_v59  ;;  %vm2844_vm13 = vweird.f32 %v8756_v20 }
 0x57d   : > { %5560 = vmatmul.msk.f32.gmra.mxu3 %vm1407_vm2, %v2926_v27  ;;  %v2847_v36 = vand.u32 2147483647, %v8737_v14  ;;  %v2940_v9 = vmul.f32 %v8571_v2, %v2837_v26  ;;  %vm2845_vm15 = vmor %vm2843_vm14, %vm2844_vm13  ;;  %v2850_v56 = vor.u32 1.1754944e-38, %v2849_v57 }
 0x57e   : > { %v2818_v58 = vsel %vm2817_vm3, %v6105_v28, %v2814_v50  ;;  %v2842_v19 = vadd.f32 %v8756_v20, %v2841_v0 }
 0x57f   : > { %v6109_v21 = vpop.eup %6108  ;;  %v3386_v8 = vpop.f32.mrf.mxu2  ;;  %v2823_v37 = vsel %vm2820_vm4, %v2822_v41, %v2818_v58  ;;  %vm2848_vm3 = vcmp.eq.f32.partialorder %v2847_v36, 8.507059e+37 }
 0x580   : > { %v2643_v30 = vmul.f32 %v6109_v21, %v8752_v4  ;;  %v8767_v46 = vpop.xlane.xlu1 %1979  ;;  %5617 = vmatmul.msk.f32.gmra.mxu0 %vm710_vm1, %v3386_v8  ;;  %v8773_v3 = vpop.xlane.xlu2 %1982  ;;  %v2939_v5 = vmul.f32 %v8630_v47, %v2823_v37  ;;  %vm2648_vm9 = vweird.f32 %v6109_v21  ;;  %v3659_v47 = vld [vmem:[%s9749_s3 + $0x18] sm:$0xff]  ;;  %v2846_v15 = vsel %vm2845_vm15, %v8756_v20, %v2842_v19 }
 0x581   : > { %6110 = vrcp.f32 %v8767_v46  ;;  %4062 = vmatpush.msra.mxu1 %v3659_v47  ;;  %vm2649_vm11 = vmor %vm2647_vm10, %vm2648_vm9  ;;  %v2863_v14 = vand.u32 2147483648, %v8767_v46  ;;  %vm2857_vm5 = vweird.f32 %v8767_v46  ;;  %v2861_v2 = vand.u32 2147483647, %v8767_v46  ;;  %v3276_v37 = vpop.f32.mrf.mxu1 }
 0x582   : > { %v2644_v40 = vsub.f32 1.0, %v2643_v30  ;;  %6112 = vrcp.f32 %v8773_v3  ;;  %5573 = vmatmul.msk.f32.gmra.mxu1 %vm1407_vm2, %v2939_v5  ;;  %v2877_v50 = vand.u32 2147483648, %v8773_v3  ;;  %vm2871_vm10 = vweird.f32 %v8773_v3 }
 0x583   : > { %v2864_v29 = vor.u32 1.1754944e-38, %v2863_v14  ;;  %vm2862_vm7 = vcmp.eq.f32.partialorder %v2861_v2, 8.507059e+37  ;;  %v3208_v13 = vpop.f32.mrf.mxu0 }
 0x584   : > { %v2645_v52 = vmul.f32 %v6109_v21, %v2644_v40 }
 0x586   : > { %v2646_v35 = vadd.f32 %v6109_v21, %v2645_v52 }
 0x587   : > { %v6111_v42 = vpop.eup %6110  ;;  %v3725_v26 = vpop.f32.mrf.mxu2 }
 0x588   : > { %v2853_v7 = vmul.f32 %v6111_v42, %v8767_v46  ;;  %v2650_v48 = vsel %vm2649_vm11, %v6109_v21, %v2646_v35  ;;  %v6113_v22 = vpop.eup %6112  ;;  %vm2858_vm4 = vweird.f32 %v6111_v42  ;;  %v2878_v21 = vor.u32 1.1754944e-38, %v2877_v50 }
 0x589   : > { %v2655_v25 = vsel %vm2652_vm12, %v2654_v45, %v2650_v48  ;;  %v2867_v4 = vmul.f32 %v6113_v22, %v8773_v3  ;;  %vm2859_vm6 = vmor %vm2857_vm5, %vm2858_vm4  ;;  %vm2872_vm9 = vweird.f32 %v6113_v22  ;;  %v3279_v23 = vpop.f32.mrf.mxu1  ;;  %v4112_v36 = vsel %vm468_vm0, %v3725_v26, 0.0 }
 0x58a   : > { %v2854_v28 = vsub.f32 1.0, %v2853_v7  ;;  %v2927_v12 = vmul.f32 %v8647_v38, %v2655_v25  ;;  %5574 = vmatmul.msk.f32.gmra.mxu1 %vm1407_vm2, %v2940_v9  ;;  %v2851_v38 = vsel %vm2848_vm3, %v2850_v56, %v2846_v15  ;;  %vm2873_vm8 = vmor %vm2871_vm10, %vm2872_vm9 }
 0x58b   : > { %v2868_v62 = vsub.f32 1.0, %v2867_v4  ;;  %v2941_v61 = vmul.f32 %v8635_v16, %v2851_v38  ;;  %v2875_v16 = vand.u32 2147483647, %v8773_v3  ;;  %v3543_v58 = vpop.f32.mrf.mxu0 }
 0x58c   : > { %5561 = vmatmul.msk.f32.gmra.mxu3 %vm1407_vm2, %v2927_v12  ;;  %v2855_v34 = vmul.f32 %v6111_v42, %v2854_v28 }
 0x58d   : > { %v2869_v20 = vmul.f32 %v6113_v22, %v2868_v62  ;;  %vm2876_vm11 = vcmp.eq.f32.partialorder %v2875_v16, 8.507059e+37 }
 0x58e   : > { %v2856_v39 = vadd.f32 %v6111_v42, %v2855_v34 }
 0x58f   : > { %v2870_v27 = vadd.f32 %v6113_v22, %v2869_v20  ;;  %v3728_v57 = vpop.f32.mrf.mxu2 }
 0x590   : > { %v2860_v17 = vsel %vm2859_vm6, %v6111_v42, %v2856_v39  ;;  %v8873_v39 = vld [vmem:[%s9750_s4] ss:$0 sm:$0xff] }
 0x591   : > { %v2865_v6 = vsel %vm2862_vm7, %v2864_v29, %v2860_v17  ;;  %v3282_v55 = vpop.f32.mrf.mxu1  ;;  %v6180_v29 = vld [vmem:[%s6308_s22] sm:$0xff] }
 0x592   : > { %5575 = vmatmul.msk.f32.gmra.mxu1 %vm1407_vm2, %v2941_v61  ;;  %v2942_v41 = vmul.f32 %v8660_v33, %v2865_v6  ;;  %v4119_v61 = vsel %vm468_vm0, %v3728_v57, 0.0 }
 0x594   : > { %5594 = vmatmul.msk.f32.vlgmr.msra.gmra.mxu3 %vm710_vm1, %v8709_v54  ;;  %v2874_v54 = vsel %vm2873_vm8, %v6113_v22, %v2870_v27 }
 0x595   : > { %v2879_v8 = vsel %vm2876_vm11, %v2878_v21, %v2874_v54 }
 0x596   : > { %v2943_v46 = vmul.f32 %v8658_v1, %v2879_v8 }
 0x597   : > { %v3731_v56 = vpop.f32.mrf.mxu2 }
 0x59a   : > { %v3454_v49 = vpop.f32.mrf.mxu3  ;;  %5576 = vmatmul.msk.f32.gmra.mxu1 %vm1407_vm2, %v2942_v41 }
 0x59b   : > { %5618 = vmatmul.msk.f32.gmra.mxu0 %vm710_vm1, %v3454_v49 }
 0x59c   : > { %5595 = vmatmul.msk.f32.gmra.mxu3 %vm710_vm1, %v8713_v31  ;;  %v3546_v31 = vpop.f32.mrf.mxu0 }
 0x59f   : > { %v3734_v8 = vpop.f32.mrf.mxu2 }
 0x5a2   : > { %v3457_v30 = vpop.f32.mrf.mxu3  ;;  %5577 = vmatmul.msk.f32.gmra.mxu1 %vm1407_vm2, %v2943_v46 }
 0x5a3   : > { %5619 = vmatmul.msk.f32.gmra.mxu0 %vm710_vm1, %v3457_v30  ;;  %v4126_v30 = vsel %vm468_vm0, %v3731_v56, 0.0 }
 0x5a4   : > { %5596 = vmatmul.msk.f32.gmra.mxu3 %vm710_vm1, %v8720_v60  ;;  %v3549_v1 = vpop.f32.mrf.mxu0  ;;  %v3285_v60 = vpop.f32.mrf.mxu1 }
 0x5aa   : > { %v3460_v33 = vpop.f32.mrf.mxu3  ;;  %5626 = vmatmul.msk.f32.vlgmr.msra.gmra.mxu1 %vm710_vm1, %v3543_v58 }
 0x5ab   : > { %5620 = vmatmul.msk.f32.gmra.mxu0 %vm710_vm1, %v3460_v33  ;;  %v6181_v33 = vld [vmem:[%s6308_s22 + $0x8] sm:$0xff] }
 0x5ac   : > { %5597 = vmatmul.msk.f32.gmra.mxu3 %vm710_vm1, %v8741_v53  ;;  %v3552_v3 = vpop.f32.mrf.mxu0  ;;  %v3288_v53 = vpop.f32.mrf.mxu1 }
 0x5b2   : > { %5627 = vmatmul.msk.f32.gmra.mxu1 %vm710_vm1, %v3546_v31 }
 0x5b4   : > { %5598 = vmatmul.msk.f32.gmra.mxu3 %vm710_vm1, %v8758_v24  ;;  %v3555_v51 = vpop.f32.mrf.mxu0  ;;  %v3291_v24 = vpop.f32.mrf.mxu1 }
 0x5ba   : > { %5628 = vmatmul.msk.f32.gmra.mxu1 %vm710_vm1, %v3549_v1 }
 0x5bc   : > { %5599 = vmatmul.msk.f32.gmra.mxu3 %vm710_vm1, %v8794_v43  ;;  %v3558_v40 = vpop.f32.mrf.mxu0  ;;  %v3294_v63 = vpop.f32.mrf.mxu1 }
 0x5c2   : > { %5629 = vmatmul.msk.f32.gmra.mxu1 %vm710_vm1, %v3552_v3 }
 0x5c4   : > { %5600 = vmatmul.msk.f32.gmra.mxu3 %vm710_vm1, %v3205_v10  ;;  %v3561_v11 = vpop.f32.mrf.mxu0  ;;  %v3297_v5 = vpop.f32.mrf.mxu1 }
 0x5ca   : > { %5630 = vmatmul.msk.f32.gmra.mxu1 %vm710_vm1, %v3555_v51 }
 0x5cc   : > { %5601 = vmatmul.msk.f32.gmra.mxu3 %vm710_vm1, %v3208_v13  ;;  %v3564_v44 = vpop.f32.mrf.mxu0  ;;  %v3632_v52 = vpop.f32.mrf.mxu1 }
 0x5d2   : > { %5631 = vmatmul.msk.f32.gmra.mxu1 %vm710_vm1, %v3558_v40 }
 0x5d4   : > { %5602 = vmatmul.msk.f32.gmra.mxu3 %vm710_vm1, %v3276_v37  ;;  %v3635_v0 = vpop.f32.mrf.mxu1  ;;  %v3951_v25 = vpop.f32.mrf.mxu0 }
 0x5d5   : > { %v4115_v15 = vsel %vm468_vm0, %v3951_v25, 0.0 }
 0x5da   : > { %5632 = vmatmul.msk.f32.gmra.mxu1 %vm710_vm1, %v3561_v11  ;;  %v3737_v11 = vpop.f32.mrf.mxu2 }
 0x5dc   : > { %5603 = vmatmul.msk.f32.gmra.mxu3 %vm710_vm1, %v3279_v23  ;;  %v3954_v34 = vpop.f32.mrf.mxu0 }
 0x5dd   : > { %v4122_v27 = vsel %vm468_vm0, %v3954_v34, 0.0 }
 0x5e2   : > { %5633 = vmatmul.msk.f32.gmra.mxu1 %vm710_vm1, %v3564_v44  ;;  %v3740_v25 = vpop.f32.mrf.mxu2 }
 0x5e4   : > { %5604 = vmatmul.msk.f32.gmra.mxu3 %vm710_vm1, %v3282_v55  ;;  %v3957_v13 = vpop.f32.mrf.mxu0 }
 0x5e5   : > { %v4129_v23 = vsel %vm468_vm0, %v3957_v13, 0.0 }
 0x5e6   : > { %v3638_v47 = vpop.f32.mrf.mxu1 }
 0x5e8   : > { %v3463_v32 = vpop.f32.mrf.mxu3 }
 0x5e9   : > { %5621 = vmatmul.msk.f32.gmra.mxu0 %vm710_vm1, %v3463_v32 }
 0x5ea   : > { %5634 = vmatmul.msk.f32.gmra.mxu1 %vm710_vm1, %v3632_v52  ;;  %v6182_v52 = vld [vmem:[%s6308_s22 + $0x10] sm:$0xff] }
 0x5ec   : > { %5605 = vmatmul.msk.f32.gmra.mxu3 %vm710_vm1, %v3285_v60  ;;  %v3960_v1 = vpop.f32.mrf.mxu0 }
 0x5f0   : > { %v3466_v59 = vpop.f32.mrf.mxu3 }
 0x5f1   : > { %5622 = vmatmul.msk.f32.gmra.mxu0 %vm710_vm1, %v3466_v59 }
 0x5f2   : > { %5635 = vmatmul.msk.f32.gmra.mxu1 %vm710_vm1, %v3635_v0  ;;  %v4136_v0 = vsel %vm468_vm0, %v3960_v1, 0.0 }
 0x5f4   : > { %5606 = vmatmul.msk.f32.gmra.mxu3 %vm710_vm1, %v3288_v53  ;;  %v3963_v59 = vpop.f32.mrf.mxu0 }
 0x5f8   : > { %v3469_v43 = vpop.f32.mrf.mxu3 }
 0x5f9   : > { %5623 = vmatmul.msk.f32.gmra.mxu0 %vm710_vm1, %v3469_v43 }
 0x5fa   : > { %5636 = vmatmul.msk.f32.gmra.mxu1 %vm710_vm1, %v3638_v47 }
 0x5fc   : > { %5607 = vmatmul.msk.f32.gmra.mxu3 %vm710_vm1, %v3291_v24 }
 0x5ff   : > { %v3641_v18 = vpop.f32.mrf.mxu1 }
 0x600   : > { %v3472_v35 = vpop.f32.mrf.mxu3 }
 0x601   : > { %5624 = vmatmul.msk.f32.gmra.mxu0 %vm710_vm1, %v3472_v35 }
 0x602   : > { %5637 = vmatmul.msk.f32.gmra.mxu1 %vm710_vm1, %v3641_v18 }
 0x604   : > { %5608 = vmatmul.msk.f32.gmra.mxu3 %vm710_vm1, %v3294_v63  ;;  %v4133_v63 = vsel %vm468_vm0, %v3734_v8, 0.0 }
 0x607   : > { %v3644_v42 = vpop.f32.mrf.mxu1 }
 0x60a   : > { %5638 = vmatmul.msk.f32.gmra.mxu1 %vm710_vm1, %v3644_v42 }
 0x60c   : > { %5609 = vmatmul.msk.f32.gmra.mxu3 %vm710_vm1, %v3297_v5 }
 0x60f   : > { %v3475_v45 = vpop.f32.mrf.mxu3  ;;  %v3647_v7 = vpop.f32.mrf.mxu1 }
 0x610   : > { %5625 = vmatmul.msk.f32.gmra.mxu0 %vm710_vm1, %v3475_v45 }
 0x612   : > { %5639 = vmatmul.msk.f32.gmra.mxu1 %vm710_vm1, %v3647_v7  ;;  %v4140_v7 = vsel %vm468_vm0, %v3737_v11, 0.0 }
 0x617   : > { %v3838_v48 = vpop.f32.mrf.mxu3  ;;  %v3650_v19 = vpop.f32.mrf.mxu1 }
 0x618   : > { %v4113_v12 = vsel %vm468_vm0, %v3838_v48, 0.0 }
 0x619   : > { %v4114_v9 = vadd.f32 %v4113_v12, %v4112_v36 }
 0x61a   : > { %5640 = vmatmul.msk.f32.gmra.mxu1 %vm710_vm1, %v3650_v19 }
 0x61b   : > { %v4116_v38 = vadd.f32 %v4115_v15, %v4114_v9  ;;  %v3966_v15 = vpop.f32.mrf.mxu0 }
 0x61f   : > { %v3841_v22 = vpop.f32.mrf.mxu3  ;;  %v3653_v28 = vpop.f32.mrf.mxu1 }
 0x620   : > { %v4120_v62 = vsel %vm468_vm0, %v3841_v22, 0.0  ;;  %v6183_v22 = vld [vmem:[%s6308_s22 + $0x18] sm:$0xff] }
 0x621   : > { %v4121_v20 = vadd.f32 %v4120_v62, %v4119_v61 }
 0x622   : > { %5641 = vmatmul.msk.f32.gmra.mxu1 %vm710_vm1, %v3653_v28  ;;  %v4143_v28 = vsel %vm468_vm0, %v3963_v59, 0.0 }
 0x623   : > { %v4123_v16 = vadd.f32 %v4122_v27, %v4121_v20  ;;  %v4150_v20 = vsel %vm468_vm0, %v3966_v15, 0.0 }
 0x627   : > { %v3844_v4 = vpop.f32.mrf.mxu3  ;;  %v4064_v10 = vpop.f32.mrf.mxu1 }
 0x628   : > { %v4117_v14 = vsel %vm468_vm0, %v4064_v10, 0.0  ;;  %v4127_v54 = vsel %vm468_vm0, %v3844_v4, 0.0  ;;  %v4147_v10 = vsel %vm468_vm0, %v3740_v25, 0.0 }
 0x629   : > { %v4118_v2 = vadd.f32 %v4117_v14, %v4116_v38  ;;  %v4128_v46 = vadd.f32 %v4127_v54, %v4126_v30  ;;  %v3969_v54 = vpop.f32.mrf.mxu0 }
 0x62b   : > { %v4228_v17 = vadd.f32 %v8873_v39, %v4118_v2  ;;  %v4130_v60 = vadd.f32 %v4129_v23, %v4128_v46  ;;  %v6184_v2 = vld [vmem:[%s6308_s22 + $0x20] sm:$0xff]  ;;  %v4157_v46 = vsel %vm468_vm0, %v3969_v54, 0.0 }
 0x62d   : > { %v8880_v6 = vadd.f32 %v6180_v29, %v4228_v17  ;;  %v3743_v17 = vpop.f32.mrf.mxu2 }
 0x62f   : > { %v3847_v50 = vpop.f32.mrf.mxu3  ;;  %v4067_v49 = vpop.f32.mrf.mxu1  ;;  %v4260_v41 = vsel %vm468_vm0, %v8880_v6, 0.0 }
 0x630   : > { %v4124_v21 = vsel %vm468_vm0, %v4067_v49, 0.0  ;;  %4261 = vadd.xlane.f32.xlu1 %v4260_v41  ;;  %v4134_v53 = vsel %vm468_vm0, %v3847_v50, 0.0  ;;  %v4154_v41 = vsel %vm468_vm0, %v3743_v17, 0.0 }
 0x631   : > { %v4125_v58 = vadd.f32 %v4124_v21, %v4123_v16  ;;  %v4135_v5 = vadd.f32 %v4134_v53, %v4133_v63 }
 0x633   : > { %v4229_v37 = vadd.f32 %v8873_v39, %v4125_v58  ;;  %v4137_v43 = vadd.f32 %v4136_v0, %v4135_v5  ;;  %v6185_v58 = vld [vmem:[%s6308_s22 + $0x28] sm:$0xff]  ;;  %v3972_v0 = vpop.f32.mrf.mxu0 }
 0x634   : > { %v4164_v25 = vsel %vm468_vm0, %v3972_v0, 0.0 }
 0x635   : > { %v8890_v31 = vadd.f32 %v6181_v33, %v4229_v37  ;;  %v3746_v11 = vpop.f32.mrf.mxu2 }
 0x637   : > { %v4070_v55 = vpop.f32.mrf.mxu1  ;;  %v4263_v3 = vsel %vm468_vm0, %v8890_v31, 0.0  ;;  %v3850_v24 = vpop.f32.mrf.mxu3 }
 0x638   : > { %v4131_v51 = vsel %vm468_vm0, %v4070_v55, 0.0  ;;  %4264 = vadd.xlane.f32.xlu2 %v4263_v3  ;;  %v4141_v35 = vsel %vm468_vm0, %v3850_v24, 0.0  ;;  %v6186_v3 = vld [vmem:[%s6308_s22 + $0x30] sm:$0xff]  ;;  %v6209_v24 = vmov 32.0  }
 0x639   : > { %v4132_v40 = vadd.f32 %v4131_v51, %v4130_v60  ;;  %v4142_v26 = vadd.f32 %v4141_v35, %v4140_v7  ;;  %6114 = vrcp.f32 %v6209_v24 }
 0x63b   : > { %v4230_v44 = vadd.f32 %v8873_v39, %v4132_v40  ;;  %v4144_v36 = vadd.f32 %v4143_v28, %v4142_v26  ;;  %v3975_v7 = vpop.f32.mrf.mxu0 }
 0x63c   : > { %v4171_v17 = vsel %vm468_vm0, %v3975_v7, 0.0 }
 0x63d   : > { %v8900_v32 = vadd.f32 %v6182_v52, %v4230_v44 }
 0x63f   : > { %v4073_v47 = vpop.f32.mrf.mxu1  ;;  %v4266_v18 = vsel %vm468_vm0, %v8900_v32, 0.0  ;;  %v3853_v48 = vpop.f32.mrf.mxu3 }
 0x640   : > { %v4138_v42 = vsel %vm468_vm0, %v4073_v47, 0.0  ;;  %4267 = vadd.xlane.f32.xlu1 %v4266_v18  ;;  %v4148_v34 = vsel %vm468_vm0, %v3853_v48, 0.0  ;;  %v6115_v40 = vpop.eup %6114 }
 0x641   : > { %v4139_v45 = vadd.f32 %v4138_v42, %v4137_v43  ;;  %v4149_v38 = vadd.f32 %v4148_v34, %v4147_v10  ;;  %v4309_v5 = vmul.f32 32.0, %v6115_v40  ;;  %v3749_v43 = vpop.f32.mrf.mxu2  ;;  %vm4313_vm1 = vweird.f32 %v6115_v40 }
 0x643   : > { %v4231_v19 = vadd.f32 %v8873_v39, %v4139_v45  ;;  %v4151_v27 = vadd.f32 %v4150_v20, %v4149_v38  ;;  %v4310_v52 = vsub.f32 1.0, %v4309_v5  ;;  %v4161_v45 = vsel %vm468_vm0, %v3746_v11, 0.0 }
 0x645   : > { %v8910_v57 = vadd.f32 %v6183_v22, %v4231_v19  ;;  %v4311_v47 = vmul.f32 %v6115_v40, %v4310_v52  ;;  %v6188_v52 = vld [vmem:[%s6308_s22 + $0x40] sm:$0xff] }
 0x647   : > { %v4076_v12 = vpop.f32.mrf.mxu1  ;;  %v4269_v9 = vsel %vm468_vm0, %v8910_v57, 0.0  ;;  %v3856_v14 = vpop.f32.mrf.mxu3  ;;  %v4312_v35 = vadd.f32 %v6115_v40, %v4311_v47 }
 0x648   : > { %v4145_v4 = vsel %vm468_vm0, %v4076_v12, 0.0  ;;  %4270 = vadd.xlane.f32.xlu2 %v4269_v9  ;;  %v4155_v50 = vsel %vm468_vm0, %v3856_v14, 0.0  ;;  %v3978_v14 = vpop.f32.mrf.mxu0 }
 0x649   : > { %v4146_v56 = vadd.f32 %v4145_v4, %v4144_v36  ;;  %v4156_v21 = vadd.f32 %v4155_v50, %v4154_v41  ;;  %v8944_v48 = vsel %vm4313_vm1, %v6115_v40, %v4312_v35  ;;  %v3752_v12 = vpop.f32.mrf.mxu2 }
 0x64b   : > { %v4232_v62 = vadd.f32 %v8873_v39, %v4146_v56  ;;  %v4158_v33 = vadd.f32 %v4157_v46, %v4156_v21  ;;  %v4168_v56 = vsel %vm468_vm0, %v3749_v43, 0.0  ;;  %v6187_v21 = vld [vmem:[%s6308_s22 + $0x38] sm:$0xff] }
 0x64d   : > { %v8920_v61 = vadd.f32 %v6184_v2, %v4232_v62 }
 0x64f   : > { %v4079_v29 = vpop.f32.mrf.mxu1  ;;  %v4272_v13 = vsel %vm468_vm0, %v8920_v61, 0.0  ;;  %v3859_v63 = vpop.f32.mrf.mxu3 }
 0x650   : > { %v4152_v49 = vsel %vm468_vm0, %v4079_v29, 0.0  ;;  %4273 = vadd.xlane.f32.xlu0 %v4272_v13  ;;  %v4162_v18 = vsel %vm468_vm0, %v3859_v63, 0.0 }
 0x651   : > { %v4153_v16 = vadd.f32 %v4152_v49, %v4151_v27  ;;  %v4163_v26 = vadd.f32 %v4162_v18, %v4161_v45 }
 0x653   : > { %v4233_v8 = vadd.f32 %v8873_v39, %v4153_v16  ;;  %v4165_v36 = vadd.f32 %v4164_v25, %v4163_v26  ;;  %v3755_v16 = vpop.f32.mrf.mxu2 }
 0x655   : > { %v8930_v30 = vadd.f32 %v6185_v58, %v4233_v8  ;;  %v4175_v58 = vsel %vm468_vm0, %v3752_v12, 0.0 }
 0x657   : > { %v4082_v37 = vpop.f32.mrf.mxu1  ;;  %v4275_v23 = vsel %vm468_vm0, %v8930_v30, 0.0  ;;  %v3862_v59 = vpop.f32.mrf.mxu3 }
 0x658   : > { %v4159_v1 = vsel %vm468_vm0, %v4082_v37, 0.0  ;;  %4276 = vadd.xlane.f32.xlu1 %v4275_v23  ;;  %v4169_v34 = vsel %vm468_vm0, %v3862_v59, 0.0  ;;  %v4182_v59 = vsel %vm468_vm0, %v3755_v16, 0.0 }
 0x659   : > { %v4160_v55 = vadd.f32 %v4159_v1, %v4158_v33  ;;  %v4170_v10 = vadd.f32 %v4169_v34, %v4168_v56  ;;  %v6189_v34 = vld [vmem:[%s6308_s22 + $0x48] sm:$0xff] }
 0x65b   : > { %v4234_v60 = vadd.f32 %v8873_v39, %v4160_v55  ;;  %v4172_v13 = vadd.f32 %v4171_v17, %v4170_v10  ;;  %v3758_v47 = vpop.f32.mrf.mxu2 }
 0x65c   : > { %v4189_v56 = vsel %vm468_vm0, %v3758_v47, 0.0 }
 0x65d   : > { %v8938_v53 = vadd.f32 %v6186_v3, %v4234_v60 }
 0x65f   : > { %v4278_v51 = vsel %vm468_vm0, %v8938_v53, 0.0  ;;  %v4085_v44 = vpop.f32.mrf.mxu1  ;;  %v3865_v19 = vpop.f32.mrf.mxu3 }
 0x660   : > { %4279 = vadd.xlane.f32.xlu0 %v4278_v51  ;;  %v4166_v22 = vsel %vm468_vm0, %v4085_v44, 0.0  ;;  %v4176_v49 = vsel %vm468_vm0, %v3865_v19, 0.0  ;;  %v3981_v51 = vpop.f32.mrf.mxu0 }
 0x661   : > { %v4167_v4 = vadd.f32 %v4166_v22, %v4165_v36  ;;  %v4177_v46 = vadd.f32 %v4176_v49, %v4175_v58  ;;  %v6190_v58 = vld [vmem:[%s6308_s22 + $0x50] sm:$0xff] }
 0x663   : > { %v4235_v2 = vadd.f32 %v8873_v39, %v4167_v4 }
 0x665   : > { %v8966_v8 = vadd.f32 %v6187_v21, %v4235_v2 }
 0x667   : > { %v4088_v42 = vpop.f32.mrf.mxu1  ;;  %v4281_v55 = vsel %vm468_vm0, %v8966_v8, 0.0 }
 0x668   : > { %v4173_v29 = vsel %vm468_vm0, %v4088_v42, 0.0  ;;  %v3984_v19 = vpop.f32.mrf.mxu0 }
 0x669   : > { %v4174_v41 = vadd.f32 %v4173_v29, %v4172_v13  ;;  %v4192_v17 = vsel %vm468_vm0, %v3984_v19, 0.0 }
 0x66b   : > { %v4236_v33 = vadd.f32 %v8873_v39, %v4174_v41 }
 0x66d   : > { %v8983_v0 = vadd.f32 %v6188_v52, %v4236_v33 }
 0x66f   : > { %v4091_v38 = vpop.f32.mrf.mxu1  ;;  %v4284_v45 = vsel %vm468_vm0, %v8983_v0, 0.0 }
 0x670   : > { %v4180_v60 = vsel %vm468_vm0, %v4091_v38, 0.0  ;;  %v3987_v49 = vpop.f32.mrf.mxu0 }
 0x677   : > { %v4094_v23 = vpop.f32.mrf.mxu1 }
 0x678   : > { %v4187_v7 = vsel %vm468_vm0, %v4094_v23, 0.0 }
 0x67f   : > { %v4097_v22 = vpop.f32.mrf.mxu1 }
 0x680   : > { %v4194_v29 = vsel %vm468_vm0, %v4097_v22, 0.0 }
 0x687   : > { %v4100_v41 = vpop.f32.mrf.mxu1 }
 0x6a3   : > { %v4262_v28 = vpop.xlane.xlu1 %4261 }
 0x6a4   : > { %v4315_v9 = vmul.f32 %v8944_v48, %v4262_v28 }
 0x6a6   : > { %v8951_v15 = vsub.f32 %v8880_v6, %v4315_v9  ;;  %v3868_v6 = vpop.f32.mrf.mxu3 }
 0x6a7   : > { %v4183_v63 = vsel %vm468_vm0, %v3868_v6, 0.0 }
 0x6a8   : > { %v4347_v62 = vmul.f32 %v8951_v15, %v8951_v15  ;;  %v4184_v43 = vadd.f32 %v4183_v63, %v4182_v59  ;;  %v6191_v59 = vld [vmem:[%s6308_s22 + $0x58] sm:$0xff] }
 0x6aa   : > { %v4363_v20 = vsel %vm468_vm0, %v4347_v62, 0.0 }
 0x6ab   : > { %v4265_v27 = vpop.xlane.xlu2 %4264  ;;  %4364 = vadd.xlane.f32.xlu2 %v4363_v20 }
 0x6ac   : > { %v4316_v50 = vmul.f32 %v8944_v48, %v4265_v27 }
 0x6ae   : > { %v8963_v54 = vsub.f32 %v8890_v31, %v4316_v50  ;;  %v4178_v31 = vsel %vm468_vm0, %v3978_v14, 0.0  ;;  %v3871_v11 = vpop.f32.mrf.mxu3  ;;  %v3761_v14 = vpop.f32.mrf.mxu2 }
 0x6af   : > { %v4179_v24 = vadd.f32 %v4178_v31, %v4177_v46  ;;  %v4190_v12 = vsel %vm468_vm0, %v3871_v11, 0.0 }
 0x6b0   : > { %v4348_v37 = vmul.f32 %v8963_v54, %v8963_v54  ;;  %v4191_v10 = vadd.f32 %v4190_v12, %v4189_v56 }
 0x6b1   : > { %v4181_v5 = vadd.f32 %v4180_v60, %v4179_v24 }
 0x6b2   : > { %v4366_v1 = vsel %vm468_vm0, %v4348_v37, 0.0  ;;  %v4193_v6 = vadd.f32 %v4192_v17, %v4191_v10  ;;  %v4196_v37 = vsel %vm468_vm0, %v3761_v14, 0.0 }
 0x6b3   : > { %v4268_v3 = vpop.xlane.xlu1 %4267  ;;  %4367 = vadd.xlane.f32.xlu1 %v4366_v1  ;;  %4282 = vadd.xlane.f32.xlu2 %v4281_v55  ;;  %v4237_v35 = vadd.f32 %v8873_v39, %v4181_v5 }
 0x6b4   : > { %v4317_v40 = vmul.f32 %v8944_v48, %v4268_v3  ;;  %v4195_v16 = vadd.f32 %v4194_v29, %v4193_v6  ;;  %v4201_v3 = vsel %vm468_vm0, %v4100_v41, 0.0 }
 0x6b5   : > { %v9000_v4 = vadd.f32 %v6189_v34, %v4237_v35  ;;  %v6192_v34 = vld [vmem:[%s6308_s22 + $0x60] sm:$0xff] }
 0x6b6   : > { %v8980_v44 = vsub.f32 %v8900_v32, %v4317_v40  ;;  %v4185_v32 = vsel %vm468_vm0, %v3981_v51, 0.0  ;;  %v3874_v38 = vpop.f32.mrf.mxu3  ;;  %v4239_v55 = vadd.f32 %v8873_v39, %v4195_v16  ;;  %v3764_v24 = vpop.f32.mrf.mxu2 }
 0x6b7   : > { %v4186_v25 = vadd.f32 %v4185_v32, %v4184_v43  ;;  %v4197_v50 = vsel %vm468_vm0, %v3874_v38, 0.0  ;;  %v4203_v43 = vsel %vm468_vm0, %v3764_v24, 0.0 }
 0x6b8   : > { %v4349_v18 = vmul.f32 %v8980_v44, %v8980_v44  ;;  %v4198_v33 = vadd.f32 %v4197_v50, %v4196_v37  ;;  %v9034_v47 = vadd.f32 %v6191_v59, %v4239_v55  ;;  %v4662_v37 = vld [vmem:[%s9753_s7 + $0x18] sm:$0xff] }
 0x6b9   : > { %v4188_v36 = vadd.f32 %v4187_v7, %v4186_v25  ;;  %4727 = vmatpush.msrb.mxu2 %v4662_v37 }
 0x6ba   : > { %v4369_v42 = vsel %vm468_vm0, %v4349_v18, 0.0  ;;  %v3990_v18 = vpop.f32.mrf.mxu0 }
 0x6bb   : > { %v4271_v26 = vpop.xlane.xlu2 %4270  ;;  %4370 = vadd.xlane.f32.xlu0 %v4369_v42  ;;  %4285 = vadd.xlane.f32.xlu1 %v4284_v45  ;;  %v4238_v2 = vadd.f32 %v8873_v39, %v4188_v36  ;;  %v4103_v42 = vpop.f32.mrf.mxu1 }
 0x6bc   : > { %v4318_v28 = vmul.f32 %v8944_v48, %v4271_v26  ;;  %v4206_v26 = vsel %vm468_vm0, %v3990_v18, 0.0  ;;  %v4208_v19 = vsel %vm468_vm0, %v4103_v42, 0.0 }
 0x6bd   : > { %v9017_v46 = vadd.f32 %v6190_v58, %v4238_v2  ;;  %v6193_v2 = vld [vmem:[%s6308_s22 + $0x68] sm:$0xff] }
 0x6be   : > { %v8997_v9 = vsub.f32 %v8910_v57, %v4318_v28  ;;  %v4287_v57 = vsel %vm468_vm0, %v9000_v4, 0.0  ;;  %v3877_v1 = vpop.f32.mrf.mxu3  ;;  %v3767_v17 = vpop.f32.mrf.mxu2 }
 0x6bf   : > { %v4290_v60 = vsel %vm468_vm0, %v9017_v46, 0.0  ;;  %v4204_v11 = vsel %vm468_vm0, %v3877_v1, 0.0 }
 0x6c0   : > { %v4350_v62 = vmul.f32 %v8997_v9, %v8997_v9  ;;  %v4205_v35 = vadd.f32 %v4204_v11, %v4203_v43 }
 0x6c2   : > { %v4372_v20 = vsel %vm468_vm0, %v4350_v62, 0.0  ;;  %v4207_v22 = vadd.f32 %v4206_v26, %v4205_v35  ;;  %v3993_v16 = vpop.f32.mrf.mxu0  ;;  %v4659_v26 = vld [vmem:[%s9753_s7] sm:$0xff] }
 0x6c3   : > { %v4274_v27 = vpop.xlane.xlu0 %4273  ;;  %4373 = vadd.xlane.f32.xlu2 %v4372_v20  ;;  %4288 = vadd.xlane.f32.xlu0 %v4287_v57 }
 0x6c4   : > { %v4319_v13 = vmul.f32 %v8944_v48, %v4274_v27  ;;  %v4209_v12 = vadd.f32 %v4208_v19, %v4207_v22 }
 0x6c6   : > { %v9014_v21 = vsub.f32 %v8920_v61, %v4319_v13  ;;  %v4199_v61 = vsel %vm468_vm0, %v3987_v49, 0.0  ;;  %v4241_v38 = vadd.f32 %v8873_v39, %v4209_v12  ;;  %v3880_v57 = vpop.f32.mrf.mxu3  ;;  %v4106_v13 = vpop.f32.mrf.mxu1  ;;  %v4210_v49 = vsel %vm468_vm0, %v3767_v17, 0.0  ;;  %v6194_v17 = vld [vmem:[%s6308_s22 + $0x70] sm:$0xff] }
 0x6c7   : > { %v4200_v40 = vadd.f32 %v4199_v61, %v4198_v33  ;;  %v4211_v6 = vsel %vm468_vm0, %v3880_v57, 0.0  ;;  %v4661_v33 = vld [vmem:[%s9753_s7 + $0x10] sm:$0xff]  ;;  %v4215_v1 = vsel %vm468_vm0, %v4106_v13, 0.0  ;;  %v9110_v13 = vld [vmem:[%s9751_s5] ss:$0 sm:$0xff] }
 0x6c8   : > { %v4351_v23 = vmul.f32 %v9014_v21, %v9014_v21  ;;  %v9059_v20 = vadd.f32 %v6193_v2, %v4241_v38  ;;  %v4212_v41 = vadd.f32 %v4211_v6, %v4210_v49  ;;  %4728 = vmatpush.msrb.mxu2 %v4661_v33 }
 0x6c9   : > { %v4202_v5 = vadd.f32 %v4201_v3, %v4200_v40 }
 0x6ca   : > { %v4375_v31 = vsel %vm468_vm0, %v4351_v23, 0.0  ;;  %v4213_v23 = vsel %vm468_vm0, %v3993_v16, 0.0  ;;  %v3996_v18 = vpop.f32.mrf.mxu0 }
 0x6cb   : > { %v4277_v51 = vpop.xlane.xlu1 %4276  ;;  %4376 = vadd.xlane.f32.xlu1 %v4375_v31  ;;  %4291 = vadd.xlane.f32.xlu2 %v4290_v60  ;;  %v4240_v32 = vadd.f32 %v8873_v39, %v4202_v5  ;;  %v3770_v60 = vpop.f32.mrf.mxu2  ;;  %v4214_v61 = vadd.f32 %v4213_v23, %v4212_v41  ;;  %v4220_v19 = vsel %vm468_vm0, %v3996_v18, 0.0 }
 0x6cc   : > { %v4320_v63 = vmul.f32 %v8944_v48, %v4277_v51  ;;  %v4217_v59 = vsel %vm468_vm0, %v3770_v60, 0.0 }
 0x6cd   : > { %v9050_v56 = vadd.f32 %v6192_v34, %v4240_v32 }
 0x6ce   : > { %v9031_v52 = vsub.f32 %v8930_v30, %v4320_v63  ;;  %v4293_v30 = vsel %vm468_vm0, %v9034_v47, 0.0  ;;  %v3883_v58 = vpop.f32.mrf.mxu3  ;;  %v4216_v63 = vadd.f32 %v4215_v1, %v4214_v61  ;;  %v4109_v42 = vpop.f32.mrf.mxu1 }
 0x6cf   : > { %v4296_v14 = vsel %vm468_vm0, %v9050_v56, 0.0  ;;  %v4218_v24 = vsel %vm468_vm0, %v3883_v58, 0.0 }
 0x6d0   : > { %v4352_v45 = vmul.f32 %v9031_v52, %v9031_v52  ;;  %v4219_v35 = vadd.f32 %v4218_v24, %v4217_v59 }
 0x6d2   : > { %v4378_v7 = vsel %vm468_vm0, %v4352_v45, 0.0  ;;  %v4221_v34 = vadd.f32 %v4220_v19, %v4219_v35 }
 0x6d3   : > { %v4280_v25 = vpop.xlane.xlu0 %4279  ;;  %4379 = vadd.xlane.f32.xlu0 %v4378_v7  ;;  %4294 = vadd.xlane.f32.xlu1 %v4293_v30  ;;  %v4242_v7 = vadd.f32 %v8873_v39, %v4216_v63 }
 0x6d4   : > { %v4321_v28 = vmul.f32 %v8944_v48, %v4280_v25  ;;  %v4222_v25 = vsel %vm468_vm0, %v4109_v42, 0.0 }
 0x6d5   : > { %v4223_v2 = vadd.f32 %v4222_v25, %v4221_v34 }
 0x6d6   : > { %v9047_v36 = vsub.f32 %v8938_v53, %v4321_v28  ;;  %v4299_v53 = vsel %vm468_vm0, %v9059_v20, 0.0 }
 0x6d7   : > { %v4243_v41 = vadd.f32 %v8873_v39, %v4223_v2 }
 0x6d8   : > { %v4353_v10 = vmul.f32 %v9047_v36, %v9047_v36 }
 0x6da   : > { %v4381_v62 = vsel %vm468_vm0, %v4353_v10, 0.0 }
 0x6db   : > { %4382 = vadd.xlane.f32.xlu2 %v4381_v62  ;;  %4297 = vadd.xlane.f32.xlu0 %v4296_v14 }
 0x6e3   : > { %4300 = vadd.xlane.f32.xlu2 %v4299_v53 }
 0x71e   : > { %v4365_v29 = vpop.xlane.xlu2 %4364 }
 0x71f   : > { %v4411_v27 = vmul.f32 %v4365_v29, %v8944_v48  ;;  %v9104_v29 = vadd.f32 %v6194_v17, %v4242_v7 }
 0x721   : > { %v4427_v50 = vadd.f32 1e-05, %v4411_v27  ;;  %v4302_v33 = vsel %vm468_vm0, %v9104_v29, 0.0 }
 0x723   : > { %6116 = vrsqrt.f32 %v4427_v50  ;;  %vm4449_vm12 = vweird.f32 %v4427_v50 }
 0x726   : > { %v4368_v55 = vpop.xlane.xlu1 %4367  ;;  %v4283_v31 = vpop.xlane.xlu2 %4282 }
 0x727   : > { %v4412_v3 = vmul.f32 %v4368_v55, %v8944_v48  ;;  %v4322_v51 = vmul.f32 %v8944_v48, %v4283_v31 }
 0x729   : > { %v6117_v40 = vpop.eup %6116  ;;  %v9077_v11 = vadd.f32 1e-05, %v4412_v3  ;;  %v9080_v5 = vsub.f32 %v8966_v8, %v4322_v51  ;;  %v4660_v8 = vld [vmem:[%s9753_s7 + $0x8] sm:$0xff] }
 0x72a   : > { %v4444_v43 = vmul.f32 %v6117_v40, %v4427_v50  ;;  %4729 = vmatpush.msrb.mxu2 %v4660_v8  ;;  %vm4450_vm2 = vweird.f32 %v6117_v40  ;;  %v9119_v50 = vld [vmem:[%s9752_s6] ss:$0 sm:$0xff] }
 0x72b   : > { %6118 = vrsqrt.f32 %v9077_v11  ;;  %v4354_v45 = vmul.f32 %v9080_v5, %v9080_v5  ;;  %vm4451_vm13 = vmor %vm4449_vm12, %vm4450_vm2  ;;  %vm4459_vm15 = vweird.f32 %v9077_v11 }
 0x72c   : > { %v4445_v32 = vmul.f32 %v6117_v40, %v4444_v43  ;;  %4730 = vmatpush.msrb.mxu2 %v4659_v26 }
 0x72d   : > { %v4384_v30 = vsel %vm468_vm0, %v4354_v45, 0.0 }
 0x72e   : > { %v4446_v22 = vmul.f32 0.5, %v4445_v32  ;;  %v4371_v28 = vpop.xlane.xlu0 %4370  ;;  %v4286_v12 = vpop.xlane.xlu1 %4285  ;;  %4385 = vadd.xlane.f32.xlu1 %v4384_v30 }
 0x72f   : > { %v4413_v10 = vmul.f32 %v4371_v28, %v8944_v48  ;;  %v4323_v38 = vmul.f32 %v8944_v48, %v4286_v12 }
 0x730   : > { %v4447_v62 = vsub.f32 1.5, %v4446_v22 }
 0x731   : > { %v6119_v14 = vpop.eup %6118  ;;  %v9098_v53 = vadd.f32 1e-05, %v4413_v10  ;;  %v9101_v57 = vsub.f32 %v8983_v0, %v4323_v38 }
 0x732   : > { %v4448_v27 = vmul.f32 %v6117_v40, %v4447_v62  ;;  %v4454_v6 = vmul.f32 %v6119_v14, %v9077_v11  ;;  %vm4460_vm14 = vweird.f32 %v6119_v14 }
 0x733   : > { %6120 = vrsqrt.f32 %v9098_v53  ;;  %v4355_v49 = vmul.f32 %v9101_v57, %v9101_v57  ;;  %vm4461_vm3 = vmor %vm4459_vm15, %vm4460_vm14  ;;  %vm4469_vm5 = vweird.f32 %v9098_v53 }
 0x734   : > { %v4452_v0 = vsel %vm4451_vm13, %v6117_v40, %v4448_v27  ;;  %v4455_v16 = vmul.f32 %v6119_v14, %v4454_v6  ;;  %v6195_v40 = vld [vmem:[%s6308_s22 + $0x78] sm:$0xff]  ;;  %s9586_s22 = scalar_lea.vmem %s9759_s13, %s5367_s19 }
 0x735   : > { %v4603_v58 = vmul.f32 %v4452_v0, %v8951_v15  ;;  %v4387_v37 = vsel %vm468_vm0, %v4355_v49, 0.0  ;;  %v9135_v63 = vadd.f32 %v6195_v40, %v4243_v41 }
 0x736   : > { %v4456_v23 = vmul.f32 0.5, %v4455_v16  ;;  %v4374_v1 = vpop.xlane.xlu2 %4373  ;;  %v4289_v55 = vpop.xlane.xlu0 %4288  ;;  %4388 = vadd.xlane.f32.xlu0 %v4387_v37  ;;  %4303 = vadd.xlane.f32.xlu1 %v4302_v33 }
 0x737   : > { %v4623_v39 = vmul.f32 %v9110_v13, %v4603_v58  ;;  %v4414_v31 = vmul.f32 %v4374_v1, %v8944_v48  ;;  %v4324_v60 = vmul.f32 %v8944_v48, %v4289_v55  ;;  %v4305_v32 = vsel %vm468_vm0, %v9135_v63, 0.0 }
 0x738   : > { %v4457_v61 = vsub.f32 1.5, %v4456_v23 }
 0x739   : > { %v6121_v15 = vpop.eup %6120  ;;  %v9129_v3 = vadd.f32 %v9119_v50, %v4623_v39  ;;  %v4430_v51 = vadd.f32 1e-05, %v4414_v31  ;;  %v9132_v24 = vsub.f32 %v9000_v4, %v4324_v60 }
 0x73a   : > { %v4458_v59 = vmul.f32 %v6119_v14, %v4457_v61  ;;  %v4464_v43 = vmul.f32 %v6121_v15, %v9098_v53  ;;  %vm4470_vm4 = vweird.f32 %v6121_v15 }
 0x73b   : > { %6122 = vrsqrt.f32 %v4430_v51  ;;  %5642 = vmatmul.msk.f32.vlgmr.msrb.gmra.mxu2 %vm468_vm0, %v9129_v3  ;;  %v4356_v18 = vmul.f32 %v9132_v24, %v9132_v24  ;;  %vm4471_vm6 = vmor %vm4469_vm5, %vm4470_vm4  ;;  %vm4479_vm9 = vweird.f32 %v4430_v51 }
 0x73c   : > { %v4462_v35 = vsel %vm4461_vm3, %v6119_v14, %v4458_v59  ;;  %v4465_v42 = vmul.f32 %v6121_v15, %v4464_v43 }
 0x73d   : > { %v4604_v4 = vmul.f32 %v4462_v35, %v8963_v54  ;;  %v4390_v45 = vsel %vm468_vm0, %v4356_v18, 0.0 }
 0x73e   : > { %v4466_v11 = vmul.f32 0.5, %v4465_v42  ;;  %v4377_v7 = vpop.xlane.xlu1 %4376  ;;  %v4292_v30 = vpop.xlane.xlu2 %4291  ;;  %4391 = vadd.xlane.f32.xlu2 %v4390_v45  ;;  %4306 = vadd.xlane.f32.xlu0 %v4305_v32 }
 0x73f   : > { %v4415_v8 = vmul.f32 %v4377_v7, %v8944_v48  ;;  %v4325_v26 = vmul.f32 %v8944_v48, %v4292_v30  ;;  %v4624_v19 = vmul.f32 %v9110_v13, %v4604_v4 }
 0x740   : > { %v4467_v25 = vsub.f32 1.5, %v4466_v11 }
 0x741   : > { %v6123_v22 = vpop.eup %6122  ;;  %v4431_v54 = vadd.f32 1e-05, %v4415_v8  ;;  %v9151_v28 = vsub.f32 %v9017_v46, %v4325_v26  ;;  %v9154_v12 = vadd.f32 %v9119_v50, %v4624_v19 }
 0x742   : > { %v4468_v34 = vmul.f32 %v6121_v15, %v4467_v25  ;;  %v4474_v10 = vmul.f32 %v6123_v22, %v4430_v51  ;;  %vm4480_vm7 = vweird.f32 %v6123_v22 }
 0x743   : > { %6124 = vrsqrt.f32 %v4431_v54  ;;  %5643 = vmatmul.msk.f32.gmra.mxu2 %vm468_vm0, %v9154_v12  ;;  %v4357_v38 = vmul.f32 %v9151_v28, %v9151_v28  ;;  %vm4481_vm10 = vmor %vm4479_vm9, %vm4480_vm7  ;;  %vm4489_vm11 = vweird.f32 %v4431_v54 }
 0x744   : > { %v4472_v62 = vsel %vm4471_vm6, %v6121_v15, %v4468_v34  ;;  %v4475_v14 = vmul.f32 %v6123_v22, %v4474_v10 }
 0x745   : > { %v4605_v46 = vmul.f32 %v4472_v62, %v8980_v44  ;;  %v4393_v2 = vsel %vm468_vm0, %v4357_v38, 0.0 }
 0x746   : > { %v4476_v17 = vmul.f32 0.5, %v4475_v14  ;;  %v4380_v27 = vpop.xlane.xlu0 %4379  ;;  %v4295_v6 = vpop.xlane.xlu1 %4294  ;;  %4394 = vadd.xlane.f32.xlu1 %v4393_v2 }
 0x747   : > { %v4416_v53 = vmul.f32 %v4380_v27, %v8944_v48  ;;  %v4326_v49 = vmul.f32 %v8944_v48, %v4295_v6  ;;  %v4625_v0 = vmul.f32 %v9110_v13, %v4605_v46 }
 0x748   : > { %v4477_v16 = vsub.f32 1.5, %v4476_v17 }
 0x749   : > { %v6125_v41 = vpop.eup %6124  ;;  %v4432_v58 = vadd.f32 1e-05, %v4416_v53  ;;  %v9167_v37 = vsub.f32 %v9034_v47, %v4326_v49  ;;  %v9170_v44 = vadd.f32 %v9119_v50, %v4625_v0 }
 0x74a   : > { %v4478_v33 = vmul.f32 %v6123_v22, %v4477_v16  ;;  %v4484_v23 = vmul.f32 %v6125_v41, %v4431_v54  ;;  %vm4490_vm8 = vweird.f32 %v6125_v41 }
 0x74b   : > { %6126 = vrsqrt.f32 %v4432_v58  ;;  %5644 = vmatmul.msk.f32.gmra.mxu2 %vm468_vm0, %v9170_v44  ;;  %v4358_v1 = vmul.f32 %v9167_v37, %v9167_v37  ;;  %vm4491_vm1 = vmor %vm4489_vm11, %vm4490_vm8  ;;  %vm4499_vm12 = vweird.f32 %v4432_v58 }
 0x74c   : > { %v4482_v55 = vsel %vm4481_vm10, %v6123_v22, %v4478_v33  ;;  %v4485_v39 = vmul.f32 %v6125_v41, %v4484_v23  ;;  %v4810_v33 = vld [vmem:[%s9755_s9 + $0x70] sm:$0xff]  ;;  %v4808_v23 = vld [vmem:[%s9755_s9 + $0x60] sm:$0xff] }
 0x74d   : > { %v4606_v31 = vmul.f32 %v4482_v55, %v8997_v9  ;;  %v4396_v47 = vsel %vm468_vm0, %v4358_v1, 0.0  ;;  %v4807_v1 = vld [vmem:[%s9755_s9 + $0x58] sm:$0xff] }
 0x74e   : > { %v4486_v60 = vmul.f32 0.5, %v4485_v39  ;;  %v4383_v61 = vpop.xlane.xlu2 %4382  ;;  %v4298_v15 = vpop.xlane.xlu0 %4297  ;;  %4397 = vadd.xlane.f32.xlu2 %v4396_v47  ;;  %v4806_v39 = vld [vmem:[%s9755_s9 + $0x50] sm:$0xff]  ;;  %v4805_v47 = vld [vmem:[%s9755_s9 + $0x48] sm:$0xff] }
 0x74f   : > { %v4417_v51 = vmul.f32 %v4383_v61, %v8944_v48  ;;  %v4327_v40 = vmul.f32 %v8944_v48, %v4298_v15  ;;  %v4626_v59 = vmul.f32 %v9110_v13, %v4606_v31  ;;  %v4804_v61 = vld [vmem:[%s9755_s9 + $0x40] sm:$0xff]  ;;  %v4803_v15 = vld [vmem:[%s9755_s9 + $0x38] sm:$0xff] }
 0x750   : > { %v4487_v43 = vsub.f32 1.5, %v4486_v60 }
 0x751   : > { %v6127_v18 = vpop.eup %6126  ;;  %v4433_v35 = vadd.f32 1e-05, %v4417_v51  ;;  %v9182_v42 = vsub.f32 %v9050_v56, %v4327_v40  ;;  %v9185_v9 = vadd.f32 %v9119_v50, %v4626_v59  ;;  %v4802_v59 = vld [vmem:[%s9755_s9 + $0x30] sm:$0xff] }
 0x752   : > { %v4488_v4 = vmul.f32 %v6125_v41, %v4487_v43  ;;  %v4494_v45 = vmul.f32 %v6127_v18, %v4432_v58  ;;  %vm4500_vm2 = vweird.f32 %v6127_v18  ;;  %v4811_v58 = vld [vmem:[%s9755_s9 + $0x78] sm:$0xff] }
 0x753   : > { %6128 = vrsqrt.f32 %v4433_v35  ;;  %5645 = vmatmul.msk.f32.gmra.mxu2 %vm468_vm0, %v9185_v9  ;;  %v4359_v32 = vmul.f32 %v9182_v42, %v9182_v42  ;;  %vm4501_vm13 = vmor %vm4499_vm12, %vm4500_vm2  ;;  %vm4509_vm15 = vweird.f32 %v4433_v35  ;;  %4816 = vmatpush.msrb.mxu3 %v4811_v58 }
 0x754   : > { %v4492_v11 = vsel %vm4491_vm1, %v6125_v41, %v4488_v4  ;;  %v4495_v7 = vmul.f32 %v6127_v18, %v4494_v45 }
 0x755   : > { %v4607_v30 = vmul.f32 %v4492_v11, %v9014_v21  ;;  %v4399_v56 = vsel %vm468_vm0, %v4359_v32, 0.0  ;;  %4817 = vmatpush.msrb.mxu3 %v4810_v33 }
 0x756   : > { %v4496_v8 = vmul.f32 0.5, %v4495_v7  ;;  %v4301_v26 = vpop.xlane.xlu2 %4300  ;;  %4400 = vadd.xlane.f32.xlu0 %v4399_v56  ;;  %v4800_v56 = vld [vmem:[%s9755_s9 + $0x20] sm:$0xff] }
 0x757   : > { %v4328_v19 = vmul.f32 %v8944_v48, %v4301_v26  ;;  %v4627_v25 = vmul.f32 %v9110_v13, %v4607_v30 }
 0x758   : > { %v4497_v22 = vsub.f32 1.5, %v4496_v8 }
 0x759   : > { %v6129_v54 = vpop.eup %6128  ;;  %v9196_v34 = vsub.f32 %v9059_v20, %v4328_v19  ;;  %v9199_v10 = vadd.f32 %v9119_v50, %v4627_v25 }
 0x75a   : > { %v4498_v38 = vmul.f32 %v6127_v18, %v4497_v22  ;;  %v4504_v21 = vmul.f32 %v6129_v54, %v4433_v35  ;;  %vm4510_vm14 = vweird.f32 %v6129_v54  ;;  %v4801_v35 = vld [vmem:[%s9755_s9 + $0x28] sm:$0xff]  ;;  %v4798_v22 = vld [vmem:[%s9755_s9 + $0x10] sm:$0xff] }
 0x75b   : > { %5646 = vmatmul.msk.f32.gmra.mxu2 %vm468_vm0, %v9199_v10  ;;  %v4360_v62 = vmul.f32 %v9196_v34, %v9196_v34  ;;  %vm4511_vm3 = vmor %vm4509_vm15, %vm4510_vm14 }
 0x75c   : > { %v4502_v14 = vsel %vm4501_vm13, %v6127_v18, %v4498_v38  ;;  %v4505_v46 = vmul.f32 %v6129_v54, %v4504_v21 }
 0x75d   : > { %v4608_v2 = vmul.f32 %v4502_v14, %v9031_v52  ;;  %v4402_v20 = vsel %vm468_vm0, %v4360_v62, 0.0  ;;  %v4797_v62 = vld [vmem:[%s9755_s9 + $0x8] sm:$0xff] }
 0x75e   : > { %v4506_v17 = vmul.f32 0.5, %v4505_v46  ;;  %4403 = vadd.xlane.f32.xlu1 %v4402_v20 }
 0x75f   : > { %v4628_v27 = vmul.f32 %v9110_v13, %v4608_v2 }
 0x760   : > { %v4507_v6 = vsub.f32 1.5, %v4506_v17 }
 0x761   : > { %v9209_v53 = vadd.f32 %v9119_v50, %v4628_v27 }
 0x762   : > { %v4508_v49 = vmul.f32 %v6129_v54, %v4507_v6 }
 0x763   : > { %5647 = vmatmul.msk.f32.gmra.mxu2 %vm468_vm0, %v9209_v53 }
 0x764   : > { %v4512_v0 = vsel %vm4511_vm3, %v6129_v54, %v4508_v49 }
 0x765   : > { %v4609_v52 = vmul.f32 %v4512_v0, %v9047_v36  ;;  %v4809_v36 = vld [vmem:[%s9755_s9 + $0x68] sm:$0xff]  ;;  %v4796_v0 = vld [vmem:[%s9755_s9] sm:$0xff] }
 0x766   : > { %4818 = vmatpush.msrb.mxu3 %v4809_v36 }
 0x767   : > { %v4629_v16 = vmul.f32 %v9110_v13, %v4609_v52 }
 0x768   : > { %4819 = vmatpush.msrb.mxu3 %v4808_v23 }
 0x769   : > { %v9216_v41 = vadd.f32 %v9119_v50, %v4629_v16 }
 0x76a   : > { %4820 = vmatpush.msrb.mxu3 %v4807_v1  ;;  %v9291_v1 = vld [vmem:[%s9754_s8] ss:$0 sm:$0xff] }
 0x76b   : > { %5648 = vmatmul.msk.f32.gmra.mxu2 %vm468_vm0, %v9216_v41 }
 0x76c   : > { %4821 = vmatpush.msrb.mxu3 %v4806_v39 }
 0x76e   : > { %4822 = vmatpush.msrb.mxu3 %v4805_v47 }
 0x770   : > { %4823 = vmatpush.msrb.mxu3 %v4804_v61 }
 0x772   : > { %4824 = vmatpush.msrb.mxu3 %v4803_v15 }
 0x774   : > { %4825 = vmatpush.msrb.mxu3 %v4802_v59 }
 0x776   : > { %4826 = vmatpush.msrb.mxu3 %v4801_v35 }
 0x778   : > { %4827 = vmatpush.msrb.mxu3 %v4800_v56 }
 0x7a1   : > { %v4386_v55 = vpop.xlane.xlu1 %4385 }
 0x7a2   : > { %v4418_v31 = vmul.f32 %v4386_v55, %v8944_v48 }
 0x7a4   : > { %v4434_v60 = vadd.f32 1e-05, %v4418_v31 }
 0x7a6   : > { %6130 = vrsqrt.f32 %v4434_v60  ;;  %vm4519_vm5 = vweird.f32 %v4434_v60 }
 0x7a9   : > { %v4389_v51 = vpop.xlane.xlu0 %4388  ;;  %v4304_v40 = vpop.xlane.xlu1 %4303 }
 0x7aa   : > { %v4419_v43 = vmul.f32 %v4389_v51, %v8944_v48  ;;  %v4329_v18 = vmul.f32 %v8944_v48, %v4304_v40 }
 0x7ac   : > { %v6131_v4 = vpop.eup %6130  ;;  %v4435_v45 = vadd.f32 1e-05, %v4419_v43  ;;  %v9257_v32 = vsub.f32 %v9104_v29, %v4329_v18  ;;  %v4799_v29 = vld [vmem:[%s9755_s9 + $0x18] sm:$0xff] }
 0x7ad   : > { %v4514_v11 = vmul.f32 %v6131_v4, %v4434_v60  ;;  %4828 = vmatpush.msrb.mxu3 %v4799_v29  ;;  %vm4520_vm4 = vweird.f32 %v6131_v4 }
 0x7ae   : > { %6132 = vrsqrt.f32 %v4435_v45  ;;  %v4361_v7 = vmul.f32 %v9257_v32, %v9257_v32  ;;  %vm4521_vm6 = vmor %vm4519_vm5, %vm4520_vm4  ;;  %vm4529_vm9 = vweird.f32 %v4435_v45 }
 0x7af   : > { %v4515_v30 = vmul.f32 %v6131_v4, %v4514_v11  ;;  %4829 = vmatpush.msrb.mxu3 %v4798_v22 }
 0x7b0   : > { %v4405_v8 = vsel %vm468_vm0, %v4361_v7, 0.0 }
 0x7b1   : > { %v4516_v26 = vmul.f32 0.5, %v4515_v30  ;;  %v4392_v19 = vpop.xlane.xlu2 %4391  ;;  %4406 = vadd.xlane.f32.xlu2 %v4405_v8  ;;  %v4307_v25 = vpop.xlane.xlu0 %4306  ;;  %4830 = vmatpush.msrb.mxu3 %v4797_v62 }
 0x7b2   : > { %v4420_v54 = vmul.f32 %v4392_v19, %v8944_v48  ;;  %v4330_v38 = vmul.f32 %v8944_v48, %v4307_v25 }
 0x7b3   : > { %v4517_v21 = vsub.f32 1.5, %v4516_v26  ;;  %4831 = vmatpush.msrb.mxu3 %v4796_v0 }
 0x7b4   : > { %v6133_v14 = vpop.eup %6132  ;;  %v4436_v46 = vadd.f32 1e-05, %v4420_v54  ;;  %v9277_v2 = vsub.f32 %v9135_v63, %v4330_v38 }
 0x7b5   : > { %v4518_v20 = vmul.f32 %v6131_v4, %v4517_v21  ;;  %v4524_v17 = vmul.f32 %v6133_v14, %v4435_v45  ;;  %vm4530_vm7 = vweird.f32 %v6133_v14 }
 0x7b6   : > { %6134 = vrsqrt.f32 %v4436_v46  ;;  %v4362_v27 = vmul.f32 %v9277_v2, %v9277_v2  ;;  %vm4531_vm10 = vmor %vm4529_vm9, %vm4530_vm7  ;;  %vm4539_vm11 = vweird.f32 %v4436_v46 }
 0x7b7   : > { %v4522_v6 = vsel %vm4521_vm6, %v6131_v4, %v4518_v20  ;;  %v4525_v49 = vmul.f32 %v6133_v14, %v4524_v17 }
 0x7b8   : > { %v4610_v52 = vmul.f32 %v4522_v6, %v9080_v5  ;;  %v4408_v63 = vsel %vm468_vm0, %v4362_v27, 0.0 }
 0x7b9   : > { %v4526_v16 = vmul.f32 0.5, %v4525_v49  ;;  %v4395_v58 = vpop.xlane.xlu1 %4394  ;;  %4409 = vadd.xlane.f32.xlu0 %v4408_v63 }
 0x7ba   : > { %v4421_v33 = vmul.f32 %v4395_v58, %v8944_v48  ;;  %v4630_v36 = vmul.f32 %v9110_v13, %v4610_v52 }
 0x7bb   : > { %v4527_v23 = vsub.f32 1.5, %v4526_v16 }
 0x7bc   : > { %v6135_v55 = vpop.eup %6134  ;;  %v4437_v39 = vadd.f32 1e-05, %v4421_v33  ;;  %v9294_v5 = vadd.f32 %v9119_v50, %v4630_v36 }
 0x7bd   : > { %v4528_v31 = vmul.f32 %v6133_v14, %v4527_v23  ;;  %v4534_v47 = vmul.f32 %v6135_v55, %v4436_v46  ;;  %vm4540_vm8 = vweird.f32 %v6135_v55 }
 0x7be   : > { %6136 = vrsqrt.f32 %v4437_v39  ;;  %v4732_v60 = vpop.f32.mrf.mxu2  ;;  %5649 = vmatmul.msk.f32.gmra.mxu2 %vm468_vm0, %v9294_v5  ;;  %vm4541_vm1 = vmor %vm4539_vm11, %vm4540_vm8  ;;  %vm4549_vm12 = vweird.f32 %v4437_v39 }
 0x7bf   : > { %v4532_v61 = vsel %vm4531_vm10, %v6133_v14, %v4528_v31  ;;  %v4535_v15 = vmul.f32 %v6135_v55, %v4534_v47  ;;  %v4733_v51 = vadd.f32 %v9291_v1, %v4732_v60 }
 0x7c0   : > { %v4611_v40 = vmul.f32 %v4532_v61, %v9101_v57 }
 0x7c1   : > { %v4536_v59 = vmul.f32 0.5, %v4535_v15  ;;  %v4780_v43 = vmax.f32 %v4733_v51, 0.0  ;;  %v4398_v18 = vpop.xlane.xlu2 %4397 }
 0x7c2   : > { %v4422_v35 = vmul.f32 %v4398_v18, %v8944_v48  ;;  %v4631_v4 = vmul.f32 %v9110_v13, %v4611_v40 }
 0x7c3   : > { %v4537_v45 = vsub.f32 1.5, %v4536_v59  ;;  %4832 = vmatmul.f32.vlgmr.msrb.gmra.mxu3 %v4780_v43 }
 0x7c4   : > { %v6137_v11 = vpop.eup %6136  ;;  %v4438_v7 = vadd.f32 1e-05, %v4422_v35  ;;  %v9303_v30 = vadd.f32 %v9119_v50, %v4631_v4 }
 0x7c5   : > { %v4538_v56 = vmul.f32 %v6135_v55, %v4537_v45  ;;  %v4544_v8 = vmul.f32 %v6137_v11, %v4437_v39  ;;  %vm4550_vm2 = vweird.f32 %v6137_v11 }
 0x7c6   : > { %6138 = vrsqrt.f32 %v4438_v7  ;;  %v4735_v57 = vpop.f32.mrf.mxu2  ;;  %5650 = vmatmul.msk.f32.gmra.mxu2 %vm468_vm0, %v9303_v30  ;;  %vm4551_vm13 = vmor %vm4549_vm12, %vm4550_vm2  ;;  %vm4559_vm15 = vweird.f32 %v4438_v7 }
 0x7c7   : > { %v4542_v29 = vsel %vm4541_vm1, %v6135_v55, %v4538_v56  ;;  %v4545_v26 = vmul.f32 %v6137_v11, %v4544_v8  ;;  %v4736_v19 = vadd.f32 %v9291_v1, %v4735_v57 }
 0x7c8   : > { %v4612_v25 = vmul.f32 %v4542_v29, %v9132_v24 }
 0x7c9   : > { %v4546_v22 = vmul.f32 0.5, %v4545_v26  ;;  %v4781_v54 = vmax.f32 %v4736_v19, 0.0  ;;  %v4401_v38 = vpop.xlane.xlu0 %4400 }
 0x7ca   : > { %v4423_v21 = vmul.f32 %v4401_v38, %v8944_v48  ;;  %v4632_v62 = vmul.f32 %v9110_v13, %v4612_v25 }
 0x7cb   : > { %v4547_v14 = vsub.f32 1.5, %v4546_v22  ;;  %4835 = vmatmul.f32.gmra.mxu3 %v4781_v54 }
 0x7cc   : > { %v6139_v46 = vpop.eup %6138  ;;  %v4439_v20 = vadd.f32 1e-05, %v4423_v21  ;;  %v9312_v17 = vadd.f32 %v9119_v50, %v4632_v62 }
 0x7cd   : > { %v4548_v27 = vmul.f32 %v6137_v11, %v4547_v14  ;;  %v4554_v6 = vmul.f32 %v6139_v46, %v4438_v7  ;;  %vm4560_vm14 = vweird.f32 %v6139_v46 }
 0x7ce   : > { %6140 = vrsqrt.f32 %v4439_v20  ;;  %v4738_v24 = vpop.f32.mrf.mxu2  ;;  %5651 = vmatmul.msk.f32.gmra.mxu2 %vm468_vm0, %v9312_v17  ;;  %vm4561_vm3 = vmor %vm4559_vm15, %vm4560_vm14  ;;  %vm4569_vm5 = vweird.f32 %v4439_v20 }
 0x7cf   : > { %v4552_v49 = vsel %vm4551_vm13, %v6137_v11, %v4548_v27  ;;  %v4555_v0 = vmul.f32 %v6139_v46, %v4554_v6  ;;  %v4739_v52 = vadd.f32 %v9291_v1, %v4738_v24 }
 0x7d0   : > { %v4613_v63 = vmul.f32 %v4552_v49, %v9151_v28 }
 0x7d1   : > { %v4556_v16 = vmul.f32 0.5, %v4555_v0  ;;  %v4782_v58 = vmax.f32 %v4739_v52, 0.0  ;;  %v4404_v33 = vpop.xlane.xlu1 %4403 }
 0x7d2   : > { %v4424_v36 = vmul.f32 %v4404_v33, %v8944_v48  ;;  %v4633_v23 = vmul.f32 %v9110_v13, %v4613_v63 }
 0x7d3   : > { %v4557_v55 = vsub.f32 1.5, %v4556_v16  ;;  %4838 = vmatmul.f32.gmra.mxu3 %v4782_v58 }
 0x7d4   : > { %v6141_v39 = vpop.eup %6140  ;;  %v4440_v31 = vadd.f32 1e-05, %v4424_v36  ;;  %v9321_v47 = vadd.f32 %v9119_v50, %v4633_v23 }
 0x7d5   : > { %v4558_v60 = vmul.f32 %v6139_v46, %v4557_v55  ;;  %v4564_v61 = vmul.f32 %v6141_v39, %v4439_v20  ;;  %vm4570_vm4 = vweird.f32 %v6141_v39 }
 0x7d6   : > { %6142 = vrsqrt.f32 %v4440_v31  ;;  %v4741_v28 = vpop.f32.mrf.mxu2  ;;  %5652 = vmatmul.msk.f32.gmra.mxu2 %vm468_vm0, %v9321_v47  ;;  %vm4571_vm6 = vmor %vm4569_vm5, %vm4570_vm4  ;;  %vm4579_vm9 = vweird.f32 %v4440_v31 }
 0x7d7   : > { %v4562_v15 = vsel %vm4561_vm3, %v6139_v46, %v4558_v60  ;;  %v4565_v51 = vmul.f32 %v6141_v39, %v4564_v61  ;;  %v4742_v40 = vadd.f32 %v9291_v1, %v4741_v28 }
 0x7d8   : > { %v4614_v59 = vmul.f32 %v4562_v15, %v9167_v37 }
 0x7d9   : > { %v4566_v43 = vmul.f32 0.5, %v4565_v51  ;;  %v4783_v18 = vmax.f32 %v4742_v40, 0.0 }
 0x7da   : > { %v4634_v35 = vmul.f32 %v9110_v13, %v4614_v59 }
 0x7db   : > { %v4567_v4 = vsub.f32 1.5, %v4566_v43  ;;  %4841 = vmatmul.f32.gmra.mxu3 %v4783_v18 }
 0x7dc   : > { %v6143_v45 = vpop.eup %6142  ;;  %v9329_v11 = vadd.f32 %v9119_v50, %v4634_v35 }
 0x7dd   : > { %v4568_v7 = vmul.f32 %v6141_v39, %v4567_v4  ;;  %v4574_v56 = vmul.f32 %v6143_v45, %v4440_v31  ;;  %vm4580_vm7 = vweird.f32 %v6143_v45 }
 0x7de   : > { %v4744_v8 = vpop.f32.mrf.mxu2  ;;  %5653 = vmatmul.msk.f32.gmra.mxu2 %vm468_vm0, %v9329_v11  ;;  %vm4581_vm10 = vmor %vm4579_vm9, %vm4580_vm7 }
 0x7df   : > { %v4572_v37 = vsel %vm4571_vm6, %v6141_v39, %v4568_v7  ;;  %v4575_v57 = vmul.f32 %v6143_v45, %v4574_v56  ;;  %v4745_v29 = vadd.f32 %v9291_v1, %v4744_v8  ;;  %v9364_v8 = vld [vmem:[%s9756_s10] ss:$0 sm:$0xff] }
 0x7e0   : > { %v4615_v26 = vmul.f32 %v4572_v37, %v9182_v42 }
 0x7e1   : > { %v4576_v19 = vmul.f32 0.5, %v4575_v57  ;;  %v4784_v25 = vmax.f32 %v4745_v29, 0.0 }
 0x7e2   : > { %v4635_v22 = vmul.f32 %v9110_v13, %v4615_v26 }
 0x7e3   : > { %v4577_v54 = vsub.f32 1.5, %v4576_v19  ;;  %4844 = vmatmul.f32.gmra.mxu3 %v4784_v25 }
 0x7e4   : > { %v9337_v38 = vadd.f32 %v9119_v50, %v4635_v22 }
 0x7e5   : > { %v4578_v21 = vmul.f32 %v6143_v45, %v4577_v54 }
 0x7e6   : > { %v4747_v62 = vpop.f32.mrf.mxu2  ;;  %5654 = vmatmul.msk.f32.gmra.mxu2 %vm468_vm0, %v9337_v38 }
 0x7e7   : > { %v4582_v14 = vsel %vm4581_vm10, %v6143_v45, %v4578_v21  ;;  %v4748_v42 = vadd.f32 %v9291_v1, %v4747_v62 }
 0x7e8   : > { %v4616_v46 = vmul.f32 %v4582_v14, %v9196_v34 }
 0x7e9   : > { %v4785_v20 = vmax.f32 %v4748_v42, 0.0 }
 0x7ea   : > { %v4636_v27 = vmul.f32 %v9110_v13, %v4616_v46 }
 0x7eb   : > { %4847 = vmatmul.f32.gmra.mxu3 %v4785_v20 }
 0x7ec   : > { %v9345_v6 = vadd.f32 %v9119_v50, %v4636_v27 }
 0x7ee   : > { %v4750_v24 = vpop.f32.mrf.mxu2  ;;  %5655 = vmatmul.msk.f32.gmra.mxu2 %vm468_vm0, %v9345_v6 }
 0x7ef   : > { %v4751_v49 = vadd.f32 %v9291_v1, %v4750_v24 }
 0x7f1   : > { %v4786_v0 = vmax.f32 %v4751_v49, 0.0 }
 0x7f3   : > { %4850 = vmatmul.f32.gmra.mxu3 %v4786_v0 }
 0x824   : > { %v4407_v52 = vpop.xlane.xlu2 %4406 }
 0x825   : > { %v4425_v63 = vmul.f32 %v4407_v52, %v8944_v48 }
 0x827   : > { %v4441_v16 = vadd.f32 1e-05, %v4425_v63 }
 0x829   : > { %6144 = vrsqrt.f32 %v4441_v16  ;;  %vm4589_vm11 = vweird.f32 %v4441_v16 }
 0x82c   : > { %v4410_v34 = vpop.xlane.xlu0 %4409 }
 0x82d   : > { %v4426_v58 = vmul.f32 %v4410_v34, %v8944_v48 }
 0x82f   : > { %v6145_v33 = vpop.eup %6144  ;;  %v4442_v36 = vadd.f32 1e-05, %v4426_v58 }
 0x830   : > { %v4584_v23 = vmul.f32 %v6145_v33, %v4441_v16  ;;  %vm4590_vm8 = vweird.f32 %v6145_v33 }
 0x831   : > { %6146 = vrsqrt.f32 %v4442_v36  ;;  %vm4591_vm1 = vmor %vm4589_vm11, %vm4590_vm8  ;;  %vm4599_vm12 = vweird.f32 %v4442_v36 }
 0x832   : > { %v4585_v55 = vmul.f32 %v6145_v33, %v4584_v23 }
 0x834   : > { %v4586_v39 = vmul.f32 0.5, %v4585_v55 }
 0x836   : > { %v4587_v31 = vsub.f32 1.5, %v4586_v39 }
 0x837   : > { %v6147_v60 = vpop.eup %6146 }
 0x838   : > { %v4588_v61 = vmul.f32 %v6145_v33, %v4587_v31  ;;  %v4594_v28 = vmul.f32 %v6147_v60, %v4442_v36  ;;  %vm4600_vm2 = vweird.f32 %v6147_v60 }
 0x839   : > { %vm4601_vm13 = vmor %vm4599_vm12, %vm4600_vm2 }
 0x83a   : > { %v4592_v15 = vsel %vm4591_vm1, %v6145_v33, %v4588_v61  ;;  %v4595_v51 = vmul.f32 %v6147_v60, %v4594_v28 }
 0x83b   : > { %v4617_v40 = vmul.f32 %v4592_v15, %v9257_v32 }
 0x83c   : > { %v4596_v59 = vmul.f32 0.5, %v4595_v51 }
 0x83d   : > { %v4637_v43 = vmul.f32 %v9110_v13, %v4617_v40 }
 0x83e   : > { %v4597_v18 = vsub.f32 1.5, %v4596_v59 }
 0x83f   : > { %v9355_v35 = vadd.f32 %v9119_v50, %v4637_v43 }
 0x840   : > { %v4598_v4 = vmul.f32 %v6147_v60, %v4597_v18 }
 0x841   : > { %v4753_v45 = vpop.f32.mrf.mxu2  ;;  %5656 = vmatmul.msk.f32.gmra.mxu2 %vm468_vm0, %v9355_v35 }
 0x842   : > { %v4602_v7 = vsel %vm4601_vm13, %v6147_v60, %v4598_v4  ;;  %v4754_v56 = vadd.f32 %v9291_v1, %v4753_v45 }
 0x843   : > { %v4618_v32 = vmul.f32 %v4602_v7, %v9277_v2 }
 0x844   : > { %v4787_v37 = vmax.f32 %v4754_v56, 0.0 }
 0x845   : > { %v4638_v57 = vmul.f32 %v9110_v13, %v4618_v32 }
 0x846   : > { %v4833_v29 = vpop.f32.mrf.mxu3  ;;  %4853 = vmatmul.f32.gmra.mxu3 %v4787_v37 }
 0x847   : > { %v4834_v26 = vadd.f32 %v9364_v8, %v4833_v29  ;;  %v9369_v19 = vadd.f32 %v9119_v50, %v4638_v57 }
 0x849   : > { %v9372_v25 = vadd.f32 %v4834_v26, %v9129_v3  ;;  %v4756_v22 = vpop.f32.mrf.mxu2  ;;  %5657 = vmatmul.msk.f32.gmra.mxu2 %vm468_vm0, %v9369_v19 }
 0x84a   : > { %v4757_v2 = vadd.f32 %v9291_v1, %v4756_v22 }
 0x84b   : > { %v4897_v54 = vsel %vm468_vm0, %v9372_v25, 0.0 }
 0x84c   : > { %v4788_v13 = vmax.f32 %v4757_v2, 0.0  ;;  %4898 = vadd.xlane.f32.xlu1 %v4897_v54 }
 0x84e   : > { %v4836_v21 = vpop.f32.mrf.mxu3  ;;  %4856 = vmatmul.f32.gmra.mxu3 %v4788_v13 }
 0x84f   : > { %v4837_v62 = vadd.f32 %v9364_v8, %v4836_v21 }
 0x851   : > { %v9381_v50 = vadd.f32 %v4837_v62, %v9154_v12  ;;  %v4759_v3 = vpop.f32.mrf.mxu2 }
 0x852   : > { %v4760_v14 = vadd.f32 %v9291_v1, %v4759_v3 }
 0x853   : > { %v4900_v42 = vsel %vm468_vm0, %v9381_v50, 0.0 }
 0x854   : > { %v4789_v46 = vmax.f32 %v4760_v14, 0.0  ;;  %4901 = vadd.xlane.f32.xlu2 %v4900_v42 }
 0x856   : > { %v4839_v20 = vpop.f32.mrf.mxu3  ;;  %4859 = vmatmul.f32.gmra.mxu3 %v4789_v46 }
 0x857   : > { %v4840_v27 = vadd.f32 %v9364_v8, %v4839_v20 }
 0x859   : > { %v9388_v24 = vadd.f32 %v4840_v27, %v9170_v44  ;;  %v4762_v49 = vpop.f32.mrf.mxu2 }
 0x85a   : > { %v4763_v0 = vadd.f32 %v9291_v1, %v4762_v49 }
 0x85b   : > { %v4903_v12 = vsel %vm468_vm0, %v9388_v24, 0.0 }
 0x85c   : > { %v4790_v52 = vmax.f32 %v4763_v0, 0.0  ;;  %4904 = vadd.xlane.f32.xlu0 %v4903_v12 }
 0x85e   : > { %v4842_v63 = vpop.f32.mrf.mxu3  ;;  %4862 = vmatmul.f32.gmra.mxu3 %v4790_v52 }
 0x85f   : > { %v4843_v16 = vadd.f32 %v9364_v8, %v4842_v63 }
 0x861   : > { %v9395_v34 = vadd.f32 %v4843_v16, %v9185_v9  ;;  %v4765_v58 = vpop.f32.mrf.mxu2 }
 0x862   : > { %v4766_v33 = vadd.f32 %v9291_v1, %v4765_v58 }
 0x863   : > { %v4906_v44 = vsel %vm468_vm0, %v9395_v34, 0.0 }
 0x864   : > { %v4791_v36 = vmax.f32 %v4766_v33, 0.0  ;;  %4907 = vadd.xlane.f32.xlu1 %v4906_v44 }
 0x866   : > { %v4845_v23 = vpop.f32.mrf.mxu3  ;;  %4865 = vmatmul.f32.gmra.mxu3 %v4791_v36 }
 0x867   : > { %v4846_v55 = vadd.f32 %v9364_v8, %v4845_v23 }
 0x869   : > { %v9402_v39 = vadd.f32 %v4846_v55, %v9199_v10  ;;  %v4768_v31 = vpop.f32.mrf.mxu2 }
 0x86a   : > { %v4769_v60 = vadd.f32 %v9291_v1, %v4768_v31 }
 0x86b   : > { %v4909_v9 = vsel %vm468_vm0, %v9402_v39, 0.0 }
 0x86c   : > { %v4792_v61 = vmax.f32 %v4769_v60, 0.0  ;;  %4910 = vadd.xlane.f32.xlu2 %v4909_v9 }
 0x86e   : > { %v4848_v28 = vpop.f32.mrf.mxu3  ;;  %4868 = vmatmul.f32.gmra.mxu3 %v4792_v61 }
 0x86f   : > { %v4849_v15 = vadd.f32 %v9364_v8, %v4848_v28 }
 0x871   : > { %v9409_v51 = vadd.f32 %v4849_v15, %v9209_v53  ;;  %v4771_v40 = vpop.f32.mrf.mxu2 }
 0x872   : > { %v4772_v59 = vadd.f32 %v9291_v1, %v4771_v40 }
 0x873   : > { %v4912_v10 = vsel %vm468_vm0, %v9409_v51, 0.0 }
 0x874   : > { %v4793_v43 = vmax.f32 %v4772_v59, 0.0  ;;  %4913 = vadd.xlane.f32.xlu0 %v4912_v10 }
 0x876   : > { %v4851_v18 = vpop.f32.mrf.mxu3  ;;  %4871 = vmatmul.f32.gmra.mxu3 %v4793_v43 }
 0x877   : > { %v4852_v4 = vadd.f32 %v9364_v8, %v4851_v18 }
 0x879   : > { %v4887_v45 = vadd.f32 %v4852_v4, %v9216_v41 }
 0x87b   : > { %v4915_v7 = vsel %vm468_vm0, %v4887_v45, 0.0 }
 0x87c   : > { %4916 = vadd.xlane.f32.xlu1 %v4915_v7 }
 0x8bf   : > { %v4899_v16 = vpop.xlane.xlu1 %4898 }
 0x8c0   : > { %v4945_v33 = vmul.f32 %v4899_v16, %v8944_v48 }
 0x8c2   : > { %v9458_v36 = vsub.f32 %v9372_v25, %v4945_v33 }
 0x8c4   : > { %v4774_v56 = vpop.f32.mrf.mxu2  ;;  %v4977_v31 = vmul.f32 %v9458_v36, %v9458_v36 }
 0x8c5   : > { %v4775_v53 = vadd.f32 %v9291_v1, %v4774_v56 }
 0x8c6   : > { %v4993_v9 = vsel %vm468_vm0, %v4977_v31, 0.0 }
 0x8c7   : > { %v4794_v32 = vmax.f32 %v4775_v53, 0.0  ;;  %v4902_v59 = vpop.xlane.xlu2 %4901 }
 0x8c8   : > { %v4946_v43 = vmul.f32 %v4902_v59, %v8944_v48 }
 0x8c9   : > { %v4854_v37 = vpop.f32.mrf.mxu3  ;;  %4874 = vmatmul.f32.gmra.mxu3 %v4794_v32 }
 0x8ca   : > { %v4855_v57 = vadd.f32 %v9364_v8, %v4854_v37 }
 0x8cc   : > { %v9420_v29 = vadd.f32 %v4855_v57, %v9294_v5  ;;  %v4777_v26 = vpop.f32.mrf.mxu2 }
 0x8cd   : > { %v4778_v22 = vadd.f32 %v9291_v1, %v4777_v26 }
 0x8ce   : > { %v4918_v41 = vsel %vm468_vm0, %v9420_v29, 0.0 }
 0x8cf   : > { %v4795_v2 = vmax.f32 %v4778_v22, 0.0  ;;  %4919 = vadd.xlane.f32.xlu2 %v4918_v41  ;;  %v4905_v32 = vpop.xlane.xlu0 %4904 }
 0x8d0   : > { %v4947_v41 = vmul.f32 %v4905_v32, %v8944_v48 }
 0x8d1   : > { %v4857_v54 = vpop.f32.mrf.mxu3  ;;  %4877 = vmatmul.f32.gmra.mxu3 %v4795_v2 }
 0x8d2   : > { %v4858_v13 = vadd.f32 %v9364_v8, %v4857_v54 }
 0x8d4   : > { %v9427_v21 = vadd.f32 %v4858_v13, %v9303_v30 }
 0x8d6   : > { %v4921_v62 = vsel %vm468_vm0, %v9427_v21, 0.0 }
 0x8d7   : > { %4922 = vadd.xlane.f32.xlu0 %v4921_v62  ;;  %v4908_v23 = vpop.xlane.xlu1 %4907 }
 0x8d8   : > { %v4948_v55 = vmul.f32 %v4908_v23, %v8944_v48 }
 0x8d9   : > { %v4860_v5 = vpop.f32.mrf.mxu3 }
 0x8da   : > { %v4861_v3 = vadd.f32 %v9364_v8, %v4860_v5  ;;  %v9466_v60 = vsub.f32 %v9395_v34, %v4948_v55 }
 0x8dc   : > { %v4890_v1 = vadd.f32 %v4861_v3, %v9312_v17  ;;  %v4980_v61 = vmul.f32 %v9466_v60, %v9466_v60  ;;  %v9509_v3 = vsub.f32 %v9388_v24, %v4947_v41 }
 0x8de   : > { %v4924_v14 = vsel %vm468_vm0, %v4890_v1, 0.0  ;;  %v5002_v15 = vsel %vm468_vm0, %v4980_v61, 0.0 }
 0x8df   : > { %4925 = vadd.xlane.f32.xlu1 %v4924_v14  ;;  %v4911_v56 = vpop.xlane.xlu2 %4910 }
 0x8e0   : > { %v4949_v26 = vmul.f32 %v4911_v56, %v8944_v48 }
 0x8e1   : > { %v4863_v42 = vpop.f32.mrf.mxu3 }
 0x8e2   : > { %v4864_v46 = vadd.f32 %v9364_v8, %v4863_v42  ;;  %v9502_v13 = vsub.f32 %v9402_v39, %v4949_v26 }
 0x8e4   : > { %v9436_v20 = vadd.f32 %v4864_v46, %v9321_v47  ;;  %v4981_v39 = vmul.f32 %v9502_v13, %v9502_v13  ;;  %v4979_v46 = vmul.f32 %v9509_v3, %v9509_v3 }
 0x8e6   : > { %v4927_v30 = vsel %vm468_vm0, %v9436_v20, 0.0  ;;  %v5005_v24 = vsel %vm468_vm0, %v4981_v39, 0.0 }
 0x8e7   : > { %4928 = vadd.xlane.f32.xlu2 %v4927_v30 }
 0x8e9   : > { %v4866_v27 = vpop.f32.mrf.mxu3 }
 0x8ea   : > { %v4867_v49 = vadd.f32 %v9364_v8, %v4866_v27 }
 0x8ec   : > { %v9442_v0 = vadd.f32 %v4867_v49, %v9329_v11 }
 0x8ee   : > { %v4930_v17 = vsel %vm468_vm0, %v9442_v0, 0.0 }
 0x8ef   : > { %4931 = vadd.xlane.f32.xlu0 %v4930_v17  ;;  %v4999_v17 = vsel %vm468_vm0, %v4979_v46, 0.0  ;;  %v9577_v46 = vld [vmem:[%s9758_s12] ss:$0 sm:$0xff] }
 0x8f1   : > { %v4869_v12 = vpop.f32.mrf.mxu3 }
 0x8f2   : > { %v4870_v52 = vadd.f32 %v9364_v8, %v4869_v12 }
 0x8f4   : > { %v9448_v47 = vadd.f32 %v4870_v52, %v9337_v38 }
 0x8f6   : > { %v4933_v63 = vsel %vm468_vm0, %v9448_v47, 0.0 }
 0x8f7   : > { %4934 = vadd.xlane.f32.xlu1 %v4933_v63 }
 0x8f9   : > { %v4872_v58 = vpop.f32.mrf.mxu3 }
 0x8fa   : > { %v4873_v11 = vadd.f32 %v9364_v8, %v4872_v58 }
 0x8fc   : > { %v9455_v44 = vadd.f32 %v4873_v11, %v9345_v6  ;;  %v4917_v6 = vpop.xlane.xlu1 %4916 }
 0x8fd   : > { %v4951_v25 = vmul.f32 %v4917_v6, %v8944_v48 }
 0x8fe   : > { %v4936_v38 = vsel %vm468_vm0, %v9455_v44, 0.0 }
 0x8ff   : > { %4937 = vadd.xlane.f32.xlu2 %v4936_v38  ;;  %v9472_v28 = vsub.f32 %v4887_v45, %v4951_v25  ;;  %v9484_v45 = vsub.f32 %v9381_v50, %v4946_v43 }
 0x901   : > { %v4983_v40 = vmul.f32 %v9472_v28, %v9472_v28  ;;  %v4978_v50 = vmul.f32 %v9484_v45, %v9484_v45 }
 0x903   : > { %v5011_v34 = vsel %vm468_vm0, %v4983_v40, 0.0  ;;  %v4996_v62 = vsel %vm468_vm0, %v4978_v50, 0.0 }
 0x907   : > { %4994 = vadd.xlane.f32.xlu2 %v4993_v9 }
 0x90f   : > { %5003 = vadd.xlane.f32.xlu2 %v5002_v15 }
 0x917   : > { %5012 = vadd.xlane.f32.xlu2 %v5011_v34 }
 0x94c   : > { %v4875_v10 = vpop.f32.mrf.mxu3 }
 0x94d   : > { %v4876_v18 = vadd.f32 %v9364_v8, %v4875_v10 }
 0x94f   : > { %v9481_v4 = vadd.f32 %v4876_v18, %v9355_v35 }
 0x951   : > { %v4939_v7 = vsel %vm468_vm0, %v9481_v4, 0.0 }
 0x952   : > { %v4926_v53 = vpop.xlane.xlu1 %4925  ;;  %4940 = vadd.xlane.f32.xlu0 %v4939_v7 }
 0x953   : > { %v4954_v37 = vmul.f32 %v4926_v53, %v8944_v48 }
 0x954   : > { %v4878_v57 = vpop.f32.mrf.mxu3 }
 0x955   : > { %v9490_v22 = vsub.f32 %v4890_v1, %v4954_v37  ;;  %v4879_v35 = vadd.f32 %v9364_v8, %v4878_v57  ;;  %v4920_v1 = vpop.xlane.xlu2 %4919 }
 0x956   : > { %v4952_v14 = vmul.f32 %v4920_v1, %v8944_v48 }
 0x957   : > { %v9497_v2 = vadd.f32 %v4879_v35, %v9369_v19  ;;  %v4986_v54 = vmul.f32 %v9490_v22, %v9490_v22  ;;  %v4914_v19 = vpop.xlane.xlu0 %4913 }
 0x958   : > { %v4950_v42 = vmul.f32 %v4914_v19, %v8944_v48  ;;  %v9518_v30 = vsub.f32 %v9420_v29, %v4952_v14  ;;  %v9572_v14 = vld [vmem:[%s9757_s11] ss:$0 sm:$0xff] }
 0x959   : > { %v5020_v5 = vsel %vm468_vm0, %v4986_v54, 0.0  ;;  %v4942_v8 = vsel %vm468_vm0, %v9497_v2, 0.0 }
 0x95a   : > { %4997 = vadd.xlane.f32.xlu0 %v4996_v62  ;;  %5021 = vadd.xlane.f32.xlu2 %v5020_v5  ;;  %v9522_v27 = vsub.f32 %v9409_v51, %v4950_v42  ;;  %v4984_v63 = vmul.f32 %v9518_v30, %v9518_v30 }
 0x95b   : > { %4943 = vadd.xlane.f32.xlu1 %v4942_v8 }
 0x95c   : > { %v4982_v29 = vmul.f32 %v9522_v27, %v9522_v27  ;;  %v5014_v51 = vsel %vm468_vm0, %v4984_v63, 0.0 }
 0x95d   : > { %v4929_v49 = vpop.xlane.xlu2 %4928 }
 0x95e   : > { %v4955_v52 = vmul.f32 %v4929_v49, %v8944_v48  ;;  %v5008_v38 = vsel %vm468_vm0, %v4982_v29, 0.0 }
 0x95f   : > { %v4923_v12 = vpop.xlane.xlu0 %4922 }
 0x960   : > { %v4953_v16 = vmul.f32 %v4923_v12, %v8944_v48  ;;  %v9532_v58 = vsub.f32 %v9436_v20, %v4955_v52 }
 0x962   : > { %5006 = vadd.xlane.f32.xlu0 %v5005_v24  ;;  %v9536_v33 = vsub.f32 %v9427_v21, %v4953_v16  ;;  %v4987_v20 = vmul.f32 %v9532_v58, %v9532_v58 }
 0x963   : > { %5000 = vadd.xlane.f32.xlu1 %v4999_v17 }
 0x964   : > { %v4985_v21 = vmul.f32 %v9536_v33, %v9536_v33  ;;  %v5023_v25 = vsel %vm468_vm0, %v4987_v20, 0.0 }
 0x966   : > { %v5017_v40 = vsel %vm468_vm0, %v4985_v21, 0.0 }
 0x967   : > { %v4932_v23 = vpop.xlane.xlu0 %4931 }
 0x968   : > { %v4956_v9 = vmul.f32 %v4932_v23, %v8944_v48 }
 0x96a   : > { %5015 = vadd.xlane.f32.xlu0 %v5014_v51  ;;  %v4935_v11 = vpop.xlane.xlu1 %4934  ;;  %v9553_v15 = vsub.f32 %v9442_v0, %v4956_v9 }
 0x96b   : > { %v4957_v55 = vmul.f32 %v4935_v11, %v8944_v48  ;;  %5009 = vadd.xlane.f32.xlu1 %v5008_v38 }
 0x96c   : > { %v4988_v10 = vmul.f32 %v9553_v15, %v9553_v15 }
 0x96d   : > { %v9541_v31 = vsub.f32 %v9448_v47, %v4957_v55 }
 0x96e   : > { %v5026_v7 = vsel %vm468_vm0, %v4988_v10, 0.0 }
 0x96f   : > { %v4989_v6 = vmul.f32 %v9541_v31, %v9541_v31 }
 0x971   : > { %v5029_v61 = vsel %vm468_vm0, %v4989_v6, 0.0 }
 0x972   : > { %5024 = vadd.xlane.f32.xlu0 %v5023_v25  ;;  %v4938_v47 = vpop.xlane.xlu2 %4937  ;;  %5030 = vadd.xlane.f32.xlu2 %v5029_v61 }
 0x973   : > { %v4958_v34 = vmul.f32 %v4938_v47, %v8944_v48  ;;  %5018 = vadd.xlane.f32.xlu1 %v5017_v40 }
 0x975   : > { %v9558_v59 = vsub.f32 %v9455_v44, %v4958_v34 }
 0x977   : > { %v4990_v43 = vmul.f32 %v9558_v59, %v9558_v59 }
 0x979   : > { %v5032_v0 = vsel %vm468_vm0, %v4990_v43, 0.0 }
 0x97a   : > { %5033 = vadd.xlane.f32.xlu0 %v5032_v0  ;;  %v4995_v18 = vpop.xlane.xlu2 %4994 }
 0x97b   : > { %v5041_v56 = vmul.f32 %v4995_v18, %v8944_v48  ;;  %5027 = vadd.xlane.f32.xlu1 %v5026_v7 }
 0x97d   : > { %v5057_v53 = vadd.f32 1e-05, %v5041_v56 }
 0x97f   : > { %6148 = vrsqrt.f32 %v5057_v53  ;;  %vm5079_vm15 = vweird.f32 %v5057_v53 }
 0x982   : > { %v5004_v32 = vpop.xlane.xlu2 %5003 }
 0x983   : > { %v5044_v44 = vmul.f32 %v5004_v32, %v8944_v48 }
 0x985   : > { %v6149_v37 = vpop.eup %6148  ;;  %v5060_v57 = vadd.f32 1e-05, %v5044_v44 }
 0x986   : > { %v5074_v26 = vmul.f32 %v6149_v37, %v5057_v53  ;;  %vm5080_vm14 = vweird.f32 %v6149_v37 }
 0x987   : > { %6150 = vrsqrt.f32 %v5060_v57  ;;  %vm5081_vm3 = vmor %vm5079_vm15, %vm5080_vm14  ;;  %vm5109_vm5 = vweird.f32 %v5060_v57 }
 0x988   : > { %v5075_v35 = vmul.f32 %v6149_v37, %v5074_v26 }
 0x98a   : > { %v5076_v50 = vmul.f32 0.5, %v5075_v35  ;;  %v5013_v41 = vpop.xlane.xlu2 %5012 }
 0x98b   : > { %v5047_v54 = vmul.f32 %v5013_v41, %v8944_v48 }
 0x98c   : > { %v5077_v62 = vsub.f32 1.5, %v5076_v50 }
 0x98d   : > { %v6151_v5 = vpop.eup %6150  ;;  %v5063_v8 = vadd.f32 1e-05, %v5047_v54 }
 0x98e   : > { %v5078_v1 = vmul.f32 %v6149_v37, %v5077_v62  ;;  %v5104_v19 = vmul.f32 %v6151_v5, %v5060_v57  ;;  %vm5110_vm4 = vweird.f32 %v6151_v5 }
 0x98f   : > { %6152 = vrsqrt.f32 %v5063_v8  ;;  %vm5111_vm6 = vmor %vm5109_vm5, %vm5110_vm4  ;;  %vm5139_vm9 = vweird.f32 %v5063_v8 }
 0x990   : > { %v5082_v39 = vsel %vm5081_vm3, %v6149_v37, %v5078_v1  ;;  %v5105_v42 = vmul.f32 %v6151_v5, %v5104_v19 }
 0x991   : > { %v5233_v24 = vmul.f32 %v5082_v39, %v9458_v36 }
 0x992   : > { %v5106_v49 = vmul.f32 0.5, %v5105_v42 }
 0x993   : > { %v5253_v17 = vmul.f32 %v9572_v14, %v5233_v24 }
 0x994   : > { %v5107_v12 = vsub.f32 1.5, %v5106_v49 }
 0x995   : > { %v6153_v52 = vpop.eup %6152  ;;  %v5273_v63 = vadd.f32 %v9577_v46, %v5253_v17 }
 0x996   : > { %v5108_v16 = vmul.f32 %v6151_v5, %v5107_v12  ;;  %v5134_v29 = vmul.f32 %v6153_v52, %v5063_v8  ;;  %vm5140_vm7 = vweird.f32 %v6153_v52 }
 0x997   : > { %5289 = vst.msk [vmem:[%s9586_s22] sm:$0xff] %vm468_vm0, %v5273_v63  ;;  %vm5141_vm10 = vmor %vm5139_vm9, %vm5140_vm7 }
 0x998   : > { %v5112_v36 = vsel %vm5111_vm6, %v6151_v5, %v5108_v16  ;;  %v5135_v51 = vmul.f32 %v6153_v52, %v5134_v29 }
 0x999   : > { %v5236_v11 = vmul.f32 %v5112_v36, %v9466_v60 }
 0x99a   : > { %v5136_v38 = vmul.f32 0.5, %v5135_v51 }
 0x99b   : > { %v5256_v23 = vmul.f32 %v9572_v14, %v5236_v11 }
 0x99c   : > { %v5137_v55 = vsub.f32 1.5, %v5136_v38 }
 0x99d   : > { %v5276_v20 = vadd.f32 %v9577_v46, %v5256_v23 }
 0x99e   : > { %v5138_v9 = vmul.f32 %v6153_v52, %v5137_v55 }
 0x99f   : > { %5292 = vst.msk [vmem:[%s9586_s22 + $0x18] sm:$0xff] %vm468_vm0, %v5276_v20 }
 0x9a0   : > { %v5142_v21 = vsel %vm5141_vm10, %v6153_v52, %v5138_v9 }
 0x9a1   : > { %v5239_v6 = vmul.f32 %v5142_v21, %v9472_v28 }
 0x9a3   : > { %v5259_v25 = vmul.f32 %v9572_v14, %v5239_v6 }
 0x9a5   : > { %v5279_v61 = vadd.f32 %v9577_v46, %v5259_v25 }
 0x9a7   : > { %5295 = vst.msk [vmem:[%s9586_s22 + $0x30] sm:$0xff] %vm468_vm0, %v5279_v61 }
 0x9c5   : > { %v4941_v60 = vpop.xlane.xlu0 %4940 }
 0x9c6   : > { %v4959_v47 = vmul.f32 %v4941_v60, %v8944_v48 }
 0x9c8   : > { %v9603_v40 = vsub.f32 %v9481_v4, %v4959_v47 }
 0x9ca   : > { %v4991_v34 = vmul.f32 %v9603_v40, %v9603_v40 }
 0x9cc   : > { %v5035_v10 = vsel %vm468_vm0, %v4991_v34, 0.0 }
 0x9cd   : > { %v5022_v43 = vpop.xlane.xlu2 %5021  ;;  %5036 = vadd.xlane.f32.xlu1 %v5035_v10  ;;  %v4998_v28 = vpop.xlane.xlu0 %4997 }
 0x9ce   : > { %v5050_v0 = vmul.f32 %v5022_v43, %v8944_v48  ;;  %v4944_v18 = vpop.xlane.xlu1 %4943  ;;  %v5042_v7 = vmul.f32 %v4998_v28, %v8944_v48 }
 0x9cf   : > { %v4960_v56 = vmul.f32 %v4944_v18, %v8944_v48 }
 0x9d0   : > { %v5066_v53 = vadd.f32 1e-05, %v5050_v0  ;;  %v5058_v32 = vadd.f32 1e-05, %v5042_v7 }
 0x9d1   : > { %v9612_v4 = vsub.f32 %v9497_v2, %v4960_v56 }
 0x9d2   : > { %6154 = vrsqrt.f32 %v5066_v53  ;;  %vm5169_vm1 = vweird.f32 %v5066_v53  ;;  %vm5089_vm12 = vweird.f32 %v5058_v32 }
 0x9d3   : > { %6156 = vrsqrt.f32 %v5058_v32  ;;  %v4992_v44 = vmul.f32 %v9612_v4, %v9612_v4 }
 0x9d5   : > { %v5038_v37 = vsel %vm468_vm0, %v4992_v44, 0.0  ;;  %v5007_v57 = vpop.xlane.xlu0 %5006 }
 0x9d6   : > { %5039 = vadd.xlane.f32.xlu2 %v5038_v37  ;;  %v5001_v26 = vpop.xlane.xlu1 %5000  ;;  %v5045_v35 = vmul.f32 %v5007_v57, %v8944_v48 }
 0x9d7   : > { %v5043_v50 = vmul.f32 %v5001_v26, %v8944_v48 }
 0x9d8   : > { %v6155_v41 = vpop.eup %6154  ;;  %v9619_v54 = vadd.f32 1e-05, %v5045_v35 }
 0x9d9   : > { %v6157_v62 = vpop.eup %6156  ;;  %v5164_v2 = vmul.f32 %v6155_v41, %v5066_v53  ;;  %v9621_v5 = vadd.f32 1e-05, %v5043_v50  ;;  %vm5170_vm8 = vweird.f32 %v6155_v41 }
 0x9da   : > { %v5084_v8 = vmul.f32 %v6157_v62, %v5058_v32  ;;  %6158 = vrsqrt.f32 %v9619_v54  ;;  %vm5090_vm11 = vweird.f32 %v6157_v62  ;;  %vm5171_vm2 = vmor %vm5169_vm1, %vm5170_vm8  ;;  %vm5119_vm3 = vweird.f32 %v9619_v54 }
 0x9db   : > { %v5165_v1 = vmul.f32 %v6155_v41, %v5164_v2  ;;  %6160 = vrsqrt.f32 %v9621_v5  ;;  %vm5091_vm13 = vmor %vm5089_vm12, %vm5090_vm11  ;;  %vm5099_vm4 = vweird.f32 %v9621_v5 }
 0x9dc   : > { %v5085_v19 = vmul.f32 %v6157_v62, %v5084_v8 }
 0x9dd   : > { %v5166_v39 = vmul.f32 0.5, %v5165_v1  ;;  %v5016_v42 = vpop.xlane.xlu0 %5015 }
 0x9de   : > { %v5086_v24 = vmul.f32 0.5, %v5085_v19  ;;  %v5010_v49 = vpop.xlane.xlu1 %5009  ;;  %v5048_v17 = vmul.f32 %v5016_v42, %v8944_v48 }
 0x9df   : > { %v5167_v12 = vsub.f32 1.5, %v5166_v39  ;;  %v5046_v52 = vmul.f32 %v5010_v49, %v8944_v48 }
 0x9e0   : > { %v6159_v63 = vpop.eup %6158  ;;  %v5087_v16 = vsub.f32 1.5, %v5086_v24  ;;  %v9627_v29 = vadd.f32 1e-05, %v5048_v17 }
 0x9e1   : > { %v6161_v36 = vpop.eup %6160  ;;  %v5168_v51 = vmul.f32 %v6155_v41, %v5167_v12  ;;  %v5114_v11 = vmul.f32 %v6159_v63, %v9619_v54  ;;  %v9630_v38 = vadd.f32 1e-05, %v5046_v52  ;;  %vm5120_vm14 = vweird.f32 %v6159_v63 }
 0x9e2   : > { %v5088_v23 = vmul.f32 %v6157_v62, %v5087_v16  ;;  %v5094_v55 = vmul.f32 %v6161_v36, %v9621_v5  ;;  %6162 = vrsqrt.f32 %v9627_v29  ;;  %vm5100_vm15 = vweird.f32 %v6161_v36  ;;  %vm5121_vm5 = vmor %vm5119_vm3, %vm5120_vm14 }
 0x9e3   : > { %v5172_v20 = vsel %vm5171_vm2, %v6155_v41, %v5168_v51  ;;  %v5115_v9 = vmul.f32 %v6159_v63, %v5114_v11  ;;  %6164 = vrsqrt.f32 %v9630_v38  ;;  %vm5101_vm6 = vmor %vm5099_vm4, %vm5100_vm15  ;;  %vm5149_vm10 = vweird.f32 %v9627_v29 }
 0x9e4   : > { %v5242_v21 = vmul.f32 %v5172_v20, %v9490_v22  ;;  %v5092_v6 = vsel %vm5091_vm13, %v6157_v62, %v5088_v23  ;;  %v5095_v25 = vmul.f32 %v6161_v36, %v5094_v55  ;;  %vm5129_vm8 = vweird.f32 %v9630_v38 }
 0x9e5   : > { %v5234_v61 = vmul.f32 %v5092_v6, %v9484_v45  ;;  %v5116_v60 = vmul.f32 0.5, %v5115_v9  ;;  %v5031_v47 = vpop.xlane.xlu2 %5030  ;;  %v5025_v34 = vpop.xlane.xlu0 %5024 }
 0x9e6   : > { %v5262_v10 = vmul.f32 %v9572_v14, %v5242_v21  ;;  %v5096_v43 = vmul.f32 0.5, %v5095_v25  ;;  %v5053_v28 = vmul.f32 %v5031_v47, %v8944_v48  ;;  %v5019_v0 = vpop.xlane.xlu1 %5018  ;;  %v5051_v18 = vmul.f32 %v5025_v34, %v8944_v48 }
 0x9e7   : > { %v5254_v7 = vmul.f32 %v9572_v14, %v5234_v61  ;;  %v5117_v22 = vsub.f32 1.5, %v5116_v60  ;;  %v5049_v56 = vmul.f32 %v5019_v0, %v8944_v48 }
 0x9e8   : > { %v6163_v45 = vpop.eup %6162  ;;  %v5282_v53 = vadd.f32 %v9577_v46, %v5262_v10  ;;  %v5097_v32 = vsub.f32 1.5, %v5096_v43  ;;  %v9643_v44 = vadd.f32 1e-05, %v5053_v28  ;;  %v9645_v37 = vadd.f32 1e-05, %v5051_v18 }
 0x9e9   : > { %v6165_v57 = vpop.eup %6164  ;;  %v5274_v26 = vadd.f32 %v9577_v46, %v5254_v7  ;;  %v5118_v35 = vmul.f32 %v6159_v63, %v5117_v22  ;;  %v5144_v50 = vmul.f32 %v6163_v45, %v9627_v29  ;;  %v9659_v54 = vadd.f32 1e-05, %v5049_v56 }
 0x9ea   : > { %5298 = vst.msk [vmem:[%s9586_s22 + $0x48] sm:$0xff] %vm468_vm0, %v5282_v53  ;;  %v5098_v41 = vmul.f32 %v6161_v36, %v5097_v32  ;;  %v5124_v62 = vmul.f32 %v6165_v57, %v9630_v38  ;;  %6166 = vrsqrt.f32 %v9643_v44  ;;  %vm5150_vm7 = vweird.f32 %v6163_v45 }
 0x9eb   : > { %5290 = vst.msk [vmem:[%s9586_s22 + $0x8] sm:$0xff] %vm468_vm0, %v5274_v26  ;;  %v5122_v2 = vsel %vm5121_vm5, %v6159_v63, %v5118_v35  ;;  %v5145_v8 = vmul.f32 %v6163_v45, %v5144_v50  ;;  %6168 = vrsqrt.f32 %v9645_v37  ;;  %vm5130_vm9 = vweird.f32 %v6165_v57  ;;  %vm5151_vm11 = vmor %vm5149_vm10, %vm5150_vm7 }
 0x9ec   : > { %v5102_v1 = vsel %vm5101_vm6, %v6161_v36, %v5098_v41  ;;  %v5237_v19 = vmul.f32 %v5122_v2, %v9502_v13  ;;  %v5125_v39 = vmul.f32 %v6165_v57, %v5124_v62  ;;  %6170 = vrsqrt.f32 %v9659_v54  ;;  %vm5131_vm1 = vmor %vm5129_vm8, %vm5130_vm9 }
 0x9ed   : > { %v5235_v5 = vmul.f32 %v5102_v1, %v9509_v3  ;;  %v5146_v42 = vmul.f32 0.5, %v5145_v8  ;;  %v5034_v24 = vpop.xlane.xlu0 %5033  ;;  %vm5199_vm12 = vweird.f32 %v9643_v44  ;;  %vm5179_vm3 = vweird.f32 %v9645_v37 }
 0x9ee   : > { %v5257_v49 = vmul.f32 %v9572_v14, %v5237_v19  ;;  %v5126_v17 = vmul.f32 0.5, %v5125_v39  ;;  %v5028_v12 = vpop.xlane.xlu1 %5027  ;;  %v5054_v52 = vmul.f32 %v5034_v24, %v8944_v48  ;;  %vm5159_vm4 = vweird.f32 %v9659_v54 }
 0x9ef   : > { %v5255_v63 = vmul.f32 %v9572_v14, %v5235_v5  ;;  %v5147_v16 = vsub.f32 1.5, %v5146_v42  ;;  %v5052_v13 = vmul.f32 %v5028_v12, %v8944_v48 }
 0x9f0   : > { %v6167_v36 = vpop.eup %6166  ;;  %v5277_v3 = vadd.f32 %v9577_v46, %v5257_v49  ;;  %v5127_v51 = vsub.f32 1.5, %v5126_v17  ;;  %v9670_v11 = vadd.f32 1e-05, %v5054_v52 }
 0x9f1   : > { %v5275_v23 = vadd.f32 %v9577_v46, %v5255_v63  ;;  %v5148_v55 = vmul.f32 %v6163_v45, %v5147_v16  ;;  %v5194_v20 = vmul.f32 %v6167_v36, %v9643_v44  ;;  %v6169_v9 = vpop.eup %6168  ;;  %v9679_v6 = vadd.f32 1e-05, %v5052_v13 }
 0x9f2   : > { %5293 = vst.msk [vmem:[%s9586_s22 + $0x20] sm:$0xff] %vm468_vm0, %v5277_v3  ;;  %v5128_v21 = vmul.f32 %v6165_v57, %v5127_v51  ;;  %6172 = vrsqrt.f32 %v9670_v11  ;;  %v6171_v25 = vpop.eup %6170  ;;  %v5174_v60 = vmul.f32 %v6169_v9, %v9645_v37  ;;  %vm5200_vm2 = vweird.f32 %v6167_v36 }
 0x9f3   : > { %5291 = vst.msk [vmem:[%s9586_s22 + $0x10] sm:$0xff] %vm468_vm0, %v5275_v23  ;;  %v5152_v29 = vsel %vm5151_vm11, %v6163_v45, %v5148_v55  ;;  %v5195_v61 = vmul.f32 %v6167_v36, %v5194_v20  ;;  %v5154_v38 = vmul.f32 %v6171_v25, %v9659_v54  ;;  %6174 = vrsqrt.f32 %v9679_v6  ;;  %vm5201_vm14 = vmor %vm5199_vm12, %vm5200_vm2 }
 0x9f4   : > { %v5132_v47 = vsel %vm5131_vm1, %v6165_v57, %v5128_v21  ;;  %v5240_v34 = vmul.f32 %v5152_v29, %v9518_v30  ;;  %v5175_v28 = vmul.f32 %v6169_v9, %v5174_v60  ;;  %vm5180_vm13 = vweird.f32 %v6169_v9 }
 0x9f5   : > { %v5238_v10 = vmul.f32 %v5132_v47, %v9522_v27  ;;  %v5196_v43 = vmul.f32 0.5, %v5195_v61  ;;  %v5155_v18 = vmul.f32 %v6171_v25, %v5154_v38  ;;  %vm5160_vm15 = vweird.f32 %v6171_v25  ;;  %vm5181_vm5 = vmor %vm5179_vm3, %vm5180_vm13 }
 0x9f6   : > { %v5260_v0 = vmul.f32 %v9572_v14, %v5240_v34  ;;  %v5176_v56 = vmul.f32 0.5, %v5175_v28  ;;  %vm5161_vm6 = vmor %vm5159_vm4, %vm5160_vm15  ;;  %vm5209_vm9 = vweird.f32 %v9670_v11  ;;  %vm5189_vm11 = vweird.f32 %v9679_v6 }
 0x9f7   : > { %v5258_v7 = vmul.f32 %v9572_v14, %v5238_v10  ;;  %v5197_v22 = vsub.f32 1.5, %v5196_v43  ;;  %v5156_v27 = vmul.f32 0.5, %v5155_v18 }
 0x9f8   : > { %v6173_v45 = vpop.eup %6172  ;;  %v5280_v30 = vadd.f32 %v9577_v46, %v5260_v0  ;;  %v5177_v57 = vsub.f32 1.5, %v5176_v56 }
 0x9f9   : > { %v5278_v53 = vadd.f32 %v9577_v46, %v5258_v7  ;;  %v5198_v32 = vmul.f32 %v6167_v36, %v5197_v22  ;;  %v5204_v26 = vmul.f32 %v6173_v45, %v9670_v11  ;;  %v5157_v35 = vsub.f32 1.5, %v5156_v27  ;;  %v6175_v50 = vpop.eup %6174 }
 0x9fa   : > { %5296 = vst.msk [vmem:[%s9586_s22 + $0x38] sm:$0xff] %vm468_vm0, %v5280_v30  ;;  %v5178_v62 = vmul.f32 %v6169_v9, %v5177_v57  ;;  %v5184_v1 = vmul.f32 %v6175_v50, %v9679_v6  ;;  %vm5210_vm7 = vweird.f32 %v6173_v45  ;;  %vm5190_vm10 = vweird.f32 %v6175_v50 }
 0x9fb   : > { %5294 = vst.msk [vmem:[%s9586_s22 + $0x28] sm:$0xff] %vm468_vm0, %v5278_v53  ;;  %v5202_v41 = vsel %vm5201_vm14, %v6167_v36, %v5198_v32  ;;  %v5205_v44 = vmul.f32 %v6173_v45, %v5204_v26  ;;  %v5158_v8 = vmul.f32 %v6171_v25, %v5157_v35  ;;  %vm5211_vm8 = vmor %vm5209_vm9, %vm5210_vm7 }
 0x9fc   : > { %v5245_v2 = vmul.f32 %v5202_v41, %v9541_v31  ;;  %v5182_v19 = vsel %vm5181_vm5, %v6169_v9, %v5178_v62  ;;  %v5185_v37 = vmul.f32 %v6175_v50, %v5184_v1  ;;  %vm5191_vm1 = vmor %vm5189_vm11, %vm5190_vm10 }
 0x9fd   : > { %v5206_v39 = vmul.f32 0.5, %v5205_v44  ;;  %v5162_v42 = vsel %vm5161_vm6, %v6171_v25, %v5158_v8  ;;  %v5243_v24 = vmul.f32 %v5182_v19, %v9532_v58 }
 0x9fe   : > { %v5265_v5 = vmul.f32 %v9572_v14, %v5245_v2  ;;  %v5241_v49 = vmul.f32 %v5162_v42, %v9536_v33  ;;  %v5186_v12 = vmul.f32 0.5, %v5185_v37 }
 0x9ff   : > { %v5207_v31 = vsub.f32 1.5, %v5206_v39  ;;  %v5263_v17 = vmul.f32 %v9572_v14, %v5243_v24 }
 0xa00   : > { %v5285_v54 = vadd.f32 %v9577_v46, %v5265_v5  ;;  %v5261_v52 = vmul.f32 %v9572_v14, %v5241_v49  ;;  %v5187_v16 = vsub.f32 1.5, %v5186_v12 }
 0xa01   : > { %v5208_v63 = vmul.f32 %v6173_v45, %v5207_v31  ;;  %v5283_v58 = vadd.f32 %v9577_v46, %v5263_v17 }
 0xa02   : > { %5301 = vst.msk [vmem:[%s9586_s22 + $0x60] sm:$0xff] %vm468_vm0, %v5285_v54  ;;  %v5281_v33 = vadd.f32 %v9577_v46, %v5261_v52  ;;  %v5188_v36 = vmul.f32 %v6175_v50, %v5187_v16 }
 0xa03   : > { %v5212_v13 = vsel %vm5211_vm8, %v6173_v45, %v5208_v63  ;;  %5299 = vst.msk [vmem:[%s9586_s22 + $0x50] sm:$0xff] %vm468_vm0, %v5283_v58 }
 0xa04   : > { %v5246_v3 = vmul.f32 %v5212_v13, %v9558_v59  ;;  %5297 = vst.msk [vmem:[%s9586_s22 + $0x40] sm:$0xff] %vm468_vm0, %v5281_v33  ;;  %v5192_v51 = vsel %vm5191_vm1, %v6175_v50, %v5188_v36 }
 0xa05   : > { %v5244_v23 = vmul.f32 %v5192_v51, %v9553_v15 }
 0xa06   : > { %v5266_v11 = vmul.f32 %v9572_v14, %v5246_v3 }
 0xa07   : > { %v5264_v20 = vmul.f32 %v9572_v14, %v5244_v23 }
 0xa08   : > { %v5286_v55 = vadd.f32 %v9577_v46, %v5266_v11 }
 0xa09   : > { %v5284_v9 = vadd.f32 %v9577_v46, %v5264_v20 }
 0xa0a   : > { %5302 = vst.msk [vmem:[%s9586_s22 + $0x68] sm:$0xff] %vm468_vm0, %v5286_v55 }
 0xa0b   : > { %5300 = vst.msk [vmem:[%s9586_s22 + $0x58] sm:$0xff] %vm468_vm0, %v5284_v9 }
 0xa40   : > { %v5037_v21 = vpop.xlane.xlu1 %5036 }
 0xa41   : > { %v5055_v59 = vmul.f32 %v5037_v21, %v8944_v48 }
 0xa43   : > { %v5071_v6 = vadd.f32 1e-05, %v5055_v59 }
 0xa45   : > { %6176 = vrsqrt.f32 %v5071_v6  ;;  %vm5219_vm12 = vweird.f32 %v5071_v6 }
 0xa49   : > { %v5040_v25 = vpop.xlane.xlu2 %5039 }
 0xa4a   : > { %v5056_v29 = vmul.f32 %v5040_v25, %v8944_v48 }
 0xa4b   : > { %v6177_v61 = vpop.eup %6176 }
 0xa4c   : > { %v5214_v15 = vmul.f32 %v6177_v61, %v5071_v6  ;;  %v5072_v60 = vadd.f32 1e-05, %v5056_v29  ;;  %vm5220_vm2 = vweird.f32 %v6177_v61 }
 0xa4d   : > { %vm5221_vm13 = vmor %vm5219_vm12, %vm5220_vm2 }
 0xa4e   : > { %v5215_v47 = vmul.f32 %v6177_v61, %v5214_v15  ;;  %6178 = vrsqrt.f32 %v5072_v60  ;;  %vm5229_vm15 = vweird.f32 %v5072_v60 }
 0xa50   : > { %v5216_v34 = vmul.f32 0.5, %v5215_v47 }
 0xa52   : > { %v5217_v38 = vsub.f32 1.5, %v5216_v34 }
 0xa54   : > { %v6179_v10 = vpop.eup %6178  ;;  %v5218_v43 = vmul.f32 %v6177_v61, %v5217_v38 }
 0xa55   : > { %v5224_v28 = vmul.f32 %v6179_v10, %v5072_v60  ;;  %vm5230_vm14 = vweird.f32 %v6179_v10 }
 0xa56   : > { %v5222_v0 = vsel %vm5221_vm13, %v6177_v61, %v5218_v43  ;;  %vm5231_vm3 = vmor %vm5229_vm15, %vm5230_vm14 }
 0xa57   : > { %v5247_v18 = vmul.f32 %v5222_v0, %v9603_v40  ;;  %v5225_v7 = vmul.f32 %v6179_v10, %v5224_v28 }
 0xa59   : > { %v5267_v48 = vmul.f32 %v9572_v14, %v5247_v18  ;;  %v5226_v22 = vmul.f32 0.5, %v5225_v7 }
 0xa5b   : > { %v5287_v56 = vadd.f32 %v9577_v46, %v5267_v48  ;;  %v5227_v45 = vsub.f32 1.5, %v5226_v22 }
 0xa5d   : > { %5303 = vst.msk [vmem:[%s9586_s22 + $0x70] sm:$0xff] %vm468_vm0, %v5287_v56  ;;  %v5228_v30 = vmul.f32 %v6179_v10, %v5227_v45 }
 0xa5f   : > { %v5232_v27 = vsel %vm5231_vm3, %v6179_v10, %v5228_v30 }
 0xa60   : > { %v5248_v53 = vmul.f32 %v5232_v27, %v9612_v4 }
 0xa62   : > { %v5268_v32 = vmul.f32 %v9572_v14, %v5248_v53 }
 0xa64   : > { %v5288_v40 = vadd.f32 %v9577_v46, %v5268_v32 }
 0xa66   : > { %5304 = vst.msk [vmem:[%s9586_s22 + $0x78] sm:$0xff] %vm468_vm0, %v5288_v40 }
 0xa67 PF: > { %s23_s25 = sadd.s32 1, %s6202_s25  }
 0xa68   : > { %p20_p4 = scmp.ge.s32.totalorder %s23_s25, 6  }
 0xa6a   :  { %22 = sbr.rel (!%p20_p4) target bundleno = 1 (0x1), region = 102 }

</bundles_post_ra>
